<compile_context>
chip_gen: v7x
topology: tpu7x:2x2x1
jax: 0.10.0
libtpu: 0.0.40
codegen_flags: <defaults>
</compile_context>

<pallas_src>
import functools
import math

import jax
import jax.numpy as jnp
from jax.experimental import pallas as pl
from jax.experimental.pallas import tpu as pltpu


# ------------------------------ shared helpers ----------------------------- #

def _layernorm(s, g, b):
    # torch LayerNorm, eps = 1e-5, over the trailing feature axis.
    mu = jnp.mean(s, axis=-1, keepdims=True)
    var = jnp.mean((s - mu) ** 2, axis=-1, keepdims=True)
    return (s - mu) * jax.lax.rsqrt(var + 1e-5) * g + b


_BLOCK_KEYS = ("wq", "wk", "wv", "bq", "bk", "bv", "wo", "bo",
               "ln1_g", "ln1_b", "wff", "bff", "ln2_g", "ln2_b")
_N_BLOCK_ARGS = len(_BLOCK_KEYS)


# --------------------------- fused branch kernel --------------------------- #

def _branch_kernel(*refs, n_layers, num_heads):
    """One batch element per grid step: embed + PE + n_layers encoder blocks."""
    x_ref, convw_ref, bpe_ref = refs[:3]
    w_refs = refs[3:3 + n_layers * _N_BLOCK_ARGS]
    o_ref, attn_ref = refs[3 + n_layers * _N_BLOCK_ARGS:]

    # 1x1 Conv1d (per-position Linear) + fused (bias + positional encoding).
    x = x_ref[0]                                                    # [S, F]
    h = (jnp.dot(x, convw_ref[...], preferred_element_type=jnp.float32)
         + bpe_ref[...])                                            # [S, D]
    S, D = h.shape

    for layer in range(n_layers):                       # static unroll
        (wq, wk, wv, bq, bk, bv, wo, bo,
         g1, b1, wff, bff, g2, b2) = w_refs[layer * _N_BLOCK_ARGS:
                                            (layer + 1) * _N_BLOCK_ARGS]

        attn_sum = jnp.zeros((S, S), jnp.float32)
        attn_out = jnp.zeros((S, D), jnp.float32)
        for head in range(num_heads):                    # static unroll
            # Per-head weights live on a leading axis -> static ref index,
            # no 8-lane value slicing / relayouts.
            qh = jnp.dot(h, wq[head], preferred_element_type=jnp.float32) + bq[head]
            kh = jnp.dot(h, wk[head], preferred_element_type=jnp.float32) + bk[head]
            vh = jnp.dot(h, wv[head], preferred_element_type=jnp.float32) + bv[head]
            # scores (1/sqrt(hd) is pre-folded into wq/bq at init)
            s = jax.lax.dot_general(qh, kh, (((1,), (1,)), ((), ())),
                                    preferred_element_type=jnp.float32)
            s = s - jnp.max(s, axis=-1, keepdims=True)
            p = jnp.exp(s)
            p = p / jnp.sum(p, axis=-1, keepdims=True)   # exact softmax
            attn_sum = attn_sum + p
            ctx = jnp.dot(p, vh, preferred_element_type=jnp.float32)  # [S, hd]
            # concat_h(ctx_h) @ Wo == sum_h ctx_h @ Wo[h]   (no concat)
            attn_out = attn_out + jnp.dot(ctx, wo[head],
                                          preferred_element_type=jnp.float32)
        attn_out = attn_out + bo[...]

        # Residual + LayerNorm 1  (dropout: eval mode -> identity)
        h1 = _layernorm(h + attn_out, g1[...], b1[...])

        # Collapsed FFN (no nonlinearity between the two Linears in the ref).
        ff = jnp.dot(h1, wff[...], preferred_element_type=jnp.float32) + bff[...]

        # Residual + LayerNorm 2
        h = _layernorm(h1 + ff, g2[...], b2[...])

        # torch MultiheadAttention returns head-averaged attention weights.
        attn_ref[0, layer] = (attn_sum * (1.0 / num_heads)).astype(attn_ref.dtype)

    o_ref[0] = h.astype(o_ref.dtype)


def _const_spec(arr):
    rank = arr.ndim
    return pl.BlockSpec(arr.shape, lambda b, _z=(0,) * rank: _z)


def _sinusoidal_pe(seq_len, d):
    pos = jnp.arange(seq_len, dtype=jnp.float32)[:, None]
    div = jnp.exp(jnp.arange(0, d, 2, dtype=jnp.float32)
                  * (-math.log(10000.0) / d))
    pe = jnp.zeros((seq_len, d), jnp.float32)
    pe = pe.at[:, 0::2].set(jnp.sin(pos * div))
    pe = pe.at[:, 1::2].set(jnp.cos(pos * div))
    return pe


def pallas_encoder_branch(x, params, num_heads, add_pe):
    """Whole branch (embed + PE + all blocks) as ONE pallas_call."""
    B, S, F = x.shape
    D = params["conv_w"].shape[1]
    blocks = params["blocks"]
    n_layers = len(blocks)

    pe = _sinusoidal_pe(S, D) if add_pe else jnp.zeros((S, D), jnp.float32)
    bias_pe = params["conv_b"] + pe          # fold conv bias + PE into one add

    args = [x, params["conv_w"], bias_pe]
    in_specs = [pl.BlockSpec((1, S, F), lambda b: (b, 0, 0)),
                _const_spec(params["conv_w"]),
                _const_spec(bias_pe)]
    for blk in blocks:
        for k in _BLOCK_KEYS:
            args.append(blk[k])
            in_specs.append(_const_spec(blk[k]))

    kernel = functools.partial(_branch_kernel, n_layers=n_layers,
                               num_heads=num_heads)
    return pl.pallas_call(
        kernel,
        grid=(B,),
        in_specs=in_specs,
        out_specs=[pl.BlockSpec((1, S, D), lambda b: (b, 0, 0)),
                   pl.BlockSpec((1, n_layers, S, S), lambda b: (b, 0, 0, 0))],
        out_shape=(jax.ShapeDtypeStruct((B, S, D), jnp.float32),
                   jax.ShapeDtypeStruct((B, n_layers, S, S), jnp.float32)),
        compiler_params=pltpu.CompilerParams(
            dimension_semantics=("parallel",)),
    )(*args)


# ------------------------- pooled classifier kernel ------------------------ #

def _pool_clf_kernel(x_ref, w_ref, b_ref, o_ref, *, kernel_size):
    # MaxPool1d(kernel_size, stride=2) + Linear + Sigmoid.
    # m[:, c] = max_{i<kernel_size} x[:, c+i]; the stride-2 decimation is
    # pre-folded into w (zero-padded rows), so pooling+Linear = one matmul.
    x = x_ref[...]                                                  # [M, L]
    span = w_ref.shape[0]
    m = x[:, 0:span]
    for i in range(1, kernel_size):
        m = jnp.maximum(m, x[:, i:i + span])
    z = jnp.dot(m, w_ref[...], preferred_element_type=jnp.float32) + b_ref[...]
    o_ref[...] = (1.0 / (1.0 + jnp.exp(-z))).astype(o_ref.dtype)   # exact sigmoid


def pallas_pool_clf(x, w_folded, b, kernel_size=5):
    M = x.shape[0]
    N = w_folded.shape[1]
    return pl.pallas_call(
        functools.partial(_pool_clf_kernel, kernel_size=kernel_size),
        out_shape=jax.ShapeDtypeStruct((M, N), jnp.float32),
    )(x, w_folded, b)


# --------------------------- parameter initialization ---------------------- #

def _init_block(key, d, n_heads):
    hd = d // n_heads
    ks = jax.random.split(key, 6)
    s = 0.05
    scale = 1.0 / math.sqrt(hd)
    wq = jax.random.normal(ks[0], (n_heads, d, hd), jnp.float32) * s
    wk = jax.random.normal(ks[1], (n_heads, d, hd), jnp.float32) * s
    wv = jax.random.normal(ks[2], (n_heads, d, hd), jnp.float32) * s
    wo = jax.random.normal(ks[3], (n_heads, hd, d), jnp.float32) * s
    # FFN weights (Linear(d, 2d) -> Linear(2d, d), no nonlinearity in between)
    w1 = jax.random.normal(ks[4], (d, 2 * d), jnp.float32) * s
    w2 = jax.random.normal(ks[5], (2 * d, d), jnp.float32) * s
    b1 = jnp.zeros((1, 2 * d), jnp.float32)
    b2 = jnp.zeros((1, d), jnp.float32)
    return dict(
        wq=wq * scale,                                 # 1/sqrt(hd) folded in
        wk=wk, wv=wv,
        bq=jnp.zeros((n_heads, 1, hd), jnp.float32),   # (pre-scaled; zero init)
        bk=jnp.zeros((n_heads, 1, hd), jnp.float32),
        bv=jnp.zeros((n_heads, 1, hd), jnp.float32),
        wo=wo,
        bo=jnp.zeros((1, d), jnp.float32),
        ln1_g=jnp.ones((1, d), jnp.float32),
        ln1_b=jnp.zeros((1, d), jnp.float32),
        wff=w1 @ w2,                                   # collapsed FFN weight [d, d]
        bff=b1 @ w2 + b2,                              # collapsed FFN bias   [1, d]
        ln2_g=jnp.ones((1, d), jnp.float32),
        ln2_b=jnp.zeros((1, d), jnp.float32),
    )


def _init_encoder(key, in_feat, d, n_layers, n_heads):
    ks = jax.random.split(key, n_layers + 1)
    return dict(
        conv_w=jax.random.normal(ks[0], (in_feat, d), jnp.float32) * 0.05,
        conv_b=jnp.zeros((1, d), jnp.float32),
        blocks=[_init_block(ks[i + 1], d, n_heads) for i in range(n_layers)],
    )


def init_params(key, input_features, d_model, d_model_stell, n_layers, n_heads,
                n_class, pooled_len, pool_stride=2):
    k1, k2, k3, k4 = jax.random.split(key, 4)
    clf_w = jax.random.normal(k4, (pooled_len, n_class), jnp.float32) * 0.05
    # Fold the stride-2 decimation of the pooled windows into the classifier
    # weight: rows 0,2,... hold clf_w, odd rows are exact zeros.
    span = pool_stride * (pooled_len - 1) + 1
    clf_wfold = jnp.zeros((span, n_class), jnp.float32)
    clf_wfold = clf_wfold.at[0::pool_stride, :].set(clf_w)
    return dict(
        enc_local=_init_encoder(k1, input_features, d_model, n_layers, n_heads),
        enc_global=_init_encoder(k2, input_features, d_model, n_layers, n_heads),
        enc_stellar=_init_encoder(k3, 1, d_model_stell, n_layers, n_heads),
        clf_wfold=clf_wfold,
        clf_b=jnp.zeros((1, n_class), jnp.float32),
    )


# ------------------------------- model forward ----------------------------- #

def classification_model_forward(params, x, x_cen, x_global, x_cen_global,
                                 x_stell, x_timel, x_timeg, *, n_heads,
                                 d_model):
    # TODO(synk): x_timel / x_timeg accepted but unused (PositionalEncodingTime
    # is undefined in the reference; sinusoidal PE substituted).
    del x_timel, x_timeg
    B = x.shape[0]

    # ---- stellar branch: 1x1 conv embed + encoder blocks (no PE) ----
    hs, stell_attn = pallas_encoder_branch(x_stell, params["enc_stellar"],
                                           n_heads, add_pe=False)

    # ---- local branch ----
    hl, attn_l = pallas_encoder_branch(jnp.concatenate([x, x_cen], axis=-1),
                                       params["enc_local"], n_heads, add_pe=True)

    # ---- global branch ----
    hg, attn_g = pallas_encoder_branch(
        jnp.concatenate([x_global, x_cen_global], axis=-1),
        params["enc_global"], n_heads, add_pe=True)

    # ---- classifier head ----
    out_local = hl.reshape(B, -1)
    out_global = hg.reshape(B, -1)
    out_stell = hs.reshape(B, -1)
    out = jnp.concatenate([out_local, out_global, out_stell], axis=1)
    flat = out.reshape(-1, 2 * d_model)                # view(-1, d_model*2)
    logits = pallas_pool_clf(flat, params["clf_wfold"], params["clf_b"])
    return logits, out_local, out_global, attn_l, attn_g, stell_attn


# ------------------------------------ main ---------------------------------- #

if __name__ == "__main__":
    # Small shapes consistent with the module's forward.
    B = 2
    seq_len = 8                 # local seq length
    seq_len_g = seq_len * 4     # global seq length
    feat_half = 2               # features of x / x_cen each
    input_features = 2 * feat_half
    d_model = 32
    n_heads = 4
    n_layers = 1
    n_class = 3
    seq_len_stell = 6
    d_model_stell = 32

    pooled_len = (2 * d_model - 5) // 2 + 1   # MaxPool1d(5, stride=2) output length

    key = jax.random.PRNGKey(0)
    kp, kx = jax.random.split(key)
    params = init_params(kp, input_features, d_model, d_model_stell, n_layers,
                         n_heads, n_class, pooled_len)

    ks = jax.random.split(kx, 7)
    x = jax.random.normal(ks[0], (B, seq_len, feat_half), jnp.float32)
    x_cen = jax.random.normal(ks[1], (B, seq_len, feat_half), jnp.float32)
    x_global = jax.random.normal(ks[2], (B, seq_len_g, feat_half), jnp.float32)
    x_cen_global = jax.random.normal(ks[3], (B, seq_len_g, feat_half), jnp.float32)
    x_stell = jax.random.normal(ks[4], (B, seq_len_stell, 1), jnp.float32)
    x_timel = jax.random.normal(ks[5], (B, seq_len), jnp.float32)
    x_timeg = jax.random.normal(ks[6], (B, seq_len_g), jnp.float32)

    fwd = jax.jit(functools.partial(classification_model_forward,
                                    n_heads=n_heads, d_model=d_model))
    outs = fwd(params, x, x_cen, x_global, x_cen_global, x_stell,
               x_timel, x_timeg)

    for o in outs:
        jax.block_until_ready(o)

    logits = outs[0]
    assert logits.shape == (B * (seq_len * d_model + seq_len_g * d_model
                                 + seq_len_stell * d_model_stell)
                            // (2 * d_model), n_class)
    assert bool(jnp.all(jnp.isfinite(logits)))
    print("KERNEL_OK")
</pallas_src>

<mosaic_0001>
module attributes {stable_mosaic.version = 11 : i64} {
  func.func @_branch_kernel(%arg0: i32, %arg1: memref<1x32x4xf32, #tpu.memory_space<vmem>>, %arg2: memref<4x32xf32, #tpu.memory_space<vmem>>, %arg3: memref<32x32xf32, #tpu.memory_space<vmem>>, %arg4: memref<4x32x8xf32, #tpu.memory_space<vmem>>, %arg5: memref<4x32x8xf32, #tpu.memory_space<vmem>>, %arg6: memref<4x32x8xf32, #tpu.memory_space<vmem>>, %arg7: memref<4x1x8xf32, #tpu.memory_space<vmem>>, %arg8: memref<4x1x8xf32, #tpu.memory_space<vmem>>, %arg9: memref<4x1x8xf32, #tpu.memory_space<vmem>>, %arg10: memref<4x8x32xf32, #tpu.memory_space<vmem>>, %arg11: memref<1x32xf32, #tpu.memory_space<vmem>>, %arg12: memref<1x32xf32, #tpu.memory_space<vmem>>, %arg13: memref<1x32xf32, #tpu.memory_space<vmem>>, %arg14: memref<32x32xf32, #tpu.memory_space<vmem>>, %arg15: memref<1x32xf32, #tpu.memory_space<vmem>>, %arg16: memref<1x32xf32, #tpu.memory_space<vmem>>, %arg17: memref<1x32xf32, #tpu.memory_space<vmem>>, %arg18: memref<1x32x32xf32, #tpu.memory_space<vmem>>, %arg19: memref<1x1x32x32xf32, #tpu.memory_space<vmem>>) attributes {dimension_semantics = [#tpu.dimension_semantics<parallel>], iteration_bounds = array<i64: 2>, scalar_prefetch = 0 : i64, scratch_operands = 0 : i64, tpu.core_type = #tpu.core_type<tc>, window_params = [{transform_indices = @transform_0, window_bounds = array<i64: 1, 32, 4>}, {pipeline_mode = #tpu.pipeline_mode<synchronous>, transform_indices = @transform_1, window_bounds = array<i64: 4, 32>}, {pipeline_mode = #tpu.pipeline_mode<synchronous>, transform_indices = @transform_2, window_bounds = array<i64: 32, 32>}, {pipeline_mode = #tpu.pipeline_mode<synchronous>, transform_indices = @transform_3, window_bounds = array<i64: 4, 32, 8>}, {pipeline_mode = #tpu.pipeline_mode<synchronous>, transform_indices = @transform_4, window_bounds = array<i64: 4, 32, 8>}, {pipeline_mode = #tpu.pipeline_mode<synchronous>, transform_indices = @transform_5, window_bounds = array<i64: 4, 32, 8>}, {pipeline_mode = #tpu.pipeline_mode<synchronous>, transform_indices = @transform_6, window_bounds = array<i64: 4, 1, 8>}, {pipeline_mode = #tpu.pipeline_mode<synchronous>, transform_indices = @transform_7, window_bounds = array<i64: 4, 1, 8>}, {pipeline_mode = #tpu.pipeline_mode<synchronous>, transform_indices = @transform_8, window_bounds = array<i64: 4, 1, 8>}, {pipeline_mode = #tpu.pipeline_mode<synchronous>, transform_indices = @transform_9, window_bounds = array<i64: 4, 8, 32>}, {pipeline_mode = #tpu.pipeline_mode<synchronous>, transform_indices = @transform_10, window_bounds = array<i64: 1, 32>}, {pipeline_mode = #tpu.pipeline_mode<synchronous>, transform_indices = @transform_11, window_bounds = array<i64: 1, 32>}, {pipeline_mode = #tpu.pipeline_mode<synchronous>, transform_indices = @transform_12, window_bounds = array<i64: 1, 32>}, {pipeline_mode = #tpu.pipeline_mode<synchronous>, transform_indices = @transform_13, window_bounds = array<i64: 32, 32>}, {pipeline_mode = #tpu.pipeline_mode<synchronous>, transform_indices = @transform_14, window_bounds = array<i64: 1, 32>}, {pipeline_mode = #tpu.pipeline_mode<synchronous>, transform_indices = @transform_15, window_bounds = array<i64: 1, 32>}, {pipeline_mode = #tpu.pipeline_mode<synchronous>, transform_indices = @transform_16, window_bounds = array<i64: 1, 32>}, {transform_indices = @transform_17, window_bounds = array<i64: 1, 32, 32>}, {transform_indices = @transform_18, window_bounds = array<i64: 1, 1, 32, 32>}]} {
    %c0 = arith.constant 0 : index
    %c0_0 = arith.constant 0 : index
    %c0_1 = arith.constant 0 : index
    %0 = vector.load %arg1[%c0, %c0_0, %c0_1] : memref<1x32x4xf32, #tpu.memory_space<vmem>>, vector<1x32x4xf32>
    %1 = vector.shape_cast %0 : vector<1x32x4xf32> to vector<32x4xf32>
    %c0_2 = arith.constant 0 : index
    %c0_3 = arith.constant 0 : index
    %2 = vector.load %arg2[%c0_2, %c0_3] : memref<4x32xf32, #tpu.memory_space<vmem>>, vector<4x32xf32>
    %cst = arith.constant dense<0.000000e+00> : vector<32x32xf32>
    %3 = tpu.matmul %1, %2, %cst {dimension_numbers = #tpu.dot_dimension_numbers<[1], [0], [0], [1], [0, 0, 1, 1], [], []>} : vector<32x4xf32>, vector<4x32xf32>, vector<32x32xf32> -> vector<32x32xf32>
    %c0_4 = arith.constant 0 : index
    %c0_5 = arith.constant 0 : index
    %4 = vector.load %arg3[%c0_4, %c0_5] : memref<32x32xf32, #tpu.memory_space<vmem>>, vector<32x32xf32>
    %5 = arith.addf %3, %4 : vector<32x32xf32>
    %cst_6 = arith.constant 0.000000e+00 : f32
    %6 = vector.broadcast %cst_6 : f32 to vector<32x32xf32>
    %cst_7 = arith.constant 0.000000e+00 : f32
    %7 = vector.broadcast %cst_7 : f32 to vector<32x32xf32>
    %c0_8 = arith.constant 0 : index
    %c0_9 = arith.constant 0 : index
    %c0_10 = arith.constant 0 : index
    %8 = vector.load %arg4[%c0_8, %c0_9, %c0_10] : memref<4x32x8xf32, #tpu.memory_space<vmem>>, vector<1x32x8xf32>
    %9 = vector.shape_cast %8 : vector<1x32x8xf32> to vector<32x8xf32>
    %cst_11 = arith.constant dense<0.000000e+00> : vector<32x8xf32>
    %10 = tpu.matmul %5, %9, %cst_11 {dimension_numbers = #tpu.dot_dimension_numbers<[1], [0], [0], [1], [0, 0, 1, 1], [], []>} : vector<32x32xf32>, vector<32x8xf32>, vector<32x8xf32> -> vector<32x8xf32>
    %c0_12 = arith.constant 0 : index
    %c0_13 = arith.constant 0 : index
    %c0_14 = arith.constant 0 : index
    %11 = vector.load %arg7[%c0_12, %c0_13, %c0_14] : memref<4x1x8xf32, #tpu.memory_space<vmem>>, vector<1x1x8xf32>
    %12 = vector.shape_cast %11 : vector<1x1x8xf32> to vector<1x8xf32>
    %13 = vector.broadcast %12 : vector<1x8xf32> to vector<32x8xf32>
    %14 = arith.addf %10, %13 : vector<32x8xf32>
    %c0_15 = arith.constant 0 : index
    %c0_16 = arith.constant 0 : index
    %c0_17 = arith.constant 0 : index
    %15 = vector.load %arg5[%c0_15, %c0_16, %c0_17] : memref<4x32x8xf32, #tpu.memory_space<vmem>>, vector<1x32x8xf32>
    %16 = vector.shape_cast %15 : vector<1x32x8xf32> to vector<32x8xf32>
    %cst_18 = arith.constant dense<0.000000e+00> : vector<32x8xf32>
    %17 = tpu.matmul %5, %16, %cst_18 {dimension_numbers = #tpu.dot_dimension_numbers<[1], [0], [0], [1], [0, 0, 1, 1], [], []>} : vector<32x32xf32>, vector<32x8xf32>, vector<32x8xf32> -> vector<32x8xf32>
    %c0_19 = arith.constant 0 : index
    %c0_20 = arith.constant 0 : index
    %c0_21 = arith.constant 0 : index
    %18 = vector.load %arg8[%c0_19, %c0_20, %c0_21] : memref<4x1x8xf32, #tpu.memory_space<vmem>>, vector<1x1x8xf32>
    %19 = vector.shape_cast %18 : vector<1x1x8xf32> to vector<1x8xf32>
    %20 = vector.broadcast %19 : vector<1x8xf32> to vector<32x8xf32>
    %21 = arith.addf %17, %20 : vector<32x8xf32>
    %c0_22 = arith.constant 0 : index
    %c0_23 = arith.constant 0 : index
    %c0_24 = arith.constant 0 : index
    %22 = vector.load %arg6[%c0_22, %c0_23, %c0_24] : memref<4x32x8xf32, #tpu.memory_space<vmem>>, vector<1x32x8xf32>
    %23 = vector.shape_cast %22 : vector<1x32x8xf32> to vector<32x8xf32>
    %cst_25 = arith.constant dense<0.000000e+00> : vector<32x8xf32>
    %24 = tpu.matmul %5, %23, %cst_25 {dimension_numbers = #tpu.dot_dimension_numbers<[1], [0], [0], [1], [0, 0, 1, 1], [], []>} : vector<32x32xf32>, vector<32x8xf32>, vector<32x8xf32> -> vector<32x8xf32>
    %c0_26 = arith.constant 0 : index
    %c0_27 = arith.constant 0 : index
    %c0_28 = arith.constant 0 : index
    %25 = vector.load %arg9[%c0_26, %c0_27, %c0_28] : memref<4x1x8xf32, #tpu.memory_space<vmem>>, vector<1x1x8xf32>
    %26 = vector.shape_cast %25 : vector<1x1x8xf32> to vector<1x8xf32>
    %27 = vector.broadcast %26 : vector<1x8xf32> to vector<32x8xf32>
    %28 = arith.addf %24, %27 : vector<32x8xf32>
    %cst_29 = arith.constant dense<0.000000e+00> : vector<32x32xf32>
    %29 = tpu.matmul %14, %21, %cst_29 {dimension_numbers = #tpu.dot_dimension_numbers<[1], [1], [0], [0], [0, 0, 1, 0], [], []>} : vector<32x8xf32>, vector<32x8xf32>, vector<32x32xf32> -> vector<32x32xf32>
    %cst_30 = arith.constant dense<0xFF800000> : vector<32xf32>
    %30 = vector.multi_reduction <maximumf>, %29, %cst_30 [1] : vector<32x32xf32> to vector<32xf32>
    %31 = vector.shape_cast %30 : vector<32xf32> to vector<32x1xf32>
    %32 = vector.broadcast %31 : vector<32x1xf32> to vector<32x32xf32>
    %33 = arith.subf %29, %32 : vector<32x32xf32>
    %34 = math.exp %33 : vector<32x32xf32>
    %cst_31 = arith.constant dense<0.000000e+00> : vector<32xf32>
    %35 = vector.multi_reduction <add>, %34, %cst_31 [1] : vector<32x32xf32> to vector<32xf32>
    %36 = vector.shape_cast %35 : vector<32xf32> to vector<32x1xf32>
    %37 = vector.broadcast %36 : vector<32x1xf32> to vector<32x32xf32>
    %38 = arith.divf %34, %37 : vector<32x32xf32>
    %39 = arith.addf %6, %38 : vector<32x32xf32>
    %cst_32 = arith.constant dense<0.000000e+00> : vector<32x8xf32>
    %40 = tpu.matmul %38, %28, %cst_32 {dimension_numbers = #tpu.dot_dimension_numbers<[1], [0], [0], [1], [0, 0, 1, 1], [], []>} : vector<32x32xf32>, vector<32x8xf32>, vector<32x8xf32> -> vector<32x8xf32>
    %c0_33 = arith.constant 0 : index
    %c0_34 = arith.constant 0 : index
    %c0_35 = arith.constant 0 : index
    %41 = vector.load %arg10[%c0_33, %c0_34, %c0_35] : memref<4x8x32xf32, #tpu.memory_space<vmem>>, vector<1x8x32xf32>
    %42 = vector.shape_cast %41 : vector<1x8x32xf32> to vector<8x32xf32>
    %cst_36 = arith.constant dense<0.000000e+00> : vector<32x32xf32>
    %43 = tpu.matmul %40, %42, %cst_36 {dimension_numbers = #tpu.dot_dimension_numbers<[1], [0], [0], [1], [0, 0, 1, 1], [], []>} : vector<32x8xf32>, vector<8x32xf32>, vector<32x32xf32> -> vector<32x32xf32>
    %44 = arith.addf %7, %43 : vector<32x32xf32>
    %c1 = arith.constant 1 : index
    %c0_37 = arith.constant 0 : index
    %c0_38 = arith.constant 0 : index
    %45 = vector.load %arg4[%c1, %c0_37, %c0_38] : memref<4x32x8xf32, #tpu.memory_space<vmem>>, vector<1x32x8xf32>
    %46 = vector.shape_cast %45 : vector<1x32x8xf32> to vector<32x8xf32>
    %cst_39 = arith.constant dense<0.000000e+00> : vector<32x8xf32>
    %47 = tpu.matmul %5, %46, %cst_39 {dimension_numbers = #tpu.dot_dimension_numbers<[1], [0], [0], [1], [0, 0, 1, 1], [], []>} : vector<32x32xf32>, vector<32x8xf32>, vector<32x8xf32> -> vector<32x8xf32>
    %c1_40 = arith.constant 1 : index
    %c0_41 = arith.constant 0 : index
    %c0_42 = arith.constant 0 : index
    %48 = vector.load %arg7[%c1_40, %c0_41, %c0_42] : memref<4x1x8xf32, #tpu.memory_space<vmem>>, vector<1x1x8xf32>
    %49 = vector.shape_cast %48 : vector<1x1x8xf32> to vector<1x8xf32>
    %50 = vector.broadcast %49 : vector<1x8xf32> to vector<32x8xf32>
    %51 = arith.addf %47, %50 : vector<32x8xf32>
    %c1_43 = arith.constant 1 : index
    %c0_44 = arith.constant 0 : index
    %c0_45 = arith.constant 0 : index
    %52 = vector.load %arg5[%c1_43, %c0_44, %c0_45] : memref<4x32x8xf32, #tpu.memory_space<vmem>>, vector<1x32x8xf32>
    %53 = vector.shape_cast %52 : vector<1x32x8xf32> to vector<32x8xf32>
    %cst_46 = arith.constant dense<0.000000e+00> : vector<32x8xf32>
    %54 = tpu.matmul %5, %53, %cst_46 {dimension_numbers = #tpu.dot_dimension_numbers<[1], [0], [0], [1], [0, 0, 1, 1], [], []>} : vector<32x32xf32>, vector<32x8xf32>, vector<32x8xf32> -> vector<32x8xf32>
    %c1_47 = arith.constant 1 : index
    %c0_48 = arith.constant 0 : index
    %c0_49 = arith.constant 0 : index
    %55 = vector.load %arg8[%c1_47, %c0_48, %c0_49] : memref<4x1x8xf32, #tpu.memory_space<vmem>>, vector<1x1x8xf32>
    %56 = vector.shape_cast %55 : vector<1x1x8xf32> to vector<1x8xf32>
    %57 = vector.broadcast %56 : vector<1x8xf32> to vector<32x8xf32>
    %58 = arith.addf %54, %57 : vector<32x8xf32>
    %c1_50 = arith.constant 1 : index
    %c0_51 = arith.constant 0 : index
    %c0_52 = arith.constant 0 : index
    %59 = vector.load %arg6[%c1_50, %c0_51, %c0_52] : memref<4x32x8xf32, #tpu.memory_space<vmem>>, vector<1x32x8xf32>
    %60 = vector.shape_cast %59 : vector<1x32x8xf32> to vector<32x8xf32>
    %cst_53 = arith.constant dense<0.000000e+00> : vector<32x8xf32>
    %61 = tpu.matmul %5, %60, %cst_53 {dimension_numbers = #tpu.dot_dimension_numbers<[1], [0], [0], [1], [0, 0, 1, 1], [], []>} : vector<32x32xf32>, vector<32x8xf32>, vector<32x8xf32> -> vector<32x8xf32>
    %c1_54 = arith.constant 1 : index
    %c0_55 = arith.constant 0 : index
    %c0_56 = arith.constant 0 : index
    %62 = vector.load %arg9[%c1_54, %c0_55, %c0_56] : memref<4x1x8xf32, #tpu.memory_space<vmem>>, vector<1x1x8xf32>
    %63 = vector.shape_cast %62 : vector<1x1x8xf32> to vector<1x8xf32>
    %64 = vector.broadcast %63 : vector<1x8xf32> to vector<32x8xf32>
    %65 = arith.addf %61, %64 : vector<32x8xf32>
    %cst_57 = arith.constant dense<0.000000e+00> : vector<32x32xf32>
    %66 = tpu.matmul %51, %58, %cst_57 {dimension_numbers = #tpu.dot_dimension_numbers<[1], [1], [0], [0], [0, 0, 1, 0], [], []>} : vector<32x8xf32>, vector<32x8xf32>, vector<32x32xf32> -> vector<32x32xf32>
    %cst_58 = arith.constant dense<0xFF800000> : vector<32xf32>
    %67 = vector.multi_reduction <maximumf>, %66, %cst_58 [1] : vector<32x32xf32> to vector<32xf32>
    %68 = vector.shape_cast %67 : vector<32xf32> to vector<32x1xf32>
    %69 = vector.broadcast %68 : vector<32x1xf32> to vector<32x32xf32>
    %70 = arith.subf %66, %69 : vector<32x32xf32>
    %71 = math.exp %70 : vector<32x32xf32>
    %cst_59 = arith.constant dense<0.000000e+00> : vector<32xf32>
    %72 = vector.multi_reduction <add>, %71, %cst_59 [1] : vector<32x32xf32> to vector<32xf32>
    %73 = vector.shape_cast %72 : vector<32xf32> to vector<32x1xf32>
    %74 = vector.broadcast %73 : vector<32x1xf32> to vector<32x32xf32>
    %75 = arith.divf %71, %74 : vector<32x32xf32>
    %76 = arith.addf %39, %75 : vector<32x32xf32>
    %cst_60 = arith.constant dense<0.000000e+00> : vector<32x8xf32>
    %77 = tpu.matmul %75, %65, %cst_60 {dimension_numbers = #tpu.dot_dimension_numbers<[1], [0], [0], [1], [0, 0, 1, 1], [], []>} : vector<32x32xf32>, vector<32x8xf32>, vector<32x8xf32> -> vector<32x8xf32>
    %c1_61 = arith.constant 1 : index
    %c0_62 = arith.constant 0 : index
    %c0_63 = arith.constant 0 : index
    %78 = vector.load %arg10[%c1_61, %c0_62, %c0_63] : memref<4x8x32xf32, #tpu.memory_space<vmem>>, vector<1x8x32xf32>
    %79 = vector.shape_cast %78 : vector<1x8x32xf32> to vector<8x32xf32>
    %cst_64 = arith.constant dense<0.000000e+00> : vector<32x32xf32>
    %80 = tpu.matmul %77, %79, %cst_64 {dimension_numbers = #tpu.dot_dimension_numbers<[1], [0], [0], [1], [0, 0, 1, 1], [], []>} : vector<32x8xf32>, vector<8x32xf32>, vector<32x32xf32> -> vector<32x32xf32>
    %81 = arith.addf %44, %80 : vector<32x32xf32>
    %c2 = arith.constant 2 : index
    %c0_65 = arith.constant 0 : index
    %c0_66 = arith.constant 0 : index
    %82 = vector.load %arg4[%c2, %c0_65, %c0_66] : memref<4x32x8xf32, #tpu.memory_space<vmem>>, vector<1x32x8xf32>
    %83 = vector.shape_cast %82 : vector<1x32x8xf32> to vector<32x8xf32>
    %cst_67 = arith.constant dense<0.000000e+00> : vector<32x8xf32>
    %84 = tpu.matmul %5, %83, %cst_67 {dimension_numbers = #tpu.dot_dimension_numbers<[1], [0], [0], [1], [0, 0, 1, 1], [], []>} : vector<32x32xf32>, vector<32x8xf32>, vector<32x8xf32> -> vector<32x8xf32>
    %c2_68 = arith.constant 2 : index
    %c0_69 = arith.constant 0 : index
    %c0_70 = arith.constant 0 : index
    %85 = vector.load %arg7[%c2_68, %c0_69, %c0_70] : memref<4x1x8xf32, #tpu.memory_space<vmem>>, vector<1x1x8xf32>
    %86 = vector.shape_cast %85 : vector<1x1x8xf32> to vector<1x8xf32>
    %87 = vector.broadcast %86 : vector<1x8xf32> to vector<32x8xf32>
    %88 = arith.addf %84, %87 : vector<32x8xf32>
    %c2_71 = arith.constant 2 : index
    %c0_72 = arith.constant 0 : index
    %c0_73 = arith.constant 0 : index
    %89 = vector.load %arg5[%c2_71, %c0_72, %c0_73] : memref<4x32x8xf32, #tpu.memory_space<vmem>>, vector<1x32x8xf32>
    %90 = vector.shape_cast %89 : vector<1x32x8xf32> to vector<32x8xf32>
    %cst_74 = arith.constant dense<0.000000e+00> : vector<32x8xf32>
    %91 = tpu.matmul %5, %90, %cst_74 {dimension_numbers = #tpu.dot_dimension_numbers<[1], [0], [0], [1], [0, 0, 1, 1], [], []>} : vector<32x32xf32>, vector<32x8xf32>, vector<32x8xf32> -> vector<32x8xf32>
    %c2_75 = arith.constant 2 : index
    %c0_76 = arith.constant 0 : index
    %c0_77 = arith.constant 0 : index
    %92 = vector.load %arg8[%c2_75, %c0_76, %c0_77] : memref<4x1x8xf32, #tpu.memory_space<vmem>>, vector<1x1x8xf32>
    %93 = vector.shape_cast %92 : vector<1x1x8xf32> to vector<1x8xf32>
    %94 = vector.broadcast %93 : vector<1x8xf32> to vector<32x8xf32>
    %95 = arith.addf %91, %94 : vector<32x8xf32>
    %c2_78 = arith.constant 2 : index
    %c0_79 = arith.constant 0 : index
    %c0_80 = arith.constant 0 : index
    %96 = vector.load %arg6[%c2_78, %c0_79, %c0_80] : memref<4x32x8xf32, #tpu.memory_space<vmem>>, vector<1x32x8xf32>
    %97 = vector.shape_cast %96 : vector<1x32x8xf32> to vector<32x8xf32>
    %cst_81 = arith.constant dense<0.000000e+00> : vector<32x8xf32>
    %98 = tpu.matmul %5, %97, %cst_81 {dimension_numbers = #tpu.dot_dimension_numbers<[1], [0], [0], [1], [0, 0, 1, 1], [], []>} : vector<32x32xf32>, vector<32x8xf32>, vector<32x8xf32> -> vector<32x8xf32>
    %c2_82 = arith.constant 2 : index
    %c0_83 = arith.constant 0 : index
    %c0_84 = arith.constant 0 : index
    %99 = vector.load %arg9[%c2_82, %c0_83, %c0_84] : memref<4x1x8xf32, #tpu.memory_space<vmem>>, vector<1x1x8xf32>
    %100 = vector.shape_cast %99 : vector<1x1x8xf32> to vector<1x8xf32>
    %101 = vector.broadcast %100 : vector<1x8xf32> to vector<32x8xf32>
    %102 = arith.addf %98, %101 : vector<32x8xf32>
    %cst_85 = arith.constant dense<0.000000e+00> : vector<32x32xf32>
    %103 = tpu.matmul %88, %95, %cst_85 {dimension_numbers = #tpu.dot_dimension_numbers<[1], [1], [0], [0], [0, 0, 1, 0], [], []>} : vector<32x8xf32>, vector<32x8xf32>, vector<32x32xf32> -> vector<32x32xf32>
    %cst_86 = arith.constant dense<0xFF800000> : vector<32xf32>
    %104 = vector.multi_reduction <maximumf>, %103, %cst_86 [1] : vector<32x32xf32> to vector<32xf32>
    %105 = vector.shape_cast %104 : vector<32xf32> to vector<32x1xf32>
    %106 = vector.broadcast %105 : vector<32x1xf32> to vector<32x32xf32>
    %107 = arith.subf %103, %106 : vector<32x32xf32>
    %108 = math.exp %107 : vector<32x32xf32>
    %cst_87 = arith.constant dense<0.000000e+00> : vector<32xf32>
    %109 = vector.multi_reduction <add>, %108, %cst_87 [1] : vector<32x32xf32> to vector<32xf32>
    %110 = vector.shape_cast %109 : vector<32xf32> to vector<32x1xf32>
    %111 = vector.broadcast %110 : vector<32x1xf32> to vector<32x32xf32>
    %112 = arith.divf %108, %111 : vector<32x32xf32>
    %113 = arith.addf %76, %112 : vector<32x32xf32>
    %cst_88 = arith.constant dense<0.000000e+00> : vector<32x8xf32>
    %114 = tpu.matmul %112, %102, %cst_88 {dimension_numbers = #tpu.dot_dimension_numbers<[1], [0], [0], [1], [0, 0, 1, 1], [], []>} : vector<32x32xf32>, vector<32x8xf32>, vector<32x8xf32> -> vector<32x8xf32>
    %c2_89 = arith.constant 2 : index
    %c0_90 = arith.constant 0 : index
    %c0_91 = arith.constant 0 : index
    %115 = vector.load %arg10[%c2_89, %c0_90, %c0_91] : memref<4x8x32xf32, #tpu.memory_space<vmem>>, vector<1x8x32xf32>
    %116 = vector.shape_cast %115 : vector<1x8x32xf32> to vector<8x32xf32>
    %cst_92 = arith.constant dense<0.000000e+00> : vector<32x32xf32>
    %117 = tpu.matmul %114, %116, %cst_92 {dimension_numbers = #tpu.dot_dimension_numbers<[1], [0], [0], [1], [0, 0, 1, 1], [], []>} : vector<32x8xf32>, vector<8x32xf32>, vector<32x32xf32> -> vector<32x32xf32>
    %118 = arith.addf %81, %117 : vector<32x32xf32>
    %c3 = arith.constant 3 : index
    %c0_93 = arith.constant 0 : index
    %c0_94 = arith.constant 0 : index
    %119 = vector.load %arg4[%c3, %c0_93, %c0_94] : memref<4x32x8xf32, #tpu.memory_space<vmem>>, vector<1x32x8xf32>
    %120 = vector.shape_cast %119 : vector<1x32x8xf32> to vector<32x8xf32>
    %cst_95 = arith.constant dense<0.000000e+00> : vector<32x8xf32>
    %121 = tpu.matmul %5, %120, %cst_95 {dimension_numbers = #tpu.dot_dimension_numbers<[1], [0], [0], [1], [0, 0, 1, 1], [], []>} : vector<32x32xf32>, vector<32x8xf32>, vector<32x8xf32> -> vector<32x8xf32>
    %c3_96 = arith.constant 3 : index
    %c0_97 = arith.constant 0 : index
    %c0_98 = arith.constant 0 : index
    %122 = vector.load %arg7[%c3_96, %c0_97, %c0_98] : memref<4x1x8xf32, #tpu.memory_space<vmem>>, vector<1x1x8xf32>
    %123 = vector.shape_cast %122 : vector<1x1x8xf32> to vector<1x8xf32>
    %124 = vector.broadcast %123 : vector<1x8xf32> to vector<32x8xf32>
    %125 = arith.addf %121, %124 : vector<32x8xf32>
    %c3_99 = arith.constant 3 : index
    %c0_100 = arith.constant 0 : index
    %c0_101 = arith.constant 0 : index
    %126 = vector.load %arg5[%c3_99, %c0_100, %c0_101] : memref<4x32x8xf32, #tpu.memory_space<vmem>>, vector<1x32x8xf32>
    %127 = vector.shape_cast %126 : vector<1x32x8xf32> to vector<32x8xf32>
    %cst_102 = arith.constant dense<0.000000e+00> : vector<32x8xf32>
    %128 = tpu.matmul %5, %127, %cst_102 {dimension_numbers = #tpu.dot_dimension_numbers<[1], [0], [0], [1], [0, 0, 1, 1], [], []>} : vector<32x32xf32>, vector<32x8xf32>, vector<32x8xf32> -> vector<32x8xf32>
    %c3_103 = arith.constant 3 : index
    %c0_104 = arith.constant 0 : index
    %c0_105 = arith.constant 0 : index
    %129 = vector.load %arg8[%c3_103, %c0_104, %c0_105] : memref<4x1x8xf32, #tpu.memory_space<vmem>>, vector<1x1x8xf32>
    %130 = vector.shape_cast %129 : vector<1x1x8xf32> to vector<1x8xf32>
    %131 = vector.broadcast %130 : vector<1x8xf32> to vector<32x8xf32>
    %132 = arith.addf %128, %131 : vector<32x8xf32>
    %c3_106 = arith.constant 3 : index
    %c0_107 = arith.constant 0 : index
    %c0_108 = arith.constant 0 : index
    %133 = vector.load %arg6[%c3_106, %c0_107, %c0_108] : memref<4x32x8xf32, #tpu.memory_space<vmem>>, vector<1x32x8xf32>
    %134 = vector.shape_cast %133 : vector<1x32x8xf32> to vector<32x8xf32>
    %cst_109 = arith.constant dense<0.000000e+00> : vector<32x8xf32>
    %135 = tpu.matmul %5, %134, %cst_109 {dimension_numbers = #tpu.dot_dimension_numbers<[1], [0], [0], [1], [0, 0, 1, 1], [], []>} : vector<32x32xf32>, vector<32x8xf32>, vector<32x8xf32> -> vector<32x8xf32>
    %c3_110 = arith.constant 3 : index
    %c0_111 = arith.constant 0 : index
    %c0_112 = arith.constant 0 : index
    %136 = vector.load %arg9[%c3_110, %c0_111, %c0_112] : memref<4x1x8xf32, #tpu.memory_space<vmem>>, vector<1x1x8xf32>
    %137 = vector.shape_cast %136 : vector<1x1x8xf32> to vector<1x8xf32>
    %138 = vector.broadcast %137 : vector<1x8xf32> to vector<32x8xf32>
    %139 = arith.addf %135, %138 : vector<32x8xf32>
    %cst_113 = arith.constant dense<0.000000e+00> : vector<32x32xf32>
    %140 = tpu.matmul %125, %132, %cst_113 {dimension_numbers = #tpu.dot_dimension_numbers<[1], [1], [0], [0], [0, 0, 1, 0], [], []>} : vector<32x8xf32>, vector<32x8xf32>, vector<32x32xf32> -> vector<32x32xf32>
    %cst_114 = arith.constant dense<0xFF800000> : vector<32xf32>
    %141 = vector.multi_reduction <maximumf>, %140, %cst_114 [1] : vector<32x32xf32> to vector<32xf32>
    %142 = vector.shape_cast %141 : vector<32xf32> to vector<32x1xf32>
    %143 = vector.broadcast %142 : vector<32x1xf32> to vector<32x32xf32>
    %144 = arith.subf %140, %143 : vector<32x32xf32>
    %145 = math.exp %144 : vector<32x32xf32>
    %cst_115 = arith.constant dense<0.000000e+00> : vector<32xf32>
    %146 = vector.multi_reduction <add>, %145, %cst_115 [1] : vector<32x32xf32> to vector<32xf32>
    %147 = vector.shape_cast %146 : vector<32xf32> to vector<32x1xf32>
    %148 = vector.broadcast %147 : vector<32x1xf32> to vector<32x32xf32>
    %149 = arith.divf %145, %148 : vector<32x32xf32>
    %150 = arith.addf %113, %149 : vector<32x32xf32>
    %cst_116 = arith.constant dense<0.000000e+00> : vector<32x8xf32>
    %151 = tpu.matmul %149, %139, %cst_116 {dimension_numbers = #tpu.dot_dimension_numbers<[1], [0], [0], [1], [0, 0, 1, 1], [], []>} : vector<32x32xf32>, vector<32x8xf32>, vector<32x8xf32> -> vector<32x8xf32>
    %c3_117 = arith.constant 3 : index
    %c0_118 = arith.constant 0 : index
    %c0_119 = arith.constant 0 : index
    %152 = vector.load %arg10[%c3_117, %c0_118, %c0_119] : memref<4x8x32xf32, #tpu.memory_space<vmem>>, vector<1x8x32xf32>
    %153 = vector.shape_cast %152 : vector<1x8x32xf32> to vector<8x32xf32>
    %cst_120 = arith.constant dense<0.000000e+00> : vector<32x32xf32>
    %154 = tpu.matmul %151, %153, %cst_120 {dimension_numbers = #tpu.dot_dimension_numbers<[1], [0], [0], [1], [0, 0, 1, 1], [], []>} : vector<32x8xf32>, vector<8x32xf32>, vector<32x32xf32> -> vector<32x32xf32>
    %155 = arith.addf %118, %154 : vector<32x32xf32>
    %c0_121 = arith.constant 0 : index
    %c0_122 = arith.constant 0 : index
    %156 = vector.load %arg11[%c0_121, %c0_122] : memref<1x32xf32, #tpu.memory_space<vmem>>, vector<1x32xf32>
    %157 = vector.broadcast %156 : vector<1x32xf32> to vector<32x32xf32>
    %158 = arith.addf %155, %157 : vector<32x32xf32>
    %159 = arith.addf %5, %158 : vector<32x32xf32>
    %c0_123 = arith.constant 0 : index
    %c0_124 = arith.constant 0 : index
    %160 = vector.load %arg12[%c0_123, %c0_124] : memref<1x32xf32, #tpu.memory_space<vmem>>, vector<1x32xf32>
    %c0_125 = arith.constant 0 : index
    %c0_126 = arith.constant 0 : index
    %161 = vector.load %arg13[%c0_125, %c0_126] : memref<1x32xf32, #tpu.memory_space<vmem>>, vector<1x32xf32>
    %cst_127 = arith.constant dense<0.000000e+00> : vector<32xf32>
    %162 = vector.multi_reduction <add>, %159, %cst_127 [1] : vector<32x32xf32> to vector<32xf32>
    %163 = vector.shape_cast %162 : vector<32xf32> to vector<32x1xf32>
    %cst_128 = arith.constant 3.200000e+01 : f32
    %164 = vector.broadcast %cst_128 : f32 to vector<32x1xf32>
    %165 = arith.divf %163, %164 : vector<32x1xf32>
    %166 = vector.broadcast %165 : vector<32x1xf32> to vector<32x32xf32>
    %167 = arith.subf %159, %166 : vector<32x32xf32>
    %168 = arith.mulf %167, %167 : vector<32x32xf32>
    %cst_129 = arith.constant dense<0.000000e+00> : vector<32xf32>
    %169 = vector.multi_reduction <add>, %168, %cst_129 [1] : vector<32x32xf32> to vector<32xf32>
    %170 = vector.shape_cast %169 : vector<32xf32> to vector<32x1xf32>
    %cst_130 = arith.constant 3.200000e+01 : f32
    %171 = vector.broadcast %cst_130 : f32 to vector<32x1xf32>
    %172 = arith.divf %170, %171 : vector<32x1xf32>
    %173 = vector.broadcast %165 : vector<32x1xf32> to vector<32x32xf32>
    %174 = arith.subf %159, %173 : vector<32x32xf32>
    %cst_131 = arith.constant 9.99999974E-6 : f32
    %175 = vector.broadcast %cst_131 : f32 to vector<32x1xf32>
    %176 = arith.addf %172, %175 : vector<32x1xf32>
    %177 = math.rsqrt %176 : vector<32x1xf32>
    %178 = vector.broadcast %177 : vector<32x1xf32> to vector<32x32xf32>
    %179 = arith.mulf %174, %178 : vector<32x32xf32>
    %180 = vector.broadcast %160 : vector<1x32xf32> to vector<32x32xf32>
    %181 = arith.mulf %179, %180 : vector<32x32xf32>
    %182 = vector.broadcast %161 : vector<1x32xf32> to vector<32x32xf32>
    %183 = arith.addf %181, %182 : vector<32x32xf32>
    %c0_132 = arith.constant 0 : index
    %c0_133 = arith.constant 0 : index
    %184 = vector.load %arg14[%c0_132, %c0_133] : memref<32x32xf32, #tpu.memory_space<vmem>>, vector<32x32xf32>
    %cst_134 = arith.constant dense<0.000000e+00> : vector<32x32xf32>
    %185 = tpu.matmul %183, %184, %cst_134 {dimension_numbers = #tpu.dot_dimension_numbers<[1], [0], [0], [1], [0, 0, 1, 1], [], []>} : vector<32x32xf32>, vector<32x32xf32>, vector<32x32xf32> -> vector<32x32xf32>
    %c0_135 = arith.constant 0 : index
    %c0_136 = arith.constant 0 : index
    %186 = vector.load %arg15[%c0_135, %c0_136] : memref<1x32xf32, #tpu.memory_space<vmem>>, vector<1x32xf32>
    %187 = vector.broadcast %186 : vector<1x32xf32> to vector<32x32xf32>
    %188 = arith.addf %185, %187 : vector<32x32xf32>
    %189 = arith.addf %183, %188 : vector<32x32xf32>
    %c0_137 = arith.constant 0 : index
    %c0_138 = arith.constant 0 : index
    %190 = vector.load %arg16[%c0_137, %c0_138] : memref<1x32xf32, #tpu.memory_space<vmem>>, vector<1x32xf32>
    %c0_139 = arith.constant 0 : index
    %c0_140 = arith.constant 0 : index
    %191 = vector.load %arg17[%c0_139, %c0_140] : memref<1x32xf32, #tpu.memory_space<vmem>>, vector<1x32xf32>
    %cst_141 = arith.constant dense<0.000000e+00> : vector<32xf32>
    %192 = vector.multi_reduction <add>, %189, %cst_141 [1] : vector<32x32xf32> to vector<32xf32>
    %193 = vector.shape_cast %192 : vector<32xf32> to vector<32x1xf32>
    %cst_142 = arith.constant 3.200000e+01 : f32
    %194 = vector.broadcast %cst_142 : f32 to vector<32x1xf32>
    %195 = arith.divf %193, %194 : vector<32x1xf32>
    %196 = vector.broadcast %195 : vector<32x1xf32> to vector<32x32xf32>
    %197 = arith.subf %189, %196 : vector<32x32xf32>
    %198 = arith.mulf %197, %197 : vector<32x32xf32>
    %cst_143 = arith.constant dense<0.000000e+00> : vector<32xf32>
    %199 = vector.multi_reduction <add>, %198, %cst_143 [1] : vector<32x32xf32> to vector<32xf32>
    %200 = vector.shape_cast %199 : vector<32xf32> to vector<32x1xf32>
    %cst_144 = arith.constant 3.200000e+01 : f32
    %201 = vector.broadcast %cst_144 : f32 to vector<32x1xf32>
    %202 = arith.divf %200, %201 : vector<32x1xf32>
    %203 = vector.broadcast %195 : vector<32x1xf32> to vector<32x32xf32>
    %204 = arith.subf %189, %203 : vector<32x32xf32>
    %cst_145 = arith.constant 9.99999974E-6 : f32
    %205 = vector.broadcast %cst_145 : f32 to vector<32x1xf32>
    %206 = arith.addf %202, %205 : vector<32x1xf32>
    %207 = math.rsqrt %206 : vector<32x1xf32>
    %208 = vector.broadcast %207 : vector<32x1xf32> to vector<32x32xf32>
    %209 = arith.mulf %204, %208 : vector<32x32xf32>
    %210 = vector.broadcast %190 : vector<1x32xf32> to vector<32x32xf32>
    %211 = arith.mulf %209, %210 : vector<32x32xf32>
    %212 = vector.broadcast %191 : vector<1x32xf32> to vector<32x32xf32>
    %213 = arith.addf %211, %212 : vector<32x32xf32>
    %cst_146 = arith.constant 2.500000e-01 : f32
    %214 = vector.broadcast %cst_146 : f32 to vector<32x32xf32>
    %215 = arith.mulf %150, %214 : vector<32x32xf32>
    %c0_147 = arith.constant 0 : index
    %c0_148 = arith.constant 0 : index
    %c0_149 = arith.constant 0 : index
    %c0_150 = arith.constant 0 : index
    %216 = vector.load %arg19[%c0_147, %c0_148, %c0_149, %c0_150] : memref<1x1x32x32xf32, #tpu.memory_space<vmem>>, vector<1x1x32x32xf32>
    %217 = vector.shape_cast %216 : vector<1x1x32x32xf32> to vector<32x32xf32>
    %218 = vector.shape_cast %215 : vector<32x32xf32> to vector<1x1x32x32xf32>
    tpu.vector_store %arg19[%c0_147, %c0_148, %c0_149, %c0_150], %218 {strides = array<i32>} : memref<1x1x32x32xf32, #tpu.memory_space<vmem>>, vector<1x1x32x32xf32>,
    %c0_151 = arith.constant 0 : index
    %c0_152 = arith.constant 0 : index
    %c0_153 = arith.constant 0 : index
    %219 = vector.load %arg18[%c0_151, %c0_152, %c0_153] : memref<1x32x32xf32, #tpu.memory_space<vmem>>, vector<1x32x32xf32>
    %220 = vector.shape_cast %219 : vector<1x32x32xf32> to vector<32x32xf32>
    %221 = vector.shape_cast %213 : vector<32x32xf32> to vector<1x32x32xf32>
    tpu.vector_store %arg18[%c0_151, %c0_152, %c0_153], %221 {strides = array<i32>} : memref<1x32x32xf32, #tpu.memory_space<vmem>>, vector<1x32x32xf32>,
    return
  }
  func.func @transform_0(%arg0: i32) -> (i32, i32, i32) {
    %c0_i32 = arith.constant 0 : i32
    %c0_i32_0 = arith.constant 0 : i32
    %c0_i32_1 = arith.constant 0 : i32
    return %arg0, %c0_i32, %c0_i32_0 : i32, i32, i32
  }
  func.func @transform_1(%arg0: i32) -> (i32, i32) {
    %c0_i32 = arith.constant 0 : i32
    %c0_i32_0 = arith.constant 0 : i32
    %c0_i32_1 = arith.constant 0 : i32
    return %c0_i32, %c0_i32_0 : i32, i32
  }
  func.func @transform_2(%arg0: i32) -> (i32, i32) {
    %c0_i32 = arith.constant 0 : i32
    %c0_i32_0 = arith.constant 0 : i32
    %c0_i32_1 = arith.constant 0 : i32
    return %c0_i32, %c0_i32_0 : i32, i32
  }
  func.func @transform_3(%arg0: i32) -> (i32, i32, i32) {
    %c0_i32 = arith.constant 0 : i32
    %c0_i32_0 = arith.constant 0 : i32
    %c0_i32_1 = arith.constant 0 : i32
    %c0_i32_2 = arith.constant 0 : i32
    return %c0_i32, %c0_i32_0, %c0_i32_1 : i32, i32, i32
  }
  func.func @transform_4(%arg0: i32) -> (i32, i32, i32) {
    %c0_i32 = arith.constant 0 : i32
    %c0_i32_0 = arith.constant 0 : i32
    %c0_i32_1 = arith.constant 0 : i32
    %c0_i32_2 = arith.constant 0 : i32
    return %c0_i32, %c0_i32_0, %c0_i32_1 : i32, i32, i32
  }
  func.func @transform_5(%arg0: i32) -> (i32, i32, i32) {
    %c0_i32 = arith.constant 0 : i32
    %c0_i32_0 = arith.constant 0 : i32
    %c0_i32_1 = arith.constant 0 : i32
    %c0_i32_2 = arith.constant 0 : i32
    return %c0_i32, %c0_i32_0, %c0_i32_1 : i32, i32, i32
  }
  func.func @transform_6(%arg0: i32) -> (i32, i32, i32) {
    %c0_i32 = arith.constant 0 : i32
    %c0_i32_0 = arith.constant 0 : i32
    %c0_i32_1 = arith.constant 0 : i32
    %c0_i32_2 = arith.constant 0 : i32
    return %c0_i32, %c0_i32_0, %c0_i32_1 : i32, i32, i32
  }
  func.func @transform_7(%arg0: i32) -> (i32, i32, i32) {
    %c0_i32 = arith.constant 0 : i32
    %c0_i32_0 = arith.constant 0 : i32
    %c0_i32_1 = arith.constant 0 : i32
    %c0_i32_2 = arith.constant 0 : i32
    return %c0_i32, %c0_i32_0, %c0_i32_1 : i32, i32, i32
  }
  func.func @transform_8(%arg0: i32) -> (i32, i32, i32) {
    %c0_i32 = arith.constant 0 : i32
    %c0_i32_0 = arith.constant 0 : i32
    %c0_i32_1 = arith.constant 0 : i32
    %c0_i32_2 = arith.constant 0 : i32
    return %c0_i32, %c0_i32_0, %c0_i32_1 : i32, i32, i32
  }
  func.func @transform_9(%arg0: i32) -> (i32, i32, i32) {
    %c0_i32 = arith.constant 0 : i32
    %c0_i32_0 = arith.constant 0 : i32
    %c0_i32_1 = arith.constant 0 : i32
    %c0_i32_2 = arith.constant 0 : i32
    return %c0_i32, %c0_i32_0, %c0_i32_1 : i32, i32, i32
  }
  func.func @transform_10(%arg0: i32) -> (i32, i32) {
    %c0_i32 = arith.constant 0 : i32
    %c0_i32_0 = arith.constant 0 : i32
    %c0_i32_1 = arith.constant 0 : i32
    return %c0_i32, %c0_i32_0 : i32, i32
  }
  func.func @transform_11(%arg0: i32) -> (i32, i32) {
    %c0_i32 = arith.constant 0 : i32
    %c0_i32_0 = arith.constant 0 : i32
    %c0_i32_1 = arith.constant 0 : i32
    return %c0_i32, %c0_i32_0 : i32, i32
  }
  func.func @transform_12(%arg0: i32) -> (i32, i32) {
    %c0_i32 = arith.constant 0 : i32
    %c0_i32_0 = arith.constant 0 : i32
    %c0_i32_1 = arith.constant 0 : i32
    return %c0_i32, %c0_i32_0 : i32, i32
  }
  func.func @transform_13(%arg0: i32) -> (i32, i32) {
    %c0_i32 = arith.constant 0 : i32
    %c0_i32_0 = arith.constant 0 : i32
    %c0_i32_1 = arith.constant 0 : i32
    return %c0_i32, %c0_i32_0 : i32, i32
  }
  func.func @transform_14(%arg0: i32) -> (i32, i32) {
    %c0_i32 = arith.constant 0 : i32
    %c0_i32_0 = arith.constant 0 : i32
    %c0_i32_1 = arith.constant 0 : i32
    return %c0_i32, %c0_i32_0 : i32, i32
  }
  func.func @transform_15(%arg0: i32) -> (i32, i32) {
    %c0_i32 = arith.constant 0 : i32
    %c0_i32_0 = arith.constant 0 : i32
    %c0_i32_1 = arith.constant 0 : i32
    return %c0_i32, %c0_i32_0 : i32, i32
  }
  func.func @transform_16(%arg0: i32) -> (i32, i32) {
    %c0_i32 = arith.constant 0 : i32
    %c0_i32_0 = arith.constant 0 : i32
    %c0_i32_1 = arith.constant 0 : i32
    return %c0_i32, %c0_i32_0 : i32, i32
  }
  func.func @transform_17(%arg0: i32) -> (i32, i32, i32) {
    %c0_i32 = arith.constant 0 : i32
    %c0_i32_0 = arith.constant 0 : i32
    %c0_i32_1 = arith.constant 0 : i32
    return %arg0, %c0_i32, %c0_i32_0 : i32, i32, i32
  }
  func.func @transform_18(%arg0: i32) -> (i32, i32, i32, i32) {
    %c0_i32 = arith.constant 0 : i32
    %c0_i32_0 = arith.constant 0 : i32
    %c0_i32_1 = arith.constant 0 : i32
    %c0_i32_2 = arith.constant 0 : i32
    return %arg0, %c0_i32, %c0_i32_0, %c0_i32_1 : i32, i32, i32, i32
  }
}

module attributes {stable_mosaic.version = 11 : i64} {
  func.func @_branch_kernel(%arg0: i32, %arg1: memref<1x8x4xf32, #tpu.memory_space<vmem>>, %arg2: memref<4x32xf32, #tpu.memory_space<vmem>>, %arg3: memref<8x32xf32, #tpu.memory_space<vmem>>, %arg4: memref<4x32x8xf32, #tpu.memory_space<vmem>>, %arg5: memref<4x32x8xf32, #tpu.memory_space<vmem>>, %arg6: memref<4x32x8xf32, #tpu.memory_space<vmem>>, %arg7: memref<4x1x8xf32, #tpu.memory_space<vmem>>, %arg8: memref<4x1x8xf32, #tpu.memory_space<vmem>>, %arg9: memref<4x1x8xf32, #tpu.memory_space<vmem>>, %arg10: memref<4x8x32xf32, #tpu.memory_space<vmem>>, %arg11: memref<1x32xf32, #tpu.memory_space<vmem>>, %arg12: memref<1x32xf32, #tpu.memory_space<vmem>>, %arg13: memref<1x32xf32, #tpu.memory_space<vmem>>, %arg14: memref<32x32xf32, #tpu.memory_space<vmem>>, %arg15: memref<1x32xf32, #tpu.memory_space<vmem>>, %arg16: memref<1x32xf32, #tpu.memory_space<vmem>>, %arg17: memref<1x32xf32, #tpu.memory_space<vmem>>, %arg18: memref<1x8x32xf32, #tpu.memory_space<vmem>>, %arg19: memref<1x1x8x8xf32, #tpu.memory_space<vmem>>) attributes {dimension_semantics = [#tpu.dimension_semantics<parallel>], iteration_bounds = array<i64: 2>, scalar_prefetch = 0 : i64, scratch_operands = 0 : i64, tpu.core_type = #tpu.core_type<tc>, window_params = [{transform_indices = @transform_0, window_bounds = array<i64: 1, 8, 4>}, {pipeline_mode = #tpu.pipeline_mode<synchronous>, transform_indices = @transform_1, window_bounds = array<i64: 4, 32>}, {pipeline_mode = #tpu.pipeline_mode<synchronous>, transform_indices = @transform_2, window_bounds = array<i64: 8, 32>}, {pipeline_mode = #tpu.pipeline_mode<synchronous>, transform_indices = @transform_3, window_bounds = array<i64: 4, 32, 8>}, {pipeline_mode = #tpu.pipeline_mode<synchronous>, transform_indices = @transform_4, window_bounds = array<i64: 4, 32, 8>}, {pipeline_mode = #tpu.pipeline_mode<synchronous>, transform_indices = @transform_5, window_bounds = array<i64: 4, 32, 8>}, {pipeline_mode = #tpu.pipeline_mode<synchronous>, transform_indices = @transform_6, window_bounds = array<i64: 4, 1, 8>}, {pipeline_mode = #tpu.pipeline_mode<synchronous>, transform_indices = @transform_7, window_bounds = array<i64: 4, 1, 8>}, {pipeline_mode = #tpu.pipeline_mode<synchronous>, transform_indices = @transform_8, window_bounds = array<i64: 4, 1, 8>}, {pipeline_mode = #tpu.pipeline_mode<synchronous>, transform_indices = @transform_9, window_bounds = array<i64: 4, 8, 32>}, {pipeline_mode = #tpu.pipeline_mode<synchronous>, transform_indices = @transform_10, window_bounds = array<i64: 1, 32>}, {pipeline_mode = #tpu.pipeline_mode<synchronous>, transform_indices = @transform_11, window_bounds = array<i64: 1, 32>}, {pipeline_mode = #tpu.pipeline_mode<synchronous>, transform_indices = @transform_12, window_bounds = array<i64: 1, 32>}, {pipeline_mode = #tpu.pipeline_mode<synchronous>, transform_indices = @transform_13, window_bounds = array<i64: 32, 32>}, {pipeline_mode = #tpu.pipeline_mode<synchronous>, transform_indices = @transform_14, window_bounds = array<i64: 1, 32>}, {pipeline_mode = #tpu.pipeline_mode<synchronous>, transform_indices = @transform_15, window_bounds = array<i64: 1, 32>}, {pipeline_mode = #tpu.pipeline_mode<synchronous>, transform_indices = @transform_16, window_bounds = array<i64: 1, 32>}, {transform_indices = @transform_17, window_bounds = array<i64: 1, 8, 32>}, {transform_indices = @transform_18, window_bounds = array<i64: 1, 1, 8, 8>}]} {
    %c0 = arith.constant 0 : index
    %c0_0 = arith.constant 0 : index
    %c0_1 = arith.constant 0 : index
    %0 = vector.load %arg1[%c0, %c0_0, %c0_1] : memref<1x8x4xf32, #tpu.memory_space<vmem>>, vector<1x8x4xf32>
    %1 = vector.shape_cast %0 : vector<1x8x4xf32> to vector<8x4xf32>
    %c0_2 = arith.constant 0 : index
    %c0_3 = arith.constant 0 : index
    %2 = vector.load %arg2[%c0_2, %c0_3] : memref<4x32xf32, #tpu.memory_space<vmem>>, vector<4x32xf32>
    %cst = arith.constant dense<0.000000e+00> : vector<8x32xf32>
    %3 = tpu.matmul %1, %2, %cst {dimension_numbers = #tpu.dot_dimension_numbers<[1], [0], [0], [1], [0, 0, 1, 1], [], []>} : vector<8x4xf32>, vector<4x32xf32>, vector<8x32xf32> -> vector<8x32xf32>
    %c0_4 = arith.constant 0 : index
    %c0_5 = arith.constant 0 : index
    %4 = vector.load %arg3[%c0_4, %c0_5] : memref<8x32xf32, #tpu.memory_space<vmem>>, vector<8x32xf32>
    %5 = arith.addf %3, %4 : vector<8x32xf32>
    %cst_6 = arith.constant 0.000000e+00 : f32
    %6 = vector.broadcast %cst_6 : f32 to vector<8x8xf32>
    %cst_7 = arith.constant 0.000000e+00 : f32
    %7 = vector.broadcast %cst_7 : f32 to vector<8x32xf32>
    %c0_8 = arith.constant 0 : index
    %c0_9 = arith.constant 0 : index
    %c0_10 = arith.constant 0 : index
    %8 = vector.load %arg4[%c0_8, %c0_9, %c0_10] : memref<4x32x8xf32, #tpu.memory_space<vmem>>, vector<1x32x8xf32>
    %9 = vector.shape_cast %8 : vector<1x32x8xf32> to vector<32x8xf32>
    %cst_11 = arith.constant dense<0.000000e+00> : vector<8x8xf32>
    %10 = tpu.matmul %5, %9, %cst_11 {dimension_numbers = #tpu.dot_dimension_numbers<[1], [0], [0], [1], [0, 0, 1, 1], [], []>} : vector<8x32xf32>, vector<32x8xf32>, vector<8x8xf32> -> vector<8x8xf32>
    %c0_12 = arith.constant 0 : index
    %c0_13 = arith.constant 0 : index
    %c0_14 = arith.constant 0 : index
    %11 = vector.load %arg7[%c0_12, %c0_13, %c0_14] : memref<4x1x8xf32, #tpu.memory_space<vmem>>, vector<1x1x8xf32>
    %12 = vector.shape_cast %11 : vector<1x1x8xf32> to vector<1x8xf32>
    %13 = vector.broadcast %12 : vector<1x8xf32> to vector<8x8xf32>
    %14 = arith.addf %10, %13 : vector<8x8xf32>
    %c0_15 = arith.constant 0 : index
    %c0_16 = arith.constant 0 : index
    %c0_17 = arith.constant 0 : index
    %15 = vector.load %arg5[%c0_15, %c0_16, %c0_17] : memref<4x32x8xf32, #tpu.memory_space<vmem>>, vector<1x32x8xf32>
    %16 = vector.shape_cast %15 : vector<1x32x8xf32> to vector<32x8xf32>
    %cst_18 = arith.constant dense<0.000000e+00> : vector<8x8xf32>
    %17 = tpu.matmul %5, %16, %cst_18 {dimension_numbers = #tpu.dot_dimension_numbers<[1], [0], [0], [1], [0, 0, 1, 1], [], []>} : vector<8x32xf32>, vector<32x8xf32>, vector<8x8xf32> -> vector<8x8xf32>
    %c0_19 = arith.constant 0 : index
    %c0_20 = arith.constant 0 : index
    %c0_21 = arith.constant 0 : index
    %18 = vector.load %arg8[%c0_19, %c0_20, %c0_21] : memref<4x1x8xf32, #tpu.memory_space<vmem>>, vector<1x1x8xf32>
    %19 = vector.shape_cast %18 : vector<1x1x8xf32> to vector<1x8xf32>
    %20 = vector.broadcast %19 : vector<1x8xf32> to vector<8x8xf32>
    %21 = arith.addf %17, %20 : vector<8x8xf32>
    %c0_22 = arith.constant 0 : index
    %c0_23 = arith.constant 0 : index
    %c0_24 = arith.constant 0 : index
    %22 = vector.load %arg6[%c0_22, %c0_23, %c0_24] : memref<4x32x8xf32, #tpu.memory_space<vmem>>, vector<1x32x8xf32>
    %23 = vector.shape_cast %22 : vector<1x32x8xf32> to vector<32x8xf32>
    %cst_25 = arith.constant dense<0.000000e+00> : vector<8x8xf32>
    %24 = tpu.matmul %5, %23, %cst_25 {dimension_numbers = #tpu.dot_dimension_numbers<[1], [0], [0], [1], [0, 0, 1, 1], [], []>} : vector<8x32xf32>, vector<32x8xf32>, vector<8x8xf32> -> vector<8x8xf32>
    %c0_26 = arith.constant 0 : index
    %c0_27 = arith.constant 0 : index
    %c0_28 = arith.constant 0 : index
    %25 = vector.load %arg9[%c0_26, %c0_27, %c0_28] : memref<4x1x8xf32, #tpu.memory_space<vmem>>, vector<1x1x8xf32>
    %26 = vector.shape_cast %25 : vector<1x1x8xf32> to vector<1x8xf32>
    %27 = vector.broadcast %26 : vector<1x8xf32> to vector<8x8xf32>
    %28 = arith.addf %24, %27 : vector<8x8xf32>
    %cst_29 = arith.constant dense<0.000000e+00> : vector<8x8xf32>
    %29 = tpu.matmul %14, %21, %cst_29 {dimension_numbers = #tpu.dot_dimension_numbers<[1], [1], [0], [0], [0, 0, 1, 0], [], []>} : vector<8x8xf32>, vector<8x8xf32>, vector<8x8xf32> -> vector<8x8xf32>
    %cst_30 = arith.constant dense<0xFF800000> : vector<8xf32>
    %30 = vector.multi_reduction <maximumf>, %29, %cst_30 [1] : vector<8x8xf32> to vector<8xf32>
    %31 = vector.shape_cast %30 : vector<8xf32> to vector<8x1xf32>
    %32 = vector.broadcast %31 : vector<8x1xf32> to vector<8x8xf32>
    %33 = arith.subf %29, %32 : vector<8x8xf32>
    %34 = math.exp %33 : vector<8x8xf32>
    %cst_31 = arith.constant dense<0.000000e+00> : vector<8xf32>
    %35 = vector.multi_reduction <add>, %34, %cst_31 [1] : vector<8x8xf32> to vector<8xf32>
    %36 = vector.shape_cast %35 : vector<8xf32> to vector<8x1xf32>
    %37 = vector.broadcast %36 : vector<8x1xf32> to vector<8x8xf32>
    %38 = arith.divf %34, %37 : vector<8x8xf32>
    %39 = arith.addf %6, %38 : vector<8x8xf32>
    %cst_32 = arith.constant dense<0.000000e+00> : vector<8x8xf32>
    %40 = tpu.matmul %38, %28, %cst_32 {dimension_numbers = #tpu.dot_dimension_numbers<[1], [0], [0], [1], [0, 0, 1, 1], [], []>} : vector<8x8xf32>, vector<8x8xf32>, vector<8x8xf32> -> vector<8x8xf32>
    %c0_33 = arith.constant 0 : index
    %c0_34 = arith.constant 0 : index
    %c0_35 = arith.constant 0 : index
    %41 = vector.load %arg10[%c0_33, %c0_34, %c0_35] : memref<4x8x32xf32, #tpu.memory_space<vmem>>, vector<1x8x32xf32>
    %42 = vector.shape_cast %41 : vector<1x8x32xf32> to vector<8x32xf32>
    %cst_36 = arith.constant dense<0.000000e+00> : vector<8x32xf32>
    %43 = tpu.matmul %40, %42, %cst_36 {dimension_numbers = #tpu.dot_dimension_numbers<[1], [0], [0], [1], [0, 0, 1, 1], [], []>} : vector<8x8xf32>, vector<8x32xf32>, vector<8x32xf32> -> vector<8x32xf32>
    %44 = arith.addf %7, %43 : vector<8x32xf32>
    %c1 = arith.constant 1 : index
    %c0_37 = arith.constant 0 : index
    %c0_38 = arith.constant 0 : index
    %45 = vector.load %arg4[%c1, %c0_37, %c0_38] : memref<4x32x8xf32, #tpu.memory_space<vmem>>, vector<1x32x8xf32>
    %46 = vector.shape_cast %45 : vector<1x32x8xf32> to vector<32x8xf32>
    %cst_39 = arith.constant dense<0.000000e+00> : vector<8x8xf32>
    %47 = tpu.matmul %5, %46, %cst_39 {dimension_numbers = #tpu.dot_dimension_numbers<[1], [0], [0], [1], [0, 0, 1, 1], [], []>} : vector<8x32xf32>, vector<32x8xf32>, vector<8x8xf32> -> vector<8x8xf32>
    %c1_40 = arith.constant 1 : index
    %c0_41 = arith.constant 0 : index
    %c0_42 = arith.constant 0 : index
    %48 = vector.load %arg7[%c1_40, %c0_41, %c0_42] : memref<4x1x8xf32, #tpu.memory_space<vmem>>, vector<1x1x8xf32>
    %49 = vector.shape_cast %48 : vector<1x1x8xf32> to vector<1x8xf32>
    %50 = vector.broadcast %49 : vector<1x8xf32> to vector<8x8xf32>
    %51 = arith.addf %47, %50 : vector<8x8xf32>
    %c1_43 = arith.constant 1 : index
    %c0_44 = arith.constant 0 : index
    %c0_45 = arith.constant 0 : index
    %52 = vector.load %arg5[%c1_43, %c0_44, %c0_45] : memref<4x32x8xf32, #tpu.memory_space<vmem>>, vector<1x32x8xf32>
    %53 = vector.shape_cast %52 : vector<1x32x8xf32> to vector<32x8xf32>
    %cst_46 = arith.constant dense<0.000000e+00> : vector<8x8xf32>
    %54 = tpu.matmul %5, %53, %cst_46 {dimension_numbers = #tpu.dot_dimension_numbers<[1], [0], [0], [1], [0, 0, 1, 1], [], []>} : vector<8x32xf32>, vector<32x8xf32>, vector<8x8xf32> -> vector<8x8xf32>
    %c1_47 = arith.constant 1 : index
    %c0_48 = arith.constant 0 : index
    %c0_49 = arith.constant 0 : index
    %55 = vector.load %arg8[%c1_47, %c0_48, %c0_49] : memref<4x1x8xf32, #tpu.memory_space<vmem>>, vector<1x1x8xf32>
    %56 = vector.shape_cast %55 : vector<1x1x8xf32> to vector<1x8xf32>
    %57 = vector.broadcast %56 : vector<1x8xf32> to vector<8x8xf32>
    %58 = arith.addf %54, %57 : vector<8x8xf32>
    %c1_50 = arith.constant 1 : index
    %c0_51 = arith.constant 0 : index
    %c0_52 = arith.constant 0 : index
    %59 = vector.load %arg6[%c1_50, %c0_51, %c0_52] : memref<4x32x8xf32, #tpu.memory_space<vmem>>, vector<1x32x8xf32>
    %60 = vector.shape_cast %59 : vector<1x32x8xf32> to vector<32x8xf32>
    %cst_53 = arith.constant dense<0.000000e+00> : vector<8x8xf32>
    %61 = tpu.matmul %5, %60, %cst_53 {dimension_numbers = #tpu.dot_dimension_numbers<[1], [0], [0], [1], [0, 0, 1, 1], [], []>} : vector<8x32xf32>, vector<32x8xf32>, vector<8x8xf32> -> vector<8x8xf32>
    %c1_54 = arith.constant 1 : index
    %c0_55 = arith.constant 0 : index
    %c0_56 = arith.constant 0 : index
    %62 = vector.load %arg9[%c1_54, %c0_55, %c0_56] : memref<4x1x8xf32, #tpu.memory_space<vmem>>, vector<1x1x8xf32>
    %63 = vector.shape_cast %62 : vector<1x1x8xf32> to vector<1x8xf32>
    %64 = vector.broadcast %63 : vector<1x8xf32> to vector<8x8xf32>
    %65 = arith.addf %61, %64 : vector<8x8xf32>
    %cst_57 = arith.constant dense<0.000000e+00> : vector<8x8xf32>
    %66 = tpu.matmul %51, %58, %cst_57 {dimension_numbers = #tpu.dot_dimension_numbers<[1], [1], [0], [0], [0, 0, 1, 0], [], []>} : vector<8x8xf32>, vector<8x8xf32>, vector<8x8xf32> -> vector<8x8xf32>
    %cst_58 = arith.constant dense<0xFF800000> : vector<8xf32>
    %67 = vector.multi_reduction <maximumf>, %66, %cst_58 [1] : vector<8x8xf32> to vector<8xf32>
    %68 = vector.shape_cast %67 : vector<8xf32> to vector<8x1xf32>
    %69 = vector.broadcast %68 : vector<8x1xf32> to vector<8x8xf32>
    %70 = arith.subf %66, %69 : vector<8x8xf32>
    %71 = math.exp %70 : vector<8x8xf32>
    %cst_59 = arith.constant dense<0.000000e+00> : vector<8xf32>
    %72 = vector.multi_reduction <add>, %71, %cst_59 [1] : vector<8x8xf32> to vector<8xf32>
    %73 = vector.shape_cast %72 : vector<8xf32> to vector<8x1xf32>
    %74 = vector.broadcast %73 : vector<8x1xf32> to vector<8x8xf32>
    %75 = arith.divf %71, %74 : vector<8x8xf32>
    %76 = arith.addf %39, %75 : vector<8x8xf32>
    %cst_60 = arith.constant dense<0.000000e+00> : vector<8x8xf32>
    %77 = tpu.matmul %75, %65, %cst_60 {dimension_numbers = #tpu.dot_dimension_numbers<[1], [0], [0], [1], [0, 0, 1, 1], [], []>} : vector<8x8xf32>, vector<8x8xf32>, vector<8x8xf32> -> vector<8x8xf32>
    %c1_61 = arith.constant 1 : index
    %c0_62 = arith.constant 0 : index
    %c0_63 = arith.constant 0 : index
    %78 = vector.load %arg10[%c1_61, %c0_62, %c0_63] : memref<4x8x32xf32, #tpu.memory_space<vmem>>, vector<1x8x32xf32>
    %79 = vector.shape_cast %78 : vector<1x8x32xf32> to vector<8x32xf32>
    %cst_64 = arith.constant dense<0.000000e+00> : vector<8x32xf32>
    %80 = tpu.matmul %77, %79, %cst_64 {dimension_numbers = #tpu.dot_dimension_numbers<[1], [0], [0], [1], [0, 0, 1, 1], [], []>} : vector<8x8xf32>, vector<8x32xf32>, vector<8x32xf32> -> vector<8x32xf32>
    %81 = arith.addf %44, %80 : vector<8x32xf32>
    %c2 = arith.constant 2 : index
    %c0_65 = arith.constant 0 : index
    %c0_66 = arith.constant 0 : index
    %82 = vector.load %arg4[%c2, %c0_65, %c0_66] : memref<4x32x8xf32, #tpu.memory_space<vmem>>, vector<1x32x8xf32>
    %83 = vector.shape_cast %82 : vector<1x32x8xf32> to vector<32x8xf32>
    %cst_67 = arith.constant dense<0.000000e+00> : vector<8x8xf32>
    %84 = tpu.matmul %5, %83, %cst_67 {dimension_numbers = #tpu.dot_dimension_numbers<[1], [0], [0], [1], [0, 0, 1, 1], [], []>} : vector<8x32xf32>, vector<32x8xf32>, vector<8x8xf32> -> vector<8x8xf32>
    %c2_68 = arith.constant 2 : index
    %c0_69 = arith.constant 0 : index
    %c0_70 = arith.constant 0 : index
    %85 = vector.load %arg7[%c2_68, %c0_69, %c0_70] : memref<4x1x8xf32, #tpu.memory_space<vmem>>, vector<1x1x8xf32>
    %86 = vector.shape_cast %85 : vector<1x1x8xf32> to vector<1x8xf32>
    %87 = vector.broadcast %86 : vector<1x8xf32> to vector<8x8xf32>
    %88 = arith.addf %84, %87 : vector<8x8xf32>
    %c2_71 = arith.constant 2 : index
    %c0_72 = arith.constant 0 : index
    %c0_73 = arith.constant 0 : index
    %89 = vector.load %arg5[%c2_71, %c0_72, %c0_73] : memref<4x32x8xf32, #tpu.memory_space<vmem>>, vector<1x32x8xf32>
    %90 = vector.shape_cast %89 : vector<1x32x8xf32> to vector<32x8xf32>
    %cst_74 = arith.constant dense<0.000000e+00> : vector<8x8xf32>
    %91 = tpu.matmul %5, %90, %cst_74 {dimension_numbers = #tpu.dot_dimension_numbers<[1], [0], [0], [1], [0, 0, 1, 1], [], []>} : vector<8x32xf32>, vector<32x8xf32>, vector<8x8xf32> -> vector<8x8xf32>
    %c2_75 = arith.constant 2 : index
    %c0_76 = arith.constant 0 : index
    %c0_77 = arith.constant 0 : index
    %92 = vector.load %arg8[%c2_75, %c0_76, %c0_77] : memref<4x1x8xf32, #tpu.memory_space<vmem>>, vector<1x1x8xf32>
    %93 = vector.shape_cast %92 : vector<1x1x8xf32> to vector<1x8xf32>
    %94 = vector.broadcast %93 : vector<1x8xf32> to vector<8x8xf32>
    %95 = arith.addf %91, %94 : vector<8x8xf32>
    %c2_78 = arith.constant 2 : index
    %c0_79 = arith.constant 0 : index
    %c0_80 = arith.constant 0 : index
    %96 = vector.load %arg6[%c2_78, %c0_79, %c0_80] : memref<4x32x8xf32, #tpu.memory_space<vmem>>, vector<1x32x8xf32>
    %97 = vector.shape_cast %96 : vector<1x32x8xf32> to vector<32x8xf32>
    %cst_81 = arith.constant dense<0.000000e+00> : vector<8x8xf32>
    %98 = tpu.matmul %5, %97, %cst_81 {dimension_numbers = #tpu.dot_dimension_numbers<[1], [0], [0], [1], [0, 0, 1, 1], [], []>} : vector<8x32xf32>, vector<32x8xf32>, vector<8x8xf32> -> vector<8x8xf32>
    %c2_82 = arith.constant 2 : index
    %c0_83 = arith.constant 0 : index
    %c0_84 = arith.constant 0 : index
    %99 = vector.load %arg9[%c2_82, %c0_83, %c0_84] : memref<4x1x8xf32, #tpu.memory_space<vmem>>, vector<1x1x8xf32>
    %100 = vector.shape_cast %99 : vector<1x1x8xf32> to vector<1x8xf32>
    %101 = vector.broadcast %100 : vector<1x8xf32> to vector<8x8xf32>
    %102 = arith.addf %98, %101 : vector<8x8xf32>
    %cst_85 = arith.constant dense<0.000000e+00> : vector<8x8xf32>
    %103 = tpu.matmul %88, %95, %cst_85 {dimension_numbers = #tpu.dot_dimension_numbers<[1], [1], [0], [0], [0, 0, 1, 0], [], []>} : vector<8x8xf32>, vector<8x8xf32>, vector<8x8xf32> -> vector<8x8xf32>
    %cst_86 = arith.constant dense<0xFF800000> : vector<8xf32>
    %104 = vector.multi_reduction <maximumf>, %103, %cst_86 [1] : vector<8x8xf32> to vector<8xf32>
    %105 = vector.shape_cast %104 : vector<8xf32> to vector<8x1xf32>
    %106 = vector.broadcast %105 : vector<8x1xf32> to vector<8x8xf32>
    %107 = arith.subf %103, %106 : vector<8x8xf32>
    %108 = math.exp %107 : vector<8x8xf32>
    %cst_87 = arith.constant dense<0.000000e+00> : vector<8xf32>
    %109 = vector.multi_reduction <add>, %108, %cst_87 [1] : vector<8x8xf32> to vector<8xf32>
    %110 = vector.shape_cast %109 : vector<8xf32> to vector<8x1xf32>
    %111 = vector.broadcast %110 : vector<8x1xf32> to vector<8x8xf32>
    %112 = arith.divf %108, %111 : vector<8x8xf32>
    %113 = arith.addf %76, %112 : vector<8x8xf32>
    %cst_88 = arith.constant dense<0.000000e+00> : vector<8x8xf32>
    %114 = tpu.matmul %112, %102, %cst_88 {dimension_numbers = #tpu.dot_dimension_numbers<[1], [0], [0], [1], [0, 0, 1, 1], [], []>} : vector<8x8xf32>, vector<8x8xf32>, vector<8x8xf32> -> vector<8x8xf32>
    %c2_89 = arith.constant 2 : index
    %c0_90 = arith.constant 0 : index
    %c0_91 = arith.constant 0 : index
    %115 = vector.load %arg10[%c2_89, %c0_90, %c0_91] : memref<4x8x32xf32, #tpu.memory_space<vmem>>, vector<1x8x32xf32>
    %116 = vector.shape_cast %115 : vector<1x8x32xf32> to vector<8x32xf32>
    %cst_92 = arith.constant dense<0.000000e+00> : vector<8x32xf32>
    %117 = tpu.matmul %114, %116, %cst_92 {dimension_numbers = #tpu.dot_dimension_numbers<[1], [0], [0], [1], [0, 0, 1, 1], [], []>} : vector<8x8xf32>, vector<8x32xf32>, vector<8x32xf32> -> vector<8x32xf32>
    %118 = arith.addf %81, %117 : vector<8x32xf32>
    %c3 = arith.constant 3 : index
    %c0_93 = arith.constant 0 : index
    %c0_94 = arith.constant 0 : index
    %119 = vector.load %arg4[%c3, %c0_93, %c0_94] : memref<4x32x8xf32, #tpu.memory_space<vmem>>, vector<1x32x8xf32>
    %120 = vector.shape_cast %119 : vector<1x32x8xf32> to vector<32x8xf32>
    %cst_95 = arith.constant dense<0.000000e+00> : vector<8x8xf32>
    %121 = tpu.matmul %5, %120, %cst_95 {dimension_numbers = #tpu.dot_dimension_numbers<[1], [0], [0], [1], [0, 0, 1, 1], [], []>} : vector<8x32xf32>, vector<32x8xf32>, vector<8x8xf32> -> vector<8x8xf32>
    %c3_96 = arith.constant 3 : index
    %c0_97 = arith.constant 0 : index
    %c0_98 = arith.constant 0 : index
    %122 = vector.load %arg7[%c3_96, %c0_97, %c0_98] : memref<4x1x8xf32, #tpu.memory_space<vmem>>, vector<1x1x8xf32>
    %123 = vector.shape_cast %122 : vector<1x1x8xf32> to vector<1x8xf32>
    %124 = vector.broadcast %123 : vector<1x8xf32> to vector<8x8xf32>
    %125 = arith.addf %121, %124 : vector<8x8xf32>
    %c3_99 = arith.constant 3 : index
    %c0_100 = arith.constant 0 : index
    %c0_101 = arith.constant 0 : index
    %126 = vector.load %arg5[%c3_99, %c0_100, %c0_101] : memref<4x32x8xf32, #tpu.memory_space<vmem>>, vector<1x32x8xf32>
    %127 = vector.shape_cast %126 : vector<1x32x8xf32> to vector<32x8xf32>
    %cst_102 = arith.constant dense<0.000000e+00> : vector<8x8xf32>
    %128 = tpu.matmul %5, %127, %cst_102 {dimension_numbers = #tpu.dot_dimension_numbers<[1], [0], [0], [1], [0, 0, 1, 1], [], []>} : vector<8x32xf32>, vector<32x8xf32>, vector<8x8xf32> -> vector<8x8xf32>
    %c3_103 = arith.constant 3 : index
    %c0_104 = arith.constant 0 : index
    %c0_105 = arith.constant 0 : index
    %129 = vector.load %arg8[%c3_103, %c0_104, %c0_105] : memref<4x1x8xf32, #tpu.memory_space<vmem>>, vector<1x1x8xf32>
    %130 = vector.shape_cast %129 : vector<1x1x8xf32> to vector<1x8xf32>
    %131 = vector.broadcast %130 : vector<1x8xf32> to vector<8x8xf32>
    %132 = arith.addf %128, %131 : vector<8x8xf32>
    %c3_106 = arith.constant 3 : index
    %c0_107 = arith.constant 0 : index
    %c0_108 = arith.constant 0 : index
    %133 = vector.load %arg6[%c3_106, %c0_107, %c0_108] : memref<4x32x8xf32, #tpu.memory_space<vmem>>, vector<1x32x8xf32>
    %134 = vector.shape_cast %133 : vector<1x32x8xf32> to vector<32x8xf32>
    %cst_109 = arith.constant dense<0.000000e+00> : vector<8x8xf32>
    %135 = tpu.matmul %5, %134, %cst_109 {dimension_numbers = #tpu.dot_dimension_numbers<[1], [0], [0], [1], [0, 0, 1, 1], [], []>} : vector<8x32xf32>, vector<32x8xf32>, vector<8x8xf32> -> vector<8x8xf32>
    %c3_110 = arith.constant 3 : index
    %c0_111 = arith.constant 0 : index
    %c0_112 = arith.constant 0 : index
    %136 = vector.load %arg9[%c3_110, %c0_111, %c0_112] : memref<4x1x8xf32, #tpu.memory_space<vmem>>, vector<1x1x8xf32>
    %137 = vector.shape_cast %136 : vector<1x1x8xf32> to vector<1x8xf32>
    %138 = vector.broadcast %137 : vector<1x8xf32> to vector<8x8xf32>
    %139 = arith.addf %135, %138 : vector<8x8xf32>
    %cst_113 = arith.constant dense<0.000000e+00> : vector<8x8xf32>
    %140 = tpu.matmul %125, %132, %cst_113 {dimension_numbers = #tpu.dot_dimension_numbers<[1], [1], [0], [0], [0, 0, 1, 0], [], []>} : vector<8x8xf32>, vector<8x8xf32>, vector<8x8xf32> -> vector<8x8xf32>
    %cst_114 = arith.constant dense<0xFF800000> : vector<8xf32>
    %141 = vector.multi_reduction <maximumf>, %140, %cst_114 [1] : vector<8x8xf32> to vector<8xf32>
    %142 = vector.shape_cast %141 : vector<8xf32> to vector<8x1xf32>
    %143 = vector.broadcast %142 : vector<8x1xf32> to vector<8x8xf32>
    %144 = arith.subf %140, %143 : vector<8x8xf32>
    %145 = math.exp %144 : vector<8x8xf32>
    %cst_115 = arith.constant dense<0.000000e+00> : vector<8xf32>
    %146 = vector.multi_reduction <add>, %145, %cst_115 [1] : vector<8x8xf32> to vector<8xf32>
    %147 = vector.shape_cast %146 : vector<8xf32> to vector<8x1xf32>
    %148 = vector.broadcast %147 : vector<8x1xf32> to vector<8x8xf32>
    %149 = arith.divf %145, %148 : vector<8x8xf32>
    %150 = arith.addf %113, %149 : vector<8x8xf32>
    %cst_116 = arith.constant dense<0.000000e+00> : vector<8x8xf32>
    %151 = tpu.matmul %149, %139, %cst_116 {dimension_numbers = #tpu.dot_dimension_numbers<[1], [0], [0], [1], [0, 0, 1, 1], [], []>} : vector<8x8xf32>, vector<8x8xf32>, vector<8x8xf32> -> vector<8x8xf32>
    %c3_117 = arith.constant 3 : index
    %c0_118 = arith.constant 0 : index
    %c0_119 = arith.constant 0 : index
    %152 = vector.load %arg10[%c3_117, %c0_118, %c0_119] : memref<4x8x32xf32, #tpu.memory_space<vmem>>, vector<1x8x32xf32>
    %153 = vector.shape_cast %152 : vector<1x8x32xf32> to vector<8x32xf32>
    %cst_120 = arith.constant dense<0.000000e+00> : vector<8x32xf32>
    %154 = tpu.matmul %151, %153, %cst_120 {dimension_numbers = #tpu.dot_dimension_numbers<[1], [0], [0], [1], [0, 0, 1, 1], [], []>} : vector<8x8xf32>, vector<8x32xf32>, vector<8x32xf32> -> vector<8x32xf32>
    %155 = arith.addf %118, %154 : vector<8x32xf32>
    %c0_121 = arith.constant 0 : index
    %c0_122 = arith.constant 0 : index
    %156 = vector.load %arg11[%c0_121, %c0_122] : memref<1x32xf32, #tpu.memory_space<vmem>>, vector<1x32xf32>
    %157 = vector.broadcast %156 : vector<1x32xf32> to vector<8x32xf32>
    %158 = arith.addf %155, %157 : vector<8x32xf32>
    %159 = arith.addf %5, %158 : vector<8x32xf32>
    %c0_123 = arith.constant 0 : index
    %c0_124 = arith.constant 0 : index
    %160 = vector.load %arg12[%c0_123, %c0_124] : memref<1x32xf32, #tpu.memory_space<vmem>>, vector<1x32xf32>
    %c0_125 = arith.constant 0 : index
    %c0_126 = arith.constant 0 : index
    %161 = vector.load %arg13[%c0_125, %c0_126] : memref<1x32xf32, #tpu.memory_space<vmem>>, vector<1x32xf32>
    %cst_127 = arith.constant dense<0.000000e+00> : vector<8xf32>
    %162 = vector.multi_reduction <add>, %159, %cst_127 [1] : vector<8x32xf32> to vector<8xf32>
    %163 = vector.shape_cast %162 : vector<8xf32> to vector<8x1xf32>
    %cst_128 = arith.constant 3.200000e+01 : f32
    %164 = vector.broadcast %cst_128 : f32 to vector<8x1xf32>
    %165 = arith.divf %163, %164 : vector<8x1xf32>
    %166 = vector.broadcast %165 : vector<8x1xf32> to vector<8x32xf32>
    %167 = arith.subf %159, %166 : vector<8x32xf32>
    %168 = arith.mulf %167, %167 : vector<8x32xf32>
    %cst_129 = arith.constant dense<0.000000e+00> : vector<8xf32>
    %169 = vector.multi_reduction <add>, %168, %cst_129 [1] : vector<8x32xf32> to vector<8xf32>
    %170 = vector.shape_cast %169 : vector<8xf32> to vector<8x1xf32>
    %cst_130 = arith.constant 3.200000e+01 : f32
    %171 = vector.broadcast %cst_130 : f32 to vector<8x1xf32>
    %172 = arith.divf %170, %171 : vector<8x1xf32>
    %173 = vector.broadcast %165 : vector<8x1xf32> to vector<8x32xf32>
    %174 = arith.subf %159, %173 : vector<8x32xf32>
    %cst_131 = arith.constant 9.99999974E-6 : f32
    %175 = vector.broadcast %cst_131 : f32 to vector<8x1xf32>
    %176 = arith.addf %172, %175 : vector<8x1xf32>
    %177 = math.rsqrt %176 : vector<8x1xf32>
    %178 = vector.broadcast %177 : vector<8x1xf32> to vector<8x32xf32>
    %179 = arith.mulf %174, %178 : vector<8x32xf32>
    %180 = vector.broadcast %160 : vector<1x32xf32> to vector<8x32xf32>
    %181 = arith.mulf %179, %180 : vector<8x32xf32>
    %182 = vector.broadcast %161 : vector<1x32xf32> to vector<8x32xf32>
    %183 = arith.addf %181, %182 : vector<8x32xf32>
    %c0_132 = arith.constant 0 : index
    %c0_133 = arith.constant 0 : index
    %184 = vector.load %arg14[%c0_132, %c0_133] : memref<32x32xf32, #tpu.memory_space<vmem>>, vector<32x32xf32>
    %cst_134 = arith.constant dense<0.000000e+00> : vector<8x32xf32>
    %185 = tpu.matmul %183, %184, %cst_134 {dimension_numbers = #tpu.dot_dimension_numbers<[1], [0], [0], [1], [0, 0, 1, 1], [], []>} : vector<8x32xf32>, vector<32x32xf32>, vector<8x32xf32> -> vector<8x32xf32>
    %c0_135 = arith.constant 0 : index
    %c0_136 = arith.constant 0 : index
    %186 = vector.load %arg15[%c0_135, %c0_136] : memref<1x32xf32, #tpu.memory_space<vmem>>, vector<1x32xf32>
    %187 = vector.broadcast %186 : vector<1x32xf32> to vector<8x32xf32>
    %188 = arith.addf %185, %187 : vector<8x32xf32>
    %189 = arith.addf %183, %188 : vector<8x32xf32>
    %c0_137 = arith.constant 0 : index
    %c0_138 = arith.constant 0 : index
    %190 = vector.load %arg16[%c0_137, %c0_138] : memref<1x32xf32, #tpu.memory_space<vmem>>, vector<1x32xf32>
    %c0_139 = arith.constant 0 : index
    %c0_140 = arith.constant 0 : index
    %191 = vector.load %arg17[%c0_139, %c0_140] : memref<1x32xf32, #tpu.memory_space<vmem>>, vector<1x32xf32>
    %cst_141 = arith.constant dense<0.000000e+00> : vector<8xf32>
    %192 = vector.multi_reduction <add>, %189, %cst_141 [1] : vector<8x32xf32> to vector<8xf32>
    %193 = vector.shape_cast %192 : vector<8xf32> to vector<8x1xf32>
    %cst_142 = arith.constant 3.200000e+01 : f32
    %194 = vector.broadcast %cst_142 : f32 to vector<8x1xf32>
    %195 = arith.divf %193, %194 : vector<8x1xf32>
    %196 = vector.broadcast %195 : vector<8x1xf32> to vector<8x32xf32>
    %197 = arith.subf %189, %196 : vector<8x32xf32>
    %198 = arith.mulf %197, %197 : vector<8x32xf32>
    %cst_143 = arith.constant dense<0.000000e+00> : vector<8xf32>
    %199 = vector.multi_reduction <add>, %198, %cst_143 [1] : vector<8x32xf32> to vector<8xf32>
    %200 = vector.shape_cast %199 : vector<8xf32> to vector<8x1xf32>
    %cst_144 = arith.constant 3.200000e+01 : f32
    %201 = vector.broadcast %cst_144 : f32 to vector<8x1xf32>
    %202 = arith.divf %200, %201 : vector<8x1xf32>
    %203 = vector.broadcast %195 : vector<8x1xf32> to vector<8x32xf32>
    %204 = arith.subf %189, %203 : vector<8x32xf32>
    %cst_145 = arith.constant 9.99999974E-6 : f32
    %205 = vector.broadcast %cst_145 : f32 to vector<8x1xf32>
    %206 = arith.addf %202, %205 : vector<8x1xf32>
    %207 = math.rsqrt %206 : vector<8x1xf32>
    %208 = vector.broadcast %207 : vector<8x1xf32> to vector<8x32xf32>
    %209 = arith.mulf %204, %208 : vector<8x32xf32>
    %210 = vector.broadcast %190 : vector<1x32xf32> to vector<8x32xf32>
    %211 = arith.mulf %209, %210 : vector<8x32xf32>
    %212 = vector.broadcast %191 : vector<1x32xf32> to vector<8x32xf32>
    %213 = arith.addf %211, %212 : vector<8x32xf32>
    %cst_146 = arith.constant 2.500000e-01 : f32
    %214 = vector.broadcast %cst_146 : f32 to vector<8x8xf32>
    %215 = arith.mulf %150, %214 : vector<8x8xf32>
    %c0_147 = arith.constant 0 : index
    %c0_148 = arith.constant 0 : index
    %c0_149 = arith.constant 0 : index
    %c0_150 = arith.constant 0 : index
    %216 = vector.load %arg19[%c0_147, %c0_148, %c0_149, %c0_150] : memref<1x1x8x8xf32, #tpu.memory_space<vmem>>, vector<1x1x8x8xf32>
    %217 = vector.shape_cast %216 : vector<1x1x8x8xf32> to vector<8x8xf32>
    %218 = vector.shape_cast %215 : vector<8x8xf32> to vector<1x1x8x8xf32>
    tpu.vector_store %arg19[%c0_147, %c0_148, %c0_149, %c0_150], %218 {strides = array<i32>} : memref<1x1x8x8xf32, #tpu.memory_space<vmem>>, vector<1x1x8x8xf32>,
    %c0_151 = arith.constant 0 : index
    %c0_152 = arith.constant 0 : index
    %c0_153 = arith.constant 0 : index
    %219 = vector.load %arg18[%c0_151, %c0_152, %c0_153] : memref<1x8x32xf32, #tpu.memory_space<vmem>>, vector<1x8x32xf32>
    %220 = vector.shape_cast %219 : vector<1x8x32xf32> to vector<8x32xf32>
    %221 = vector.shape_cast %213 : vector<8x32xf32> to vector<1x8x32xf32>
    tpu.vector_store %arg18[%c0_151, %c0_152, %c0_153], %221 {strides = array<i32>} : memref<1x8x32xf32, #tpu.memory_space<vmem>>, vector<1x8x32xf32>,
    return
  }
  func.func @transform_0(%arg0: i32) -> (i32, i32, i32) {
    %c0_i32 = arith.constant 0 : i32
    %c0_i32_0 = arith.constant 0 : i32
    %c0_i32_1 = arith.constant 0 : i32
    return %arg0, %c0_i32, %c0_i32_0 : i32, i32, i32
  }
  func.func @transform_1(%arg0: i32) -> (i32, i32) {
    %c0_i32 = arith.constant 0 : i32
    %c0_i32_0 = arith.constant 0 : i32
    %c0_i32_1 = arith.constant 0 : i32
    return %c0_i32, %c0_i32_0 : i32, i32
  }
  func.func @transform_2(%arg0: i32) -> (i32, i32) {
    %c0_i32 = arith.constant 0 : i32
    %c0_i32_0 = arith.constant 0 : i32
    %c0_i32_1 = arith.constant 0 : i32
    return %c0_i32, %c0_i32_0 : i32, i32
  }
  func.func @transform_3(%arg0: i32) -> (i32, i32, i32) {
    %c0_i32 = arith.constant 0 : i32
    %c0_i32_0 = arith.constant 0 : i32
    %c0_i32_1 = arith.constant 0 : i32
    %c0_i32_2 = arith.constant 0 : i32
    return %c0_i32, %c0_i32_0, %c0_i32_1 : i32, i32, i32
  }
  func.func @transform_4(%arg0: i32) -> (i32, i32, i32) {
    %c0_i32 = arith.constant 0 : i32
    %c0_i32_0 = arith.constant 0 : i32
    %c0_i32_1 = arith.constant 0 : i32
    %c0_i32_2 = arith.constant 0 : i32
    return %c0_i32, %c0_i32_0, %c0_i32_1 : i32, i32, i32
  }
  func.func @transform_5(%arg0: i32) -> (i32, i32, i32) {
    %c0_i32 = arith.constant 0 : i32
    %c0_i32_0 = arith.constant 0 : i32
    %c0_i32_1 = arith.constant 0 : i32
    %c0_i32_2 = arith.constant 0 : i32
    return %c0_i32, %c0_i32_0, %c0_i32_1 : i32, i32, i32
  }
  func.func @transform_6(%arg0: i32) -> (i32, i32, i32) {
    %c0_i32 = arith.constant 0 : i32
    %c0_i32_0 = arith.constant 0 : i32
    %c0_i32_1 = arith.constant 0 : i32
    %c0_i32_2 = arith.constant 0 : i32
    return %c0_i32, %c0_i32_0, %c0_i32_1 : i32, i32, i32
  }
  func.func @transform_7(%arg0: i32) -> (i32, i32, i32) {
    %c0_i32 = arith.constant 0 : i32
    %c0_i32_0 = arith.constant 0 : i32
    %c0_i32_1 = arith.constant 0 : i32
    %c0_i32_2 = arith.constant 0 : i32
    return %c0_i32, %c0_i32_0, %c0_i32_1 : i32, i32, i32
  }
  func.func @transform_8(%arg0: i32) -> (i32, i32, i32) {
    %c0_i32 = arith.constant 0 : i32
    %c0_i32_0 = arith.constant 0 : i32
    %c0_i32_1 = arith.constant 0 : i32
    %c0_i32_2 = arith.constant 0 : i32
    return %c0_i32, %c0_i32_0, %c0_i32_1 : i32, i32, i32
  }
  func.func @transform_9(%arg0: i32) -> (i32, i32, i32) {
    %c0_i32 = arith.constant 0 : i32
    %c0_i32_0 = arith.constant 0 : i32
    %c0_i32_1 = arith.constant 0 : i32
    %c0_i32_2 = arith.constant 0 : i32
    return %c0_i32, %c0_i32_0, %c0_i32_1 : i32, i32, i32
  }
  func.func @transform_10(%arg0: i32) -> (i32, i32) {
    %c0_i32 = arith.constant 0 : i32
    %c0_i32_0 = arith.constant 0 : i32
    %c0_i32_1 = arith.constant 0 : i32
    return %c0_i32, %c0_i32_0 : i32, i32
  }
  func.func @transform_11(%arg0: i32) -> (i32, i32) {
    %c0_i32 = arith.constant 0 : i32
    %c0_i32_0 = arith.constant 0 : i32
    %c0_i32_1 = arith.constant 0 : i32
    return %c0_i32, %c0_i32_0 : i32, i32
  }
  func.func @transform_12(%arg0: i32) -> (i32, i32) {
    %c0_i32 = arith.constant 0 : i32
    %c0_i32_0 = arith.constant 0 : i32
    %c0_i32_1 = arith.constant 0 : i32
    return %c0_i32, %c0_i32_0 : i32, i32
  }
  func.func @transform_13(%arg0: i32) -> (i32, i32) {
    %c0_i32 = arith.constant 0 : i32
    %c0_i32_0 = arith.constant 0 : i32
    %c0_i32_1 = arith.constant 0 : i32
    return %c0_i32, %c0_i32_0 : i32, i32
  }
  func.func @transform_14(%arg0: i32) -> (i32, i32) {
    %c0_i32 = arith.constant 0 : i32
    %c0_i32_0 = arith.constant 0 : i32
    %c0_i32_1 = arith.constant 0 : i32
    return %c0_i32, %c0_i32_0 : i32, i32
  }
  func.func @transform_15(%arg0: i32) -> (i32, i32) {
    %c0_i32 = arith.constant 0 : i32
    %c0_i32_0 = arith.constant 0 : i32
    %c0_i32_1 = arith.constant 0 : i32
    return %c0_i32, %c0_i32_0 : i32, i32
  }
  func.func @transform_16(%arg0: i32) -> (i32, i32) {
    %c0_i32 = arith.constant 0 : i32
    %c0_i32_0 = arith.constant 0 : i32
    %c0_i32_1 = arith.constant 0 : i32
    return %c0_i32, %c0_i32_0 : i32, i32
  }
  func.func @transform_17(%arg0: i32) -> (i32, i32, i32) {
    %c0_i32 = arith.constant 0 : i32
    %c0_i32_0 = arith.constant 0 : i32
    %c0_i32_1 = arith.constant 0 : i32
    return %arg0, %c0_i32, %c0_i32_0 : i32, i32, i32
  }
  func.func @transform_18(%arg0: i32) -> (i32, i32, i32, i32) {
    %c0_i32 = arith.constant 0 : i32
    %c0_i32_0 = arith.constant 0 : i32
    %c0_i32_1 = arith.constant 0 : i32
    %c0_i32_2 = arith.constant 0 : i32
    return %arg0, %c0_i32, %c0_i32_0, %c0_i32_1 : i32, i32, i32, i32
  }
}

module attributes {stable_mosaic.version = 11 : i64} {
  func.func @_branch_kernel(%arg0: i32, %arg1: memref<1x6x1xf32, #tpu.memory_space<vmem>>, %arg2: memref<1x32xf32, #tpu.memory_space<vmem>>, %arg3: memref<6x32xf32, #tpu.memory_space<vmem>>, %arg4: memref<4x32x8xf32, #tpu.memory_space<vmem>>, %arg5: memref<4x32x8xf32, #tpu.memory_space<vmem>>, %arg6: memref<4x32x8xf32, #tpu.memory_space<vmem>>, %arg7: memref<4x1x8xf32, #tpu.memory_space<vmem>>, %arg8: memref<4x1x8xf32, #tpu.memory_space<vmem>>, %arg9: memref<4x1x8xf32, #tpu.memory_space<vmem>>, %arg10: memref<4x8x32xf32, #tpu.memory_space<vmem>>, %arg11: memref<1x32xf32, #tpu.memory_space<vmem>>, %arg12: memref<1x32xf32, #tpu.memory_space<vmem>>, %arg13: memref<1x32xf32, #tpu.memory_space<vmem>>, %arg14: memref<32x32xf32, #tpu.memory_space<vmem>>, %arg15: memref<1x32xf32, #tpu.memory_space<vmem>>, %arg16: memref<1x32xf32, #tpu.memory_space<vmem>>, %arg17: memref<1x32xf32, #tpu.memory_space<vmem>>, %arg18: memref<1x6x32xf32, #tpu.memory_space<vmem>>, %arg19: memref<1x1x6x6xf32, #tpu.memory_space<vmem>>) attributes {dimension_semantics = [#tpu.dimension_semantics<parallel>], iteration_bounds = array<i64: 2>, scalar_prefetch = 0 : i64, scratch_operands = 0 : i64, tpu.core_type = #tpu.core_type<tc>, window_params = [{transform_indices = @transform_0, window_bounds = array<i64: 1, 6, 1>}, {pipeline_mode = #tpu.pipeline_mode<synchronous>, transform_indices = @transform_1, window_bounds = array<i64: 1, 32>}, {pipeline_mode = #tpu.pipeline_mode<synchronous>, transform_indices = @transform_2, window_bounds = array<i64: 6, 32>}, {pipeline_mode = #tpu.pipeline_mode<synchronous>, transform_indices = @transform_3, window_bounds = array<i64: 4, 32, 8>}, {pipeline_mode = #tpu.pipeline_mode<synchronous>, transform_indices = @transform_4, window_bounds = array<i64: 4, 32, 8>}, {pipeline_mode = #tpu.pipeline_mode<synchronous>, transform_indices = @transform_5, window_bounds = array<i64: 4, 32, 8>}, {pipeline_mode = #tpu.pipeline_mode<synchronous>, transform_indices = @transform_6, window_bounds = array<i64: 4, 1, 8>}, {pipeline_mode = #tpu.pipeline_mode<synchronous>, transform_indices = @transform_7, window_bounds = array<i64: 4, 1, 8>}, {pipeline_mode = #tpu.pipeline_mode<synchronous>, transform_indices = @transform_8, window_bounds = array<i64: 4, 1, 8>}, {pipeline_mode = #tpu.pipeline_mode<synchronous>, transform_indices = @transform_9, window_bounds = array<i64: 4, 8, 32>}, {pipeline_mode = #tpu.pipeline_mode<synchronous>, transform_indices = @transform_10, window_bounds = array<i64: 1, 32>}, {pipeline_mode = #tpu.pipeline_mode<synchronous>, transform_indices = @transform_11, window_bounds = array<i64: 1, 32>}, {pipeline_mode = #tpu.pipeline_mode<synchronous>, transform_indices = @transform_12, window_bounds = array<i64: 1, 32>}, {pipeline_mode = #tpu.pipeline_mode<synchronous>, transform_indices = @transform_13, window_bounds = array<i64: 32, 32>}, {pipeline_mode = #tpu.pipeline_mode<synchronous>, transform_indices = @transform_14, window_bounds = array<i64: 1, 32>}, {pipeline_mode = #tpu.pipeline_mode<synchronous>, transform_indices = @transform_15, window_bounds = array<i64: 1, 32>}, {pipeline_mode = #tpu.pipeline_mode<synchronous>, transform_indices = @transform_16, window_bounds = array<i64: 1, 32>}, {transform_indices = @transform_17, window_bounds = array<i64: 1, 6, 32>}, {transform_indices = @transform_18, window_bounds = array<i64: 1, 1, 6, 6>}]} {
    %c0 = arith.constant 0 : index
    %c0_0 = arith.constant 0 : index
    %c0_1 = arith.constant 0 : index
    %0 = vector.load %arg1[%c0, %c0_0, %c0_1] : memref<1x6x1xf32, #tpu.memory_space<vmem>>, vector<1x6x1xf32>
    %1 = vector.shape_cast %0 : vector<1x6x1xf32> to vector<6x1xf32>
    %c0_2 = arith.constant 0 : index
    %c0_3 = arith.constant 0 : index
    %2 = vector.load %arg2[%c0_2, %c0_3] : memref<1x32xf32, #tpu.memory_space<vmem>>, vector<1x32xf32>
    %cst = arith.constant dense<0.000000e+00> : vector<6x32xf32>
    %3 = tpu.matmul %1, %2, %cst {dimension_numbers = #tpu.dot_dimension_numbers<[1], [0], [0], [1], [0, 0, 1, 1], [], []>} : vector<6x1xf32>, vector<1x32xf32>, vector<6x32xf32> -> vector<6x32xf32>
    %c0_4 = arith.constant 0 : index
    %c0_5 = arith.constant 0 : index
    %4 = vector.load %arg3[%c0_4, %c0_5] : memref<6x32xf32, #tpu.memory_space<vmem>>, vector<6x32xf32>
    %5 = arith.addf %3, %4 : vector<6x32xf32>
    %cst_6 = arith.constant 0.000000e+00 : f32
    %6 = vector.broadcast %cst_6 : f32 to vector<6x6xf32>
    %cst_7 = arith.constant 0.000000e+00 : f32
    %7 = vector.broadcast %cst_7 : f32 to vector<6x32xf32>
    %c0_8 = arith.constant 0 : index
    %c0_9 = arith.constant 0 : index
    %c0_10 = arith.constant 0 : index
    %8 = vector.load %arg4[%c0_8, %c0_9, %c0_10] : memref<4x32x8xf32, #tpu.memory_space<vmem>>, vector<1x32x8xf32>
    %9 = vector.shape_cast %8 : vector<1x32x8xf32> to vector<32x8xf32>
    %cst_11 = arith.constant dense<0.000000e+00> : vector<6x8xf32>
    %10 = tpu.matmul %5, %9, %cst_11 {dimension_numbers = #tpu.dot_dimension_numbers<[1], [0], [0], [1], [0, 0, 1, 1], [], []>} : vector<6x32xf32>, vector<32x8xf32>, vector<6x8xf32> -> vector<6x8xf32>
    %c0_12 = arith.constant 0 : index
    %c0_13 = arith.constant 0 : index
    %c0_14 = arith.constant 0 : index
    %11 = vector.load %arg7[%c0_12, %c0_13, %c0_14] : memref<4x1x8xf32, #tpu.memory_space<vmem>>, vector<1x1x8xf32>
    %12 = vector.shape_cast %11 : vector<1x1x8xf32> to vector<1x8xf32>
    %13 = vector.broadcast %12 : vector<1x8xf32> to vector<6x8xf32>
    %14 = arith.addf %10, %13 : vector<6x8xf32>
    %c0_15 = arith.constant 0 : index
    %c0_16 = arith.constant 0 : index
    %c0_17 = arith.constant 0 : index
    %15 = vector.load %arg5[%c0_15, %c0_16, %c0_17] : memref<4x32x8xf32, #tpu.memory_space<vmem>>, vector<1x32x8xf32>
    %16 = vector.shape_cast %15 : vector<1x32x8xf32> to vector<32x8xf32>
    %cst_18 = arith.constant dense<0.000000e+00> : vector<6x8xf32>
    %17 = tpu.matmul %5, %16, %cst_18 {dimension_numbers = #tpu.dot_dimension_numbers<[1], [0], [0], [1], [0, 0, 1, 1], [], []>} : vector<6x32xf32>, vector<32x8xf32>, vector<6x8xf32> -> vector<6x8xf32>
    %c0_19 = arith.constant 0 : index
    %c0_20 = arith.constant 0 : index
    %c0_21 = arith.constant 0 : index
    %18 = vector.load %arg8[%c0_19, %c0_20, %c0_21] : memref<4x1x8xf32, #tpu.memory_space<vmem>>, vector<1x1x8xf32>
    %19 = vector.shape_cast %18 : vector<1x1x8xf32> to vector<1x8xf32>
    %20 = vector.broadcast %19 : vector<1x8xf32> to vector<6x8xf32>
    %21 = arith.addf %17, %20 : vector<6x8xf32>
    %c0_22 = arith.constant 0 : index
    %c0_23 = arith.constant 0 : index
    %c0_24 = arith.constant 0 : index
    %22 = vector.load %arg6[%c0_22, %c0_23, %c0_24] : memref<4x32x8xf32, #tpu.memory_space<vmem>>, vector<1x32x8xf32>
    %23 = vector.shape_cast %22 : vector<1x32x8xf32> to vector<32x8xf32>
    %cst_25 = arith.constant dense<0.000000e+00> : vector<6x8xf32>
    %24 = tpu.matmul %5, %23, %cst_25 {dimension_numbers = #tpu.dot_dimension_numbers<[1], [0], [0], [1], [0, 0, 1, 1], [], []>} : vector<6x32xf32>, vector<32x8xf32>, vector<6x8xf32> -> vector<6x8xf32>
    %c0_26 = arith.constant 0 : index
    %c0_27 = arith.constant 0 : index
    %c0_28 = arith.constant 0 : index
    %25 = vector.load %arg9[%c0_26, %c0_27, %c0_28] : memref<4x1x8xf32, #tpu.memory_space<vmem>>, vector<1x1x8xf32>
    %26 = vector.shape_cast %25 : vector<1x1x8xf32> to vector<1x8xf32>
    %27 = vector.broadcast %26 : vector<1x8xf32> to vector<6x8xf32>
    %28 = arith.addf %24, %27 : vector<6x8xf32>
    %cst_29 = arith.constant dense<0.000000e+00> : vector<6x6xf32>
    %29 = tpu.matmul %14, %21, %cst_29 {dimension_numbers = #tpu.dot_dimension_numbers<[1], [1], [0], [0], [0, 0, 1, 0], [], []>} : vector<6x8xf32>, vector<6x8xf32>, vector<6x6xf32> -> vector<6x6xf32>
    %cst_30 = arith.constant dense<0xFF800000> : vector<6xf32>
    %30 = vector.multi_reduction <maximumf>, %29, %cst_30 [1] : vector<6x6xf32> to vector<6xf32>
    %31 = vector.shape_cast %30 : vector<6xf32> to vector<6x1xf32>
    %32 = vector.broadcast %31 : vector<6x1xf32> to vector<6x6xf32>
    %33 = arith.subf %29, %32 : vector<6x6xf32>
    %34 = math.exp %33 : vector<6x6xf32>
    %cst_31 = arith.constant dense<0.000000e+00> : vector<6xf32>
    %35 = vector.multi_reduction <add>, %34, %cst_31 [1] : vector<6x6xf32> to vector<6xf32>
    %36 = vector.shape_cast %35 : vector<6xf32> to vector<6x1xf32>
    %37 = vector.broadcast %36 : vector<6x1xf32> to vector<6x6xf32>
    %38 = arith.divf %34, %37 : vector<6x6xf32>
    %39 = arith.addf %6, %38 : vector<6x6xf32>
    %cst_32 = arith.constant dense<0.000000e+00> : vector<6x8xf32>
    %40 = tpu.matmul %38, %28, %cst_32 {dimension_numbers = #tpu.dot_dimension_numbers<[1], [0], [0], [1], [0, 0, 1, 1], [], []>} : vector<6x6xf32>, vector<6x8xf32>, vector<6x8xf32> -> vector<6x8xf32>
    %c0_33 = arith.constant 0 : index
    %c0_34 = arith.constant 0 : index
    %c0_35 = arith.constant 0 : index
    %41 = vector.load %arg10[%c0_33, %c0_34, %c0_35] : memref<4x8x32xf32, #tpu.memory_space<vmem>>, vector<1x8x32xf32>
    %42 = vector.shape_cast %41 : vector<1x8x32xf32> to vector<8x32xf32>
    %cst_36 = arith.constant dense<0.000000e+00> : vector<6x32xf32>
    %43 = tpu.matmul %40, %42, %cst_36 {dimension_numbers = #tpu.dot_dimension_numbers<[1], [0], [0], [1], [0, 0, 1, 1], [], []>} : vector<6x8xf32>, vector<8x32xf32>, vector<6x32xf32> -> vector<6x32xf32>
    %44 = arith.addf %7, %43 : vector<6x32xf32>
    %c1 = arith.constant 1 : index
    %c0_37 = arith.constant 0 : index
    %c0_38 = arith.constant 0 : index
    %45 = vector.load %arg4[%c1, %c0_37, %c0_38] : memref<4x32x8xf32, #tpu.memory_space<vmem>>, vector<1x32x8xf32>
    %46 = vector.shape_cast %45 : vector<1x32x8xf32> to vector<32x8xf32>
    %cst_39 = arith.constant dense<0.000000e+00> : vector<6x8xf32>
    %47 = tpu.matmul %5, %46, %cst_39 {dimension_numbers = #tpu.dot_dimension_numbers<[1], [0], [0], [1], [0, 0, 1, 1], [], []>} : vector<6x32xf32>, vector<32x8xf32>, vector<6x8xf32> -> vector<6x8xf32>
    %c1_40 = arith.constant 1 : index
    %c0_41 = arith.constant 0 : index
    %c0_42 = arith.constant 0 : index
    %48 = vector.load %arg7[%c1_40, %c0_41, %c0_42] : memref<4x1x8xf32, #tpu.memory_space<vmem>>, vector<1x1x8xf32>
    %49 = vector.shape_cast %48 : vector<1x1x8xf32> to vector<1x8xf32>
    %50 = vector.broadcast %49 : vector<1x8xf32> to vector<6x8xf32>
    %51 = arith.addf %47, %50 : vector<6x8xf32>
    %c1_43 = arith.constant 1 : index
    %c0_44 = arith.constant 0 : index
    %c0_45 = arith.constant 0 : index
    %52 = vector.load %arg5[%c1_43, %c0_44, %c0_45] : memref<4x32x8xf32, #tpu.memory_space<vmem>>, vector<1x32x8xf32>
    %53 = vector.shape_cast %52 : vector<1x32x8xf32> to vector<32x8xf32>
    %cst_46 = arith.constant dense<0.000000e+00> : vector<6x8xf32>
    %54 = tpu.matmul %5, %53, %cst_46 {dimension_numbers = #tpu.dot_dimension_numbers<[1], [0], [0], [1], [0, 0, 1, 1], [], []>} : vector<6x32xf32>, vector<32x8xf32>, vector<6x8xf32> -> vector<6x8xf32>
    %c1_47 = arith.constant 1 : index
    %c0_48 = arith.constant 0 : index
    %c0_49 = arith.constant 0 : index
    %55 = vector.load %arg8[%c1_47, %c0_48, %c0_49] : memref<4x1x8xf32, #tpu.memory_space<vmem>>, vector<1x1x8xf32>
    %56 = vector.shape_cast %55 : vector<1x1x8xf32> to vector<1x8xf32>
    %57 = vector.broadcast %56 : vector<1x8xf32> to vector<6x8xf32>
    %58 = arith.addf %54, %57 : vector<6x8xf32>
    %c1_50 = arith.constant 1 : index
    %c0_51 = arith.constant 0 : index
    %c0_52 = arith.constant 0 : index
    %59 = vector.load %arg6[%c1_50, %c0_51, %c0_52] : memref<4x32x8xf32, #tpu.memory_space<vmem>>, vector<1x32x8xf32>
    %60 = vector.shape_cast %59 : vector<1x32x8xf32> to vector<32x8xf32>
    %cst_53 = arith.constant dense<0.000000e+00> : vector<6x8xf32>
    %61 = tpu.matmul %5, %60, %cst_53 {dimension_numbers = #tpu.dot_dimension_numbers<[1], [0], [0], [1], [0, 0, 1, 1], [], []>} : vector<6x32xf32>, vector<32x8xf32>, vector<6x8xf32> -> vector<6x8xf32>
    %c1_54 = arith.constant 1 : index
    %c0_55 = arith.constant 0 : index
    %c0_56 = arith.constant 0 : index
    %62 = vector.load %arg9[%c1_54, %c0_55, %c0_56] : memref<4x1x8xf32, #tpu.memory_space<vmem>>, vector<1x1x8xf32>
    %63 = vector.shape_cast %62 : vector<1x1x8xf32> to vector<1x8xf32>
    %64 = vector.broadcast %63 : vector<1x8xf32> to vector<6x8xf32>
    %65 = arith.addf %61, %64 : vector<6x8xf32>
    %cst_57 = arith.constant dense<0.000000e+00> : vector<6x6xf32>
    %66 = tpu.matmul %51, %58, %cst_57 {dimension_numbers = #tpu.dot_dimension_numbers<[1], [1], [0], [0], [0, 0, 1, 0], [], []>} : vector<6x8xf32>, vector<6x8xf32>, vector<6x6xf32> -> vector<6x6xf32>
    %cst_58 = arith.constant dense<0xFF800000> : vector<6xf32>
    %67 = vector.multi_reduction <maximumf>, %66, %cst_58 [1] : vector<6x6xf32> to vector<6xf32>
    %68 = vector.shape_cast %67 : vector<6xf32> to vector<6x1xf32>
    %69 = vector.broadcast %68 : vector<6x1xf32> to vector<6x6xf32>
    %70 = arith.subf %66, %69 : vector<6x6xf32>
    %71 = math.exp %70 : vector<6x6xf32>
    %cst_59 = arith.constant dense<0.000000e+00> : vector<6xf32>
    %72 = vector.multi_reduction <add>, %71, %cst_59 [1] : vector<6x6xf32> to vector<6xf32>
    %73 = vector.shape_cast %72 : vector<6xf32> to vector<6x1xf32>
    %74 = vector.broadcast %73 : vector<6x1xf32> to vector<6x6xf32>
    %75 = arith.divf %71, %74 : vector<6x6xf32>
    %76 = arith.addf %39, %75 : vector<6x6xf32>
    %cst_60 = arith.constant dense<0.000000e+00> : vector<6x8xf32>
    %77 = tpu.matmul %75, %65, %cst_60 {dimension_numbers = #tpu.dot_dimension_numbers<[1], [0], [0], [1], [0, 0, 1, 1], [], []>} : vector<6x6xf32>, vector<6x8xf32>, vector<6x8xf32> -> vector<6x8xf32>
    %c1_61 = arith.constant 1 : index
    %c0_62 = arith.constant 0 : index
    %c0_63 = arith.constant 0 : index
    %78 = vector.load %arg10[%c1_61, %c0_62, %c0_63] : memref<4x8x32xf32, #tpu.memory_space<vmem>>, vector<1x8x32xf32>
    %79 = vector.shape_cast %78 : vector<1x8x32xf32> to vector<8x32xf32>
    %cst_64 = arith.constant dense<0.000000e+00> : vector<6x32xf32>
    %80 = tpu.matmul %77, %79, %cst_64 {dimension_numbers = #tpu.dot_dimension_numbers<[1], [0], [0], [1], [0, 0, 1, 1], [], []>} : vector<6x8xf32>, vector<8x32xf32>, vector<6x32xf32> -> vector<6x32xf32>
    %81 = arith.addf %44, %80 : vector<6x32xf32>
    %c2 = arith.constant 2 : index
    %c0_65 = arith.constant 0 : index
    %c0_66 = arith.constant 0 : index
    %82 = vector.load %arg4[%c2, %c0_65, %c0_66] : memref<4x32x8xf32, #tpu.memory_space<vmem>>, vector<1x32x8xf32>
    %83 = vector.shape_cast %82 : vector<1x32x8xf32> to vector<32x8xf32>
    %cst_67 = arith.constant dense<0.000000e+00> : vector<6x8xf32>
    %84 = tpu.matmul %5, %83, %cst_67 {dimension_numbers = #tpu.dot_dimension_numbers<[1], [0], [0], [1], [0, 0, 1, 1], [], []>} : vector<6x32xf32>, vector<32x8xf32>, vector<6x8xf32> -> vector<6x8xf32>
    %c2_68 = arith.constant 2 : index
    %c0_69 = arith.constant 0 : index
    %c0_70 = arith.constant 0 : index
    %85 = vector.load %arg7[%c2_68, %c0_69, %c0_70] : memref<4x1x8xf32, #tpu.memory_space<vmem>>, vector<1x1x8xf32>
    %86 = vector.shape_cast %85 : vector<1x1x8xf32> to vector<1x8xf32>
    %87 = vector.broadcast %86 : vector<1x8xf32> to vector<6x8xf32>
    %88 = arith.addf %84, %87 : vector<6x8xf32>
    %c2_71 = arith.constant 2 : index
    %c0_72 = arith.constant 0 : index
    %c0_73 = arith.constant 0 : index
    %89 = vector.load %arg5[%c2_71, %c0_72, %c0_73] : memref<4x32x8xf32, #tpu.memory_space<vmem>>, vector<1x32x8xf32>
    %90 = vector.shape_cast %89 : vector<1x32x8xf32> to vector<32x8xf32>
    %cst_74 = arith.constant dense<0.000000e+00> : vector<6x8xf32>
    %91 = tpu.matmul %5, %90, %cst_74 {dimension_numbers = #tpu.dot_dimension_numbers<[1], [0], [0], [1], [0, 0, 1, 1], [], []>} : vector<6x32xf32>, vector<32x8xf32>, vector<6x8xf32> -> vector<6x8xf32>
    %c2_75 = arith.constant 2 : index
    %c0_76 = arith.constant 0 : index
    %c0_77 = arith.constant 0 : index
    %92 = vector.load %arg8[%c2_75, %c0_76, %c0_77] : memref<4x1x8xf32, #tpu.memory_space<vmem>>, vector<1x1x8xf32>
    %93 = vector.shape_cast %92 : vector<1x1x8xf32> to vector<1x8xf32>
    %94 = vector.broadcast %93 : vector<1x8xf32> to vector<6x8xf32>
    %95 = arith.addf %91, %94 : vector<6x8xf32>
    %c2_78 = arith.constant 2 : index
    %c0_79 = arith.constant 0 : index
    %c0_80 = arith.constant 0 : index
    %96 = vector.load %arg6[%c2_78, %c0_79, %c0_80] : memref<4x32x8xf32, #tpu.memory_space<vmem>>, vector<1x32x8xf32>
    %97 = vector.shape_cast %96 : vector<1x32x8xf32> to vector<32x8xf32>
    %cst_81 = arith.constant dense<0.000000e+00> : vector<6x8xf32>
    %98 = tpu.matmul %5, %97, %cst_81 {dimension_numbers = #tpu.dot_dimension_numbers<[1], [0], [0], [1], [0, 0, 1, 1], [], []>} : vector<6x32xf32>, vector<32x8xf32>, vector<6x8xf32> -> vector<6x8xf32>
    %c2_82 = arith.constant 2 : index
    %c0_83 = arith.constant 0 : index
    %c0_84 = arith.constant 0 : index
    %99 = vector.load %arg9[%c2_82, %c0_83, %c0_84] : memref<4x1x8xf32, #tpu.memory_space<vmem>>, vector<1x1x8xf32>
    %100 = vector.shape_cast %99 : vector<1x1x8xf32> to vector<1x8xf32>
    %101 = vector.broadcast %100 : vector<1x8xf32> to vector<6x8xf32>
    %102 = arith.addf %98, %101 : vector<6x8xf32>
    %cst_85 = arith.constant dense<0.000000e+00> : vector<6x6xf32>
    %103 = tpu.matmul %88, %95, %cst_85 {dimension_numbers = #tpu.dot_dimension_numbers<[1], [1], [0], [0], [0, 0, 1, 0], [], []>} : vector<6x8xf32>, vector<6x8xf32>, vector<6x6xf32> -> vector<6x6xf32>
    %cst_86 = arith.constant dense<0xFF800000> : vector<6xf32>
    %104 = vector.multi_reduction <maximumf>, %103, %cst_86 [1] : vector<6x6xf32> to vector<6xf32>
    %105 = vector.shape_cast %104 : vector<6xf32> to vector<6x1xf32>
    %106 = vector.broadcast %105 : vector<6x1xf32> to vector<6x6xf32>
    %107 = arith.subf %103, %106 : vector<6x6xf32>
    %108 = math.exp %107 : vector<6x6xf32>
    %cst_87 = arith.constant dense<0.000000e+00> : vector<6xf32>
    %109 = vector.multi_reduction <add>, %108, %cst_87 [1] : vector<6x6xf32> to vector<6xf32>
    %110 = vector.shape_cast %109 : vector<6xf32> to vector<6x1xf32>
    %111 = vector.broadcast %110 : vector<6x1xf32> to vector<6x6xf32>
    %112 = arith.divf %108, %111 : vector<6x6xf32>
    %113 = arith.addf %76, %112 : vector<6x6xf32>
    %cst_88 = arith.constant dense<0.000000e+00> : vector<6x8xf32>
    %114 = tpu.matmul %112, %102, %cst_88 {dimension_numbers = #tpu.dot_dimension_numbers<[1], [0], [0], [1], [0, 0, 1, 1], [], []>} : vector<6x6xf32>, vector<6x8xf32>, vector<6x8xf32> -> vector<6x8xf32>
    %c2_89 = arith.constant 2 : index
    %c0_90 = arith.constant 0 : index
    %c0_91 = arith.constant 0 : index
    %115 = vector.load %arg10[%c2_89, %c0_90, %c0_91] : memref<4x8x32xf32, #tpu.memory_space<vmem>>, vector<1x8x32xf32>
    %116 = vector.shape_cast %115 : vector<1x8x32xf32> to vector<8x32xf32>
    %cst_92 = arith.constant dense<0.000000e+00> : vector<6x32xf32>
    %117 = tpu.matmul %114, %116, %cst_92 {dimension_numbers = #tpu.dot_dimension_numbers<[1], [0], [0], [1], [0, 0, 1, 1], [], []>} : vector<6x8xf32>, vector<8x32xf32>, vector<6x32xf32> -> vector<6x32xf32>
    %118 = arith.addf %81, %117 : vector<6x32xf32>
    %c3 = arith.constant 3 : index
    %c0_93 = arith.constant 0 : index
    %c0_94 = arith.constant 0 : index
    %119 = vector.load %arg4[%c3, %c0_93, %c0_94] : memref<4x32x8xf32, #tpu.memory_space<vmem>>, vector<1x32x8xf32>
    %120 = vector.shape_cast %119 : vector<1x32x8xf32> to vector<32x8xf32>
    %cst_95 = arith.constant dense<0.000000e+00> : vector<6x8xf32>
    %121 = tpu.matmul %5, %120, %cst_95 {dimension_numbers = #tpu.dot_dimension_numbers<[1], [0], [0], [1], [0, 0, 1, 1], [], []>} : vector<6x32xf32>, vector<32x8xf32>, vector<6x8xf32> -> vector<6x8xf32>
    %c3_96 = arith.constant 3 : index
    %c0_97 = arith.constant 0 : index
    %c0_98 = arith.constant 0 : index
    %122 = vector.load %arg7[%c3_96, %c0_97, %c0_98] : memref<4x1x8xf32, #tpu.memory_space<vmem>>, vector<1x1x8xf32>
    %123 = vector.shape_cast %122 : vector<1x1x8xf32> to vector<1x8xf32>
    %124 = vector.broadcast %123 : vector<1x8xf32> to vector<6x8xf32>
    %125 = arith.addf %121, %124 : vector<6x8xf32>
    %c3_99 = arith.constant 3 : index
    %c0_100 = arith.constant 0 : index
    %c0_101 = arith.constant 0 : index
    %126 = vector.load %arg5[%c3_99, %c0_100, %c0_101] : memref<4x32x8xf32, #tpu.memory_space<vmem>>, vector<1x32x8xf32>
    %127 = vector.shape_cast %126 : vector<1x32x8xf32> to vector<32x8xf32>
    %cst_102 = arith.constant dense<0.000000e+00> : vector<6x8xf32>
    %128 = tpu.matmul %5, %127, %cst_102 {dimension_numbers = #tpu.dot_dimension_numbers<[1], [0], [0], [1], [0, 0, 1, 1], [], []>} : vector<6x32xf32>, vector<32x8xf32>, vector<6x8xf32> -> vector<6x8xf32>
    %c3_103 = arith.constant 3 : index
    %c0_104 = arith.constant 0 : index
    %c0_105 = arith.constant 0 : index
    %129 = vector.load %arg8[%c3_103, %c0_104, %c0_105] : memref<4x1x8xf32, #tpu.memory_space<vmem>>, vector<1x1x8xf32>
    %130 = vector.shape_cast %129 : vector<1x1x8xf32> to vector<1x8xf32>
    %131 = vector.broadcast %130 : vector<1x8xf32> to vector<6x8xf32>
    %132 = arith.addf %128, %131 : vector<6x8xf32>
    %c3_106 = arith.constant 3 : index
    %c0_107 = arith.constant 0 : index
    %c0_108 = arith.constant 0 : index
    %133 = vector.load %arg6[%c3_106, %c0_107, %c0_108] : memref<4x32x8xf32, #tpu.memory_space<vmem>>, vector<1x32x8xf32>
    %134 = vector.shape_cast %133 : vector<1x32x8xf32> to vector<32x8xf32>
    %cst_109 = arith.constant dense<0.000000e+00> : vector<6x8xf32>
    %135 = tpu.matmul %5, %134, %cst_109 {dimension_numbers = #tpu.dot_dimension_numbers<[1], [0], [0], [1], [0, 0, 1, 1], [], []>} : vector<6x32xf32>, vector<32x8xf32>, vector<6x8xf32> -> vector<6x8xf32>
    %c3_110 = arith.constant 3 : index
    %c0_111 = arith.constant 0 : index
    %c0_112 = arith.constant 0 : index
    %136 = vector.load %arg9[%c3_110, %c0_111, %c0_112] : memref<4x1x8xf32, #tpu.memory_space<vmem>>, vector<1x1x8xf32>
    %137 = vector.shape_cast %136 : vector<1x1x8xf32> to vector<1x8xf32>
    %138 = vector.broadcast %137 : vector<1x8xf32> to vector<6x8xf32>
    %139 = arith.addf %135, %138 : vector<6x8xf32>
    %cst_113 = arith.constant dense<0.000000e+00> : vector<6x6xf32>
    %140 = tpu.matmul %125, %132, %cst_113 {dimension_numbers = #tpu.dot_dimension_numbers<[1], [1], [0], [0], [0, 0, 1, 0], [], []>} : vector<6x8xf32>, vector<6x8xf32>, vector<6x6xf32> -> vector<6x6xf32>
    %cst_114 = arith.constant dense<0xFF800000> : vector<6xf32>
    %141 = vector.multi_reduction <maximumf>, %140, %cst_114 [1] : vector<6x6xf32> to vector<6xf32>
    %142 = vector.shape_cast %141 : vector<6xf32> to vector<6x1xf32>
    %143 = vector.broadcast %142 : vector<6x1xf32> to vector<6x6xf32>
    %144 = arith.subf %140, %143 : vector<6x6xf32>
    %145 = math.exp %144 : vector<6x6xf32>
    %cst_115 = arith.constant dense<0.000000e+00> : vector<6xf32>
    %146 = vector.multi_reduction <add>, %145, %cst_115 [1] : vector<6x6xf32> to vector<6xf32>
    %147 = vector.shape_cast %146 : vector<6xf32> to vector<6x1xf32>
    %148 = vector.broadcast %147 : vector<6x1xf32> to vector<6x6xf32>
    %149 = arith.divf %145, %148 : vector<6x6xf32>
    %150 = arith.addf %113, %149 : vector<6x6xf32>
    %cst_116 = arith.constant dense<0.000000e+00> : vector<6x8xf32>
    %151 = tpu.matmul %149, %139, %cst_116 {dimension_numbers = #tpu.dot_dimension_numbers<[1], [0], [0], [1], [0, 0, 1, 1], [], []>} : vector<6x6xf32>, vector<6x8xf32>, vector<6x8xf32> -> vector<6x8xf32>
    %c3_117 = arith.constant 3 : index
    %c0_118 = arith.constant 0 : index
    %c0_119 = arith.constant 0 : index
    %152 = vector.load %arg10[%c3_117, %c0_118, %c0_119] : memref<4x8x32xf32, #tpu.memory_space<vmem>>, vector<1x8x32xf32>
    %153 = vector.shape_cast %152 : vector<1x8x32xf32> to vector<8x32xf32>
    %cst_120 = arith.constant dense<0.000000e+00> : vector<6x32xf32>
    %154 = tpu.matmul %151, %153, %cst_120 {dimension_numbers = #tpu.dot_dimension_numbers<[1], [0], [0], [1], [0, 0, 1, 1], [], []>} : vector<6x8xf32>, vector<8x32xf32>, vector<6x32xf32> -> vector<6x32xf32>
    %155 = arith.addf %118, %154 : vector<6x32xf32>
    %c0_121 = arith.constant 0 : index
    %c0_122 = arith.constant 0 : index
    %156 = vector.load %arg11[%c0_121, %c0_122] : memref<1x32xf32, #tpu.memory_space<vmem>>, vector<1x32xf32>
    %157 = vector.broadcast %156 : vector<1x32xf32> to vector<6x32xf32>
    %158 = arith.addf %155, %157 : vector<6x32xf32>
    %159 = arith.addf %5, %158 : vector<6x32xf32>
    %c0_123 = arith.constant 0 : index
    %c0_124 = arith.constant 0 : index
    %160 = vector.load %arg12[%c0_123, %c0_124] : memref<1x32xf32, #tpu.memory_space<vmem>>, vector<1x32xf32>
    %c0_125 = arith.constant 0 : index
    %c0_126 = arith.constant 0 : index
    %161 = vector.load %arg13[%c0_125, %c0_126] : memref<1x32xf32, #tpu.memory_space<vmem>>, vector<1x32xf32>
    %cst_127 = arith.constant dense<0.000000e+00> : vector<6xf32>
    %162 = vector.multi_reduction <add>, %159, %cst_127 [1] : vector<6x32xf32> to vector<6xf32>
    %163 = vector.shape_cast %162 : vector<6xf32> to vector<6x1xf32>
    %cst_128 = arith.constant 3.200000e+01 : f32
    %164 = vector.broadcast %cst_128 : f32 to vector<6x1xf32>
    %165 = arith.divf %163, %164 : vector<6x1xf32>
    %166 = vector.broadcast %165 : vector<6x1xf32> to vector<6x32xf32>
    %167 = arith.subf %159, %166 : vector<6x32xf32>
    %168 = arith.mulf %167, %167 : vector<6x32xf32>
    %cst_129 = arith.constant dense<0.000000e+00> : vector<6xf32>
    %169 = vector.multi_reduction <add>, %168, %cst_129 [1] : vector<6x32xf32> to vector<6xf32>
    %170 = vector.shape_cast %169 : vector<6xf32> to vector<6x1xf32>
    %cst_130 = arith.constant 3.200000e+01 : f32
    %171 = vector.broadcast %cst_130 : f32 to vector<6x1xf32>
    %172 = arith.divf %170, %171 : vector<6x1xf32>
    %173 = vector.broadcast %165 : vector<6x1xf32> to vector<6x32xf32>
    %174 = arith.subf %159, %173 : vector<6x32xf32>
    %cst_131 = arith.constant 9.99999974E-6 : f32
    %175 = vector.broadcast %cst_131 : f32 to vector<6x1xf32>
    %176 = arith.addf %172, %175 : vector<6x1xf32>
    %177 = math.rsqrt %176 : vector<6x1xf32>
    %178 = vector.broadcast %177 : vector<6x1xf32> to vector<6x32xf32>
    %179 = arith.mulf %174, %178 : vector<6x32xf32>
    %180 = vector.broadcast %160 : vector<1x32xf32> to vector<6x32xf32>
    %181 = arith.mulf %179, %180 : vector<6x32xf32>
    %182 = vector.broadcast %161 : vector<1x32xf32> to vector<6x32xf32>
    %183 = arith.addf %181, %182 : vector<6x32xf32>
    %c0_132 = arith.constant 0 : index
    %c0_133 = arith.constant 0 : index
    %184 = vector.load %arg14[%c0_132, %c0_133] : memref<32x32xf32, #tpu.memory_space<vmem>>, vector<32x32xf32>
    %cst_134 = arith.constant dense<0.000000e+00> : vector<6x32xf32>
    %185 = tpu.matmul %183, %184, %cst_134 {dimension_numbers = #tpu.dot_dimension_numbers<[1], [0], [0], [1], [0, 0, 1, 1], [], []>} : vector<6x32xf32>, vector<32x32xf32>, vector<6x32xf32> -> vector<6x32xf32>
    %c0_135 = arith.constant 0 : index
    %c0_136 = arith.constant 0 : index
    %186 = vector.load %arg15[%c0_135, %c0_136] : memref<1x32xf32, #tpu.memory_space<vmem>>, vector<1x32xf32>
    %187 = vector.broadcast %186 : vector<1x32xf32> to vector<6x32xf32>
    %188 = arith.addf %185, %187 : vector<6x32xf32>
    %189 = arith.addf %183, %188 : vector<6x32xf32>
    %c0_137 = arith.constant 0 : index
    %c0_138 = arith.constant 0 : index
    %190 = vector.load %arg16[%c0_137, %c0_138] : memref<1x32xf32, #tpu.memory_space<vmem>>, vector<1x32xf32>
    %c0_139 = arith.constant 0 : index
    %c0_140 = arith.constant 0 : index
    %191 = vector.load %arg17[%c0_139, %c0_140] : memref<1x32xf32, #tpu.memory_space<vmem>>, vector<1x32xf32>
    %cst_141 = arith.constant dense<0.000000e+00> : vector<6xf32>
    %192 = vector.multi_reduction <add>, %189, %cst_141 [1] : vector<6x32xf32> to vector<6xf32>
    %193 = vector.shape_cast %192 : vector<6xf32> to vector<6x1xf32>
    %cst_142 = arith.constant 3.200000e+01 : f32
    %194 = vector.broadcast %cst_142 : f32 to vector<6x1xf32>
    %195 = arith.divf %193, %194 : vector<6x1xf32>
    %196 = vector.broadcast %195 : vector<6x1xf32> to vector<6x32xf32>
    %197 = arith.subf %189, %196 : vector<6x32xf32>
    %198 = arith.mulf %197, %197 : vector<6x32xf32>
    %cst_143 = arith.constant dense<0.000000e+00> : vector<6xf32>
    %199 = vector.multi_reduction <add>, %198, %cst_143 [1] : vector<6x32xf32> to vector<6xf32>
    %200 = vector.shape_cast %199 : vector<6xf32> to vector<6x1xf32>
    %cst_144 = arith.constant 3.200000e+01 : f32
    %201 = vector.broadcast %cst_144 : f32 to vector<6x1xf32>
    %202 = arith.divf %200, %201 : vector<6x1xf32>
    %203 = vector.broadcast %195 : vector<6x1xf32> to vector<6x32xf32>
    %204 = arith.subf %189, %203 : vector<6x32xf32>
    %cst_145 = arith.constant 9.99999974E-6 : f32
    %205 = vector.broadcast %cst_145 : f32 to vector<6x1xf32>
    %206 = arith.addf %202, %205 : vector<6x1xf32>
    %207 = math.rsqrt %206 : vector<6x1xf32>
    %208 = vector.broadcast %207 : vector<6x1xf32> to vector<6x32xf32>
    %209 = arith.mulf %204, %208 : vector<6x32xf32>
    %210 = vector.broadcast %190 : vector<1x32xf32> to vector<6x32xf32>
    %211 = arith.mulf %209, %210 : vector<6x32xf32>
    %212 = vector.broadcast %191 : vector<1x32xf32> to vector<6x32xf32>
    %213 = arith.addf %211, %212 : vector<6x32xf32>
    %cst_146 = arith.constant 2.500000e-01 : f32
    %214 = vector.broadcast %cst_146 : f32 to vector<6x6xf32>
    %215 = arith.mulf %150, %214 : vector<6x6xf32>
    %c0_147 = arith.constant 0 : index
    %c0_148 = arith.constant 0 : index
    %c0_149 = arith.constant 0 : index
    %c0_150 = arith.constant 0 : index
    %216 = vector.load %arg19[%c0_147, %c0_148, %c0_149, %c0_150] : memref<1x1x6x6xf32, #tpu.memory_space<vmem>>, vector<1x1x6x6xf32>
    %217 = vector.shape_cast %216 : vector<1x1x6x6xf32> to vector<6x6xf32>
    %218 = vector.shape_cast %215 : vector<6x6xf32> to vector<1x1x6x6xf32>
    tpu.vector_store %arg19[%c0_147, %c0_148, %c0_149, %c0_150], %218 {strides = array<i32>} : memref<1x1x6x6xf32, #tpu.memory_space<vmem>>, vector<1x1x6x6xf32>,
    %c0_151 = arith.constant 0 : index
    %c0_152 = arith.constant 0 : index
    %c0_153 = arith.constant 0 : index
    %219 = vector.load %arg18[%c0_151, %c0_152, %c0_153] : memref<1x6x32xf32, #tpu.memory_space<vmem>>, vector<1x6x32xf32>
    %220 = vector.shape_cast %219 : vector<1x6x32xf32> to vector<6x32xf32>
    %221 = vector.shape_cast %213 : vector<6x32xf32> to vector<1x6x32xf32>
    tpu.vector_store %arg18[%c0_151, %c0_152, %c0_153], %221 {strides = array<i32>} : memref<1x6x32xf32, #tpu.memory_space<vmem>>, vector<1x6x32xf32>,
    return
  }
  func.func @transform_0(%arg0: i32) -> (i32, i32, i32) {
    %c0_i32 = arith.constant 0 : i32
    %c0_i32_0 = arith.constant 0 : i32
    %c0_i32_1 = arith.constant 0 : i32
    return %arg0, %c0_i32, %c0_i32_0 : i32, i32, i32
  }
  func.func @transform_1(%arg0: i32) -> (i32, i32) {
    %c0_i32 = arith.constant 0 : i32
    %c0_i32_0 = arith.constant 0 : i32
    %c0_i32_1 = arith.constant 0 : i32
    return %c0_i32, %c0_i32_0 : i32, i32
  }
  func.func @transform_2(%arg0: i32) -> (i32, i32) {
    %c0_i32 = arith.constant 0 : i32
    %c0_i32_0 = arith.constant 0 : i32
    %c0_i32_1 = arith.constant 0 : i32
    return %c0_i32, %c0_i32_0 : i32, i32
  }
  func.func @transform_3(%arg0: i32) -> (i32, i32, i32) {
    %c0_i32 = arith.constant 0 : i32
    %c0_i32_0 = arith.constant 0 : i32
    %c0_i32_1 = arith.constant 0 : i32
    %c0_i32_2 = arith.constant 0 : i32
    return %c0_i32, %c0_i32_0, %c0_i32_1 : i32, i32, i32
  }
  func.func @transform_4(%arg0: i32) -> (i32, i32, i32) {
    %c0_i32 = arith.constant 0 : i32
    %c0_i32_0 = arith.constant 0 : i32
    %c0_i32_1 = arith.constant 0 : i32
    %c0_i32_2 = arith.constant 0 : i32
    return %c0_i32, %c0_i32_0, %c0_i32_1 : i32, i32, i32
  }
  func.func @transform_5(%arg0: i32) -> (i32, i32, i32) {
    %c0_i32 = arith.constant 0 : i32
    %c0_i32_0 = arith.constant 0 : i32
    %c0_i32_1 = arith.constant 0 : i32
    %c0_i32_2 = arith.constant 0 : i32
    return %c0_i32, %c0_i32_0, %c0_i32_1 : i32, i32, i32
  }
  func.func @transform_6(%arg0: i32) -> (i32, i32, i32) {
    %c0_i32 = arith.constant 0 : i32
    %c0_i32_0 = arith.constant 0 : i32
    %c0_i32_1 = arith.constant 0 : i32
    %c0_i32_2 = arith.constant 0 : i32
    return %c0_i32, %c0_i32_0, %c0_i32_1 : i32, i32, i32
  }
  func.func @transform_7(%arg0: i32) -> (i32, i32, i32) {
    %c0_i32 = arith.constant 0 : i32
    %c0_i32_0 = arith.constant 0 : i32
    %c0_i32_1 = arith.constant 0 : i32
    %c0_i32_2 = arith.constant 0 : i32
    return %c0_i32, %c0_i32_0, %c0_i32_1 : i32, i32, i32
  }
  func.func @transform_8(%arg0: i32) -> (i32, i32, i32) {
    %c0_i32 = arith.constant 0 : i32
    %c0_i32_0 = arith.constant 0 : i32
    %c0_i32_1 = arith.constant 0 : i32
    %c0_i32_2 = arith.constant 0 : i32
    return %c0_i32, %c0_i32_0, %c0_i32_1 : i32, i32, i32
  }
  func.func @transform_9(%arg0: i32) -> (i32, i32, i32) {
    %c0_i32 = arith.constant 0 : i32
    %c0_i32_0 = arith.constant 0 : i32
    %c0_i32_1 = arith.constant 0 : i32
    %c0_i32_2 = arith.constant 0 : i32
    return %c0_i32, %c0_i32_0, %c0_i32_1 : i32, i32, i32
  }
  func.func @transform_10(%arg0: i32) -> (i32, i32) {
    %c0_i32 = arith.constant 0 : i32
    %c0_i32_0 = arith.constant 0 : i32
    %c0_i32_1 = arith.constant 0 : i32
    return %c0_i32, %c0_i32_0 : i32, i32
  }
  func.func @transform_11(%arg0: i32) -> (i32, i32) {
    %c0_i32 = arith.constant 0 : i32
    %c0_i32_0 = arith.constant 0 : i32
    %c0_i32_1 = arith.constant 0 : i32
    return %c0_i32, %c0_i32_0 : i32, i32
  }
  func.func @transform_12(%arg0: i32) -> (i32, i32) {
    %c0_i32 = arith.constant 0 : i32
    %c0_i32_0 = arith.constant 0 : i32
    %c0_i32_1 = arith.constant 0 : i32
    return %c0_i32, %c0_i32_0 : i32, i32
  }
  func.func @transform_13(%arg0: i32) -> (i32, i32) {
    %c0_i32 = arith.constant 0 : i32
    %c0_i32_0 = arith.constant 0 : i32
    %c0_i32_1 = arith.constant 0 : i32
    return %c0_i32, %c0_i32_0 : i32, i32
  }
  func.func @transform_14(%arg0: i32) -> (i32, i32) {
    %c0_i32 = arith.constant 0 : i32
    %c0_i32_0 = arith.constant 0 : i32
    %c0_i32_1 = arith.constant 0 : i32
    return %c0_i32, %c0_i32_0 : i32, i32
  }
  func.func @transform_15(%arg0: i32) -> (i32, i32) {
    %c0_i32 = arith.constant 0 : i32
    %c0_i32_0 = arith.constant 0 : i32
    %c0_i32_1 = arith.constant 0 : i32
    return %c0_i32, %c0_i32_0 : i32, i32
  }
  func.func @transform_16(%arg0: i32) -> (i32, i32) {
    %c0_i32 = arith.constant 0 : i32
    %c0_i32_0 = arith.constant 0 : i32
    %c0_i32_1 = arith.constant 0 : i32
    return %c0_i32, %c0_i32_0 : i32, i32
  }
  func.func @transform_17(%arg0: i32) -> (i32, i32, i32) {
    %c0_i32 = arith.constant 0 : i32
    %c0_i32_0 = arith.constant 0 : i32
    %c0_i32_1 = arith.constant 0 : i32
    return %arg0, %c0_i32, %c0_i32_0 : i32, i32, i32
  }
  func.func @transform_18(%arg0: i32) -> (i32, i32, i32, i32) {
    %c0_i32 = arith.constant 0 : i32
    %c0_i32_0 = arith.constant 0 : i32
    %c0_i32_1 = arith.constant 0 : i32
    %c0_i32_2 = arith.constant 0 : i32
    return %arg0, %c0_i32, %c0_i32_0, %c0_i32_1 : i32, i32, i32, i32
  }
}

module attributes {stable_mosaic.version = 11 : i64} {
  func.func @_pool_clf_kernel(%arg0: memref<46x64xf32, #tpu.memory_space<vmem>>, %arg1: memref<59x3xf32, #tpu.memory_space<vmem>>, %arg2: memref<1x3xf32, #tpu.memory_space<vmem>>, %arg3: memref<46x3xf32, #tpu.memory_space<vmem>>) attributes {dimension_semantics = [], scalar_prefetch = 0 : i64, scratch_operands = 0 : i64, tpu.core_type = #tpu.core_type<tc>} {
    %c0 = arith.constant 0 : index
    %c0_0 = arith.constant 0 : index
    %0 = vector.load %arg0[%c0, %c0_0] : memref<46x64xf32, #tpu.memory_space<vmem>>, vector<46x64xf32>
    %1 = vector.extract_strided_slice %0 {offsets = [0, 0], sizes = [46, 59], strides = [1, 1]} : vector<46x64xf32> to vector<46x59xf32>
    %2 = vector.extract_strided_slice %0 {offsets = [0, 1], sizes = [46, 59], strides = [1, 1]} : vector<46x64xf32> to vector<46x59xf32>
    %3 = arith.maximumf %1, %2 : vector<46x59xf32>
    %4 = vector.extract_strided_slice %0 {offsets = [0, 2], sizes = [46, 59], strides = [1, 1]} : vector<46x64xf32> to vector<46x59xf32>
    %5 = arith.maximumf %3, %4 : vector<46x59xf32>
    %6 = vector.extract_strided_slice %0 {offsets = [0, 3], sizes = [46, 59], strides = [1, 1]} : vector<46x64xf32> to vector<46x59xf32>
    %7 = arith.maximumf %5, %6 : vector<46x59xf32>
    %8 = vector.extract_strided_slice %0 {offsets = [0, 4], sizes = [46, 59], strides = [1, 1]} : vector<46x64xf32> to vector<46x59xf32>
    %9 = arith.maximumf %7, %8 : vector<46x59xf32>
    %c0_1 = arith.constant 0 : index
    %c0_2 = arith.constant 0 : index
    %10 = vector.load %arg1[%c0_1, %c0_2] : memref<59x3xf32, #tpu.memory_space<vmem>>, vector<59x3xf32>
    %cst = arith.constant dense<0.000000e+00> : vector<46x3xf32>
    %11 = tpu.matmul %9, %10, %cst {dimension_numbers = #tpu.dot_dimension_numbers<[1], [0], [0], [1], [0, 0, 1, 1], [], []>} : vector<46x59xf32>, vector<59x3xf32>, vector<46x3xf32> -> vector<46x3xf32>
    %c0_3 = arith.constant 0 : index
    %c0_4 = arith.constant 0 : index
    %12 = vector.load %arg2[%c0_3, %c0_4] : memref<1x3xf32, #tpu.memory_space<vmem>>, vector<1x3xf32>
    %13 = vector.broadcast %12 : vector<1x3xf32> to vector<46x3xf32>
    %14 = arith.addf %11, %13 : vector<46x3xf32>
    %cst_5 = arith.constant 0.000000e+00 : f32
    %15 = vector.broadcast %cst_5 : f32 to vector<46x3xf32>
    %16 = arith.subf %15, %14 : vector<46x3xf32>
    %17 = math.exp %16 : vector<46x3xf32>
    %cst_6 = arith.constant 1.000000e+00 : f32
    %18 = vector.broadcast %cst_6 : f32 to vector<46x3xf32>
    %19 = arith.addf %18, %17 : vector<46x3xf32>
    %cst_7 = arith.constant 1.000000e+00 : f32
    %20 = vector.broadcast %cst_7 : f32 to vector<46x3xf32>
    %21 = arith.divf %20, %19 : vector<46x3xf32>
    %c0_8 = arith.constant 0 : index
    %c0_9 = arith.constant 0 : index
    %22 = vector.load %arg3[%c0_8, %c0_9] : memref<46x3xf32, #tpu.memory_space<vmem>>, vector<46x3xf32>
    tpu.vector_store %arg3[%c0_8, %c0_9], %21 {strides = array<i32>} : memref<46x3xf32, #tpu.memory_space<vmem>>, vector<46x3xf32>,
    return
  }
}

</mosaic_0001>

<bundles_post_ra>
// kernel: classification_model_forward.7
= control target key start
LH: loop header
LB: loop body
LE: loop exit
PB: predicated region body
PF: predicated region fallthrough
CT: control target
= control target key end

     0   :  { %s405_s14 = smov 126   ;;  %s406_s15 = smov 127   ;;  %vm156_vm0 = vcmask 1042432   ;;  %vm408_vm1 = vmmov 1   ;;  %vm137_vm3 = vcmask 482304   ;;  %vm291_vm4 = vcmask 23552   ;;  %s558_s0 = inlined_call_operand.vmem [shape: f32[46,64], index: 0, kind: input, shape index: {}]   ;;  %s559_s1 = inlined_call_operand.vmem [shape: f32[59,3], index: 1, kind: input, shape index: {}]   ;;  %s560_s2 = inlined_call_operand.vmem [shape: f32[1,3], index: 2, kind: input, shape index: {}]   ;;  %s561_s3 = inlined_call_operand.vmem [shape: f32[46,3], index: 3, kind: output, shape index: {}]  }
   0x1   :  { %v433_v0 = vld [vmem:[%s558_s0 + $0x10] sm:$0xff]  ;;  %v442_v1 = vld [vmem:[%s558_s0 + $0x18] sm:$0xff]  ;;  %v122_v2 = vld [vmem:[%s559_s1] sm:$0xff]  ;;  %s407_s13 = smov 125   ;;  %vm297_vm5 = vcmask 21504  }
   0x2   :  { %54 = vrot.lane.b32.xlu1 %v433_v0, %s405_s14  ;;  %30 = vrot.lane.b32.xlu0 %v433_v0, %s406_s15  ;;  %v123_v3 = vld [vmem:[%s559_s1 + $0x8] sm:$0xff]  ;;  %v124_v5 = vld [vmem:[%s559_s1 + $0x10] sm:$0xff]  ;;  %vm363_vm2 = vmpackc.low %vm156_vm0, %vm408_vm1 }
   0x3   :  { %v350_v4 = vpack.c.bf16 %v123_v3, %v122_v2  ;;  %v125_v6 = vld [vmem:[%s559_s1 + $0x18] sm:$0xff]  ;;  %v463_v8 = vld [vmem:[%s558_s0 + $0x20] sm:$0xff]  ;;  %v127_v11 = vld [vmem:[%s559_s1 + $0x28] sm:$0xff] }
   0x4   :  { %v354_v7 = vpack.c.bf16 %v125_v6, %v124_v5  ;;  %v468_v9 = vld [vmem:[%s558_s0] sm:$0xff]  ;;  %v483_v13 = vld [vmem:[%s558_s0 + $0x8] sm:$0xff]  ;;  %v128_v14 = vld [vmem:[%s559_s1 + $0x30] sm:$0xff] }
   0x5   :  { %368 = vmatprep.subr.bf16.mxu1 %v350_v4  ;;  %351 = vmatprep.subr.bf16.mxu0 %v350_v4  ;;  %v126_v10 = vld [vmem:[%s559_s1 + $0x20] sm:$0xff]  ;;  %v129_v15 = vld [vmem:[%s559_s1 + $0x38] sm:$0x7]  ;;  %v497_v17 = vld [vmem:[%s558_s0 + $0x28] sm:$0x3f]  ;;  %s409_s0 = smov 124  }
   0x6   :  { %56 = vrot.lane.b32.xlu1 %v442_v1, %s405_s14  ;;  %32 = vrot.lane.b32.xlu0 %v442_v1, %s406_s15  ;;  %v358_v12 = vpack.c.bf16 %v127_v11, %v126_v10  ;;  %v362_v16 = vpack.c.bf16 %v129_v15, %v128_v14  ;;  %v303_v2 = vld [vmem:[%s560_s2] ss:$0 sm:$0xff] }
   0x7   :  { %372 = vmatpush3.bf16.msra.mxu1 %v350_v4  ;;  %353 = vmatpush3.bf16.msra.mxu0 %v350_v4 }
   0x8   :  { %369 = vmatprep.subr.bf16.mxu1 %v354_v7  ;;  %355 = vmatprep.subr.bf16.mxu0 %v354_v7 }
   0xa   :  { %34 = vrot.lane.b32.xlu1 %v463_v8, %s406_s15  ;;  %26 = vrot.lane.b32.xlu0 %v468_v9, %s406_s15 }
   0xb   :  { %373 = vmatpush3.bf16.msra.mxu1 %v354_v7  ;;  %357 = vmatpush3.bf16.msra.mxu0 %v354_v7 }
   0xc   :  { %370 = vmatprep.subr.bf16.mxu1 %v358_v12  ;;  %359 = vmatprep.subr.bf16.mxu0 %v358_v12 }
   0xe   :  { %28 = vrot.lane.b32.xlu1 %v483_v13, %s406_s15  ;;  %78 = vrot.lane.b32.xlu0 %v433_v0, %s407_s13 }
   0xf   :  { %374 = vmatpush3.bf16.msra.mxu1 %v358_v12  ;;  %361 = vmatpush3.bf16.msra.mxu0 %v358_v12 }
  0x10   :  { %371 = vmatprep.subr.msk.bf16.mxu1 %vm363_vm2, %v362_v16  ;;  %364 = vmatprep.subr.msk.bf16.mxu0 %vm363_vm2, %v362_v16 }
  0x12   :  { %80 = vrot.lane.b32.xlu1 %v442_v1, %s407_s13  ;;  %36 = vrot.lane.b32.xlu0 %v497_v17, %s406_s15 }
  0x13   :  { %375 = vmatpush3.bf16.msk.msra.mxu1 %vm363_vm2, %v362_v16  ;;  %367 = vmatpush3.bf16.msk.msra.mxu0 %vm363_vm2, %v362_v16 }
  0x16   :  { %58 = vrot.lane.b32.xlu1 %v463_v8, %s405_s14  ;;  %50 = vrot.lane.b32.xlu0 %v468_v9, %s405_s14 }
  0x1a   :  { %52 = vrot.lane.b32.xlu1 %v483_v13, %s405_s14  ;;  %102 = vrot.lane.b32.xlu0 %v433_v0, %s409_s0 }
  0x1e   :  { %104 = vrot.lane.b32.xlu1 %v442_v1, %s409_s0  ;;  %60 = vrot.lane.b32.xlu0 %v497_v17, %s405_s14 }
  0x22   :  { %82 = vrot.lane.b32.xlu1 %v463_v8, %s407_s13  ;;  %74 = vrot.lane.b32.xlu0 %v468_v9, %s407_s13 }
  0x26   :  { %84 = vrot.lane.b32.xlu1 %v497_v17, %s407_s13  ;;  %76 = vrot.lane.b32.xlu0 %v483_v13, %s407_s13 }
  0x2a   :  { %106 = vrot.lane.b32.xlu1 %v463_v8, %s409_s0  ;;  %98 = vrot.lane.b32.xlu0 %v468_v9, %s409_s0 }
  0x2e   :  { %108 = vrot.lane.b32.xlu1 %v497_v17, %s409_s0  ;;  %100 = vrot.lane.b32.xlu0 %v483_v13, %s409_s0 }
  0x74   :  { %v55_v18 = vpop.permute.xlu1 %54  ;;  %v31_v19 = vpop.permute.xlu0 %30 }
  0x75   :  { %v46_v28 = vmax.f32 %v433_v0, %v31_v19 }
  0x77   :  { %v70_v32 = vmax.f32 %v46_v28, %v55_v18 }
  0x78   :  { %v57_v20 = vpop.permute.xlu1 %56  ;;  %v33_v21 = vpop.permute.xlu0 %32 }
  0x79   :  { %v47_v31 = vmax.f32 %v442_v1, %v33_v21 }
  0x7b   :  { %v71_v36 = vmax.f32 %v47_v31, %v57_v20 }
  0x7c   :  { %v35_v22 = vpop.permute.xlu1 %34  ;;  %v27_v23 = vpop.permute.xlu0 %26 }
  0x7d   :  { %v48_v44 = vmax.f32 %v463_v8, %v35_v22  ;;  %v44_v45 = vmax.f32 %v468_v9, %v27_v23 }
  0x80   :  { %v29_v24 = vpop.permute.xlu1 %28  ;;  %v79_v25 = vpop.permute.xlu0 %78 }
  0x81   :  { %v94_v33 = vmax.f32 %v70_v32, %v79_v25  ;;  %v45_v50 = vmax.f32 %v483_v13, %v29_v24 }
  0x84   :  { %v81_v26 = vpop.permute.xlu1 %80  ;;  %v37_v27 = vpop.permute.xlu0 %36 }
  0x85   :  { %v95_v38 = vmax.f32 %v71_v36, %v81_v26  ;;  %v49_v51 = vmax.f32 %v497_v17, %v37_v27 }
  0x88   :  { %v59_v29 = vpop.permute.xlu1 %58  ;;  %v51_v30 = vpop.permute.xlu0 %50 }
  0x89   :  { %v72_v48 = vmax.f32 %v48_v44, %v59_v29  ;;  %v68_v49 = vmax.f32 %v44_v45, %v51_v30 }
  0x8c   :  { %v53_v34 = vpop.permute.xlu1 %52  ;;  %v103_v35 = vpop.permute.xlu0 %102 }
  0x8d   :  { %v118_v37 = vmax.f32 %v94_v33, %v103_v35  ;;  %v69_v56 = vmax.f32 %v45_v50, %v53_v34 }
  0x8f   :  { %344 = vmatprep.mubr.msk.f32.mxu1 %vm137_vm3, %v118_v37 }
  0x90   :  { %v105_v39 = vpop.permute.xlu1 %104  ;;  %v61_v40 = vpop.permute.xlu0 %60 }
  0x91   :  { %v119_v41 = vmax.f32 %v95_v38, %v105_v39  ;;  %v73_v57 = vmax.f32 %v49_v51, %v61_v40 }
  0x93   :  { %345 = vmatmul.mubr.msk.f32.vlgmr.msra.gmra.mrb[0].mxu1 %vm137_vm3, %v119_v41 }
  0x94   :  { %v83_v42 = vpop.permute.xlu1 %82  ;;  %v75_v43 = vpop.permute.xlu0 %74 }
  0x95   :  { %v96_v52 = vmax.f32 %v72_v48, %v83_v42  ;;  %v92_v53 = vmax.f32 %v68_v49, %v75_v43 }
  0x98   :  { %v85_v46 = vpop.permute.xlu1 %84  ;;  %v77_v47 = vpop.permute.xlu0 %76 }
  0x99   :  { %v97_v60 = vmax.f32 %v73_v57, %v85_v46  ;;  %v93_v61 = vmax.f32 %v69_v56, %v77_v47 }
  0x9c   :  { %v107_v54 = vpop.permute.xlu1 %106  ;;  %v99_v55 = vpop.permute.xlu0 %98 }
  0x9d   :  { %v120_v58 = vmax.f32 %v96_v52, %v107_v54  ;;  %v116_v59 = vmax.f32 %v92_v53, %v99_v55 }
  0x9f   :  { %341 = vmatprep.mubr.msk.f32.mxu0 %vm137_vm3, %v116_v59  ;;  %347 = vmatprep.mubr.msk.f32.mxu1 %vm137_vm3, %v120_v58 }
  0xa0   :  { %v109_v62 = vpop.permute.xlu1 %108  ;;  %v101_v63 = vpop.permute.xlu0 %100 }
  0xa1   :  { %v121_v0 = vmax.f32 %v97_v60, %v109_v62  ;;  %v117_v1 = vmax.f32 %v93_v61, %v101_v63 }
  0xa3   :  { %342 = vmatmul.mubr.msk.f32.vlgmr.msra.gmra.mrb[0].mxu0 %vm137_vm3, %v117_v1  ;;  %348 = vmatmul.mubr.msk.f32.gmra.mrb[2].mxu1 %vm137_vm3, %v121_v0 }
 0x166   :  { %v346_v3 = vpop.f32.mrb[0].mxu1 }
 0x167   :  { %v242_v4 = vadd.f32 %v346_v3, %v303_v2  ;;  %v236_v5 = vpop.f32.mrb[1].mxu1 }
 0x168   :  { %v237_v6 = vadd.f32 %v303_v2, %v236_v5 }
 0x169   :  { %v258_v7 = vsub.f32 0.0, %v242_v4 }
 0x16a   :  { %v257_v8 = vsub.f32 0.0, %v237_v6 }
 0x16b   :  { %v267_v9 = vmul.f32 1.442695, %v258_v7 }
 0x16c   :  { %v265_v10 = vmul.f32 1.442695, %v257_v8 }
 0x16d   :  { %381 = vpow2.f32 %v267_v9 }
 0x16e   :  { %383 = vpow2.f32 %v265_v10 }
 0x176   :  { %v343_v11 = vpop.f32.mrb[0].mxu0  ;;  %v349_v12 = vpop.f32.mrb[2].mxu1 }
 0x177   :  { %v382_v13 = vpop.eup %381  ;;  %v232_v14 = vadd.f32 %v343_v11, %v303_v2  ;;  %v252_v15 = vadd.f32 %v349_v12, %v303_v2  ;;  %v226_v16 = vpop.f32.mrb[1].mxu0 }
 0x178   :  { %v246_v17 = vpop.f32.mrb[3].mxu1  ;;  %v384_v18 = vpop.eup %383  ;;  %v276_v19 = vadd.f32 1.0, %v382_v13  ;;  %v227_v20 = vadd.f32 %v303_v2, %v226_v16 }
 0x179   :  { %v247_v21 = vadd.f32 %v303_v2, %v246_v17  ;;  %v275_v22 = vadd.f32 1.0, %v384_v18  ;;  %v256_v23 = vsub.f32 0.0, %v232_v14  ;;  %v260_v24 = vsub.f32 0.0, %v252_v15 }
 0x17a   :  { %385 = vrcp.f32 %v276_v19  ;;  %v255_v25 = vsub.f32 0.0, %v227_v20 }
 0x17b   :  { %v259_v26 = vsub.f32 0.0, %v247_v21  ;;  %387 = vrcp.f32 %v275_v22  ;;  %v263_v27 = vmul.f32 1.442695, %v256_v23  ;;  %v271_v28 = vmul.f32 1.442695, %v260_v24 }
 0x17c   :  { %v261_v29 = vmul.f32 1.442695, %v255_v25 }
 0x17d   :  { %v269_v30 = vmul.f32 1.442695, %v259_v26  ;;  %389 = vpow2.f32 %v263_v27 }
 0x17e   :  { %391 = vpow2.f32 %v271_v28 }
 0x17f   :  { %393 = vpow2.f32 %v261_v29 }
 0x180   :  { %395 = vpow2.f32 %v269_v30 }
 0x184   :  { %v386_v31 = vpop.eup %385 }
 0x185   :  { %v388_v32 = vpop.eup %387  ;;  %295 = vst.msk [vmem:[%s561_s3 + $0x18] sm:$0xff] %vm291_vm4, %v386_v31 }
 0x186   :  { %294 = vst.msk [vmem:[%s561_s3 + $0x10] sm:$0xff] %vm291_vm4, %v388_v32 }
 0x187   :  { %v390_v33 = vpop.eup %389 }
 0x188   :  { %v392_v34 = vpop.eup %391  ;;  %v274_v35 = vadd.f32 1.0, %v390_v33 }
 0x189   :  { %v394_v36 = vpop.eup %393  ;;  %v278_v37 = vadd.f32 1.0, %v392_v34 }
 0x18a   :  { %v396_v38 = vpop.eup %395  ;;  %397 = vrcp.f32 %v274_v35  ;;  %v273_v39 = vadd.f32 1.0, %v394_v36 }
 0x18b   :  { %399 = vrcp.f32 %v278_v37  ;;  %v277_v40 = vadd.f32 1.0, %v396_v38 }
 0x18c   :  { %401 = vrcp.f32 %v273_v39 }
 0x18d   :  { %403 = vrcp.f32 %v277_v40 }
 0x194   :  { %v398_v41 = vpop.eup %397 }
 0x195   :  { %v400_v42 = vpop.eup %399  ;;  %293 = vst.msk [vmem:[%s561_s3 + $0x8] sm:$0xff] %vm291_vm4, %v398_v41 }
 0x196   :  { %v402_v43 = vpop.eup %401  ;;  %298 = vst.msk [vmem:[%s561_s3 + $0x28] sm:$0x3f] %vm297_vm5, %v400_v42 }
 0x197   :  { %v404_v44 = vpop.eup %403  ;;  %292 = vst.msk [vmem:[%s561_s3] sm:$0xff] %vm291_vm4, %v402_v43 }
 0x198   :  { %296 = vst.msk [vmem:[%s561_s3 + $0x20] sm:$0xff] %vm291_vm4, %v404_v44 }

// kernel: classification_model_forward.5
= control target key start
LH: loop header
LB: loop body
LE: loop exit
PB: predicated region body
PF: predicated region fallthrough
CT: control target
= control target key end

     0   :  { %s4085_s0 = inlined_call_operand.vmem [shape: f32[2,8,4], index: 0, kind: input, shape index: {}]   ;;  %s4086_s1 = inlined_call_operand.vmem [shape: f32[4,32], index: 1, kind: input, shape index: {}]   ;;  %s4087_s2 = inlined_call_operand.vmem [shape: f32[8,32], index: 2, kind: input, shape index: {}]   ;;  %s4088_s3 = inlined_call_operand.vmem [shape: f32[4,32,8], index: 3, kind: input, shape index: {}]   ;;  %s4089_s4 = inlined_call_operand.vmem [shape: f32[4,32,8], index: 4, kind: input, shape index: {}]   ;;  %s4090_s5 = inlined_call_operand.vmem [shape: f32[4,32,8], index: 5, kind: input, shape index: {}]   ;;  %s4091_s6 = inlined_call_operand.vmem [shape: f32[4,1,8], index: 6, kind: input, shape index: {}]   ;;  %s4092_s7 = inlined_call_operand.vmem [shape: f32[4,1,8], index: 7, kind: input, shape index: {}]   ;;  %s4093_s8 = inlined_call_operand.vmem [shape: f32[4,1,8], index: 8, kind: input, shape index: {}]   ;;  %s4094_s9 = inlined_call_operand.vmem [shape: f32[4,8,32], index: 9, kind: input, shape index: {}]   ;;  %s4095_s10 = inlined_call_operand.vmem [shape: f32[1,32], index: 10, kind: input, shape index: {}]   ;;  %s4096_s11 = inlined_call_operand.vmem [shape: f32[1,32], index: 11, kind: input, shape index: {}]   ;;  %s4097_s12 = inlined_call_operand.vmem [shape: f32[1,32], index: 12, kind: input, shape index: {}]   ;;  %s4098_s13 = inlined_call_operand.vmem [shape: f32[32,32], index: 13, kind: input, shape index: {}]   ;;  %s4099_s14 = inlined_call_operand.vmem [shape: f32[1,32], index: 14, kind: input, shape index: {}]   ;;  %s4100_s15 = inlined_call_operand.vmem [shape: f32[1,32], index: 15, kind: input, shape index: {}]   ;;  %s4101_s16 = inlined_call_operand.vmem [shape: f32[1,32], index: 16, kind: input, shape index: {}]   ;;  %s4102_s17 = inlined_call_operand.vmem [shape: f32[2,8,32], index: 17, kind: output, shape index: {0}]   ;;  %s4103_s18 = inlined_call_operand.hbm [shape: f32[2,1,8,8], index: 18, kind: output, shape index: {1}]  }
   0x1   :  { %4111 = sst [smem:[#allocation10_spill]] %s4085_s0 }
   0x2   :  { %4112 = sst [smem:[#allocation11_spill]] %s4086_s1 }
   0x3   :  { %4113 = sst [smem:[#allocation12_spill]] %s4087_s2 }
   0x4   :  { %4114 = sst [smem:[#allocation13_spill]] %s4088_s3 }
   0x5   :  { %4115 = sst [smem:[#allocation14_spill]] %s4089_s4 }
   0x6   :  { %4116 = sst [smem:[#allocation15_spill]] %s4090_s5 }
   0x7   :  { %24 = vsyncpa [#allocation3], 0 }
   0x8   :  { %26 = vsyncpa [#allocation3 + $0x1], 0  ;;  %s3573_s27 = smov 0   ;;  %s3575_s28 = smov 0  }
   0x9   :  { %s3577_s29 = smov 0   ;;  %s3579_s30 = smov 0  }
   0xa LB: > { %4117 = sst [smem:[#allocation5_spill]] %s3460_s27  ;;  %s3594_s0 = sadd.s32 4294967295, %s3472_s30   ;;  %s3472_s30 = sphi %s3579_s30, %s4134_s30   ;;  %s3468_s29 = sphi %s3577_s29, %s4136_s29   ;;  %s3464_s28 = sphi %s3575_s28, %s4138_s28   ;;  %s3460_s27 = sphi %s3573_s27, %s4137_s27  }
   0xb   : > { %4118 = sst [smem:[#allocation6_spill]] %s3468_s29  ;;  %s2863_s19 = sadd.s32 4294967294, %s3472_s30  }
   0xc   : > { %s3598_s1 = sadd.s32 1, %s3472_s30   ;;  %s427_s20 = sadd.s32 1, %s3468_s29 }
   0xd   : > { %4119 = sst [smem:[#allocation7_spill]] %s3598_s1  ;;  %s424_s21 = ssub.s32 %s3472_s30, %s3598_s1 }
   0xe   : > { %p437_p0 = scmp.ne.s32.totalorder %s3468_s29, %s3464_s28  ;;  %p425_p1 = scmp.eq.s32.totalorder %s424_s21, 0 }
   0xf   : > { %p438_p2 = scmp.eq.s32.totalorder %s3594_s0, 1  ;;  %p443_p3 = scmp.ne.s32.totalorder %s3464_s28, %s3460_s27 }
  0x10   : > { %p444_p4 = scmp.eq.s32.totalorder %s2863_s19, 1  ;;  %p2866_p7 = scmp.ge.s32.totalorder %s3472_s30, 1 }
  0x11   : > { %s3609_s22 = scalar_select %p425_p1, %s3468_s29, %s427_s20  }
  0x12   : > { %p3611_p5 = por %p438_p2, %p437_p0  ;;  %p3615_p6 = por %p444_p4, %p443_p3 }
  0x13   : > { %4120 = sst [smem:[#allocation8_spill]] %s3609_s22  ;;  %p517_p8 = scmp.lt.s32.totalorder %s3472_s30, 3 }
  0x14   : > { %s4122_s23 = scalar_select %p3615_p6, 1, 0 }
  0x15   : > { %p518_p9 = pnand %p2866_p7, %p517_p8 }
  0x16   : > { %4123 = sst [smem:[#allocation9_spill]] %s4122_s23  ;;  %s4124_s26 = sld [smem:[#allocation11_spill]] (!%p518_p9)  ;;  %vm589_vm0 = vcmask (!%p518_p9), 1043456   ;;  %v3474_v1 = vmov (!%p518_p9), 0.0   ;;  %vm3475_vm1 = vmmov (!%p518_p9), 0   ;;  %v3476_v5 = vmov (!%p518_p9), 0.0|0.0  }
  0x17   : > { %521 = sbr.rel (%p518_p9) target bundleno = 4946 (0x1352), region = 88  ;;  %p574_p10 = scmp.lt.s32.totalorder (!%p518_p9), %s3594_s0, 1  ;;  %3062 = vmatprep.subr.mxu0 (!%p518_p9), %v3474_v1  ;;  %3064 = vmatprep.mubr.msk.f32.mxu0 (!%p518_p9), %vm3475_vm1, %v3474_v1  ;;  %vm585_vm2 = vcmask (!%p518_p9), 31744   ;;  %vm674_vm3 = vcmask (!%p518_p9), 261120   ;;  %v2874_v50 = vld [vmem:[%s4092_s7] ss:$0 sm:$0xff] (!%p518_p9) }
  0x18   : > { %s4125_s3 = sld [smem:[#allocation13_spill]] (!%p518_p9)  ;;  %s4126_s4 = sld [smem:[#allocation14_spill]] (!%p518_p9)  ;;  %3270 = vmatprep.subr.bf16.mxu1 (!%p518_p9), %v3476_v5  ;;  %3075 = vmatprep.mubr.msk.f32.mxu1 (!%p518_p9), %vm3475_vm1, %v3474_v1  ;;  %vm910_vm4 = vcmask (!%p518_p9), 64512   ;;  %v2872_v53 = vld [vmem:[%s4091_s6] ss:$0 sm:$0xff] (!%p518_p9) }
  0x19   : > { %s4127_s1 = sld [smem:[#allocation10_spill]] (!%p518_p9)  ;;  %s4128_s5 = sld [smem:[#allocation15_spill]] (!%p518_p9)  ;;  %v2876_v58 = vld [vmem:[%s4093_s8] ss:$0 sm:$0xff] (!%p518_p9) }
  0x1a   : > { %s4129_s22 = sld [smem:[#allocation12_spill]] (!%p518_p9)  ;;  %s2968_s24 = sshll.u32 (!%p518_p9), %s3594_s0, 7 }
  0x1b   : > { %s4035_s23 = scalar_lea.hbm (!%p518_p9), %s4103_s18, %s2968_s24 }
  0x1c   : > { %v583_v0 = vld [vmem:[%s4124_s26] sm:$0xf] (!%p518_p9) }
  0x1d   : > { %3063 = vmatpush3.msk.msra.mxu0 (!%p518_p9), %vm589_vm0, %v583_v0 }
  0x1e   : > { %v663_v2 = vld [vmem:[%s4125_s3] sm:$0xff]  ;;  %v664_v3 = vld [vmem:[%s4125_s3 + $0x8] sm:$0xff]  ;;  %s3638_s26 = scalar_select %p574_p10, %s3594_s0, 1  ;;  %v665_v8 = vld [vmem:[%s4125_s3 + $0x10] sm:$0xff]  ;;  %3276 = vmatprep.subr.bf16.mxu0 %v3476_v5 }
  0x1f   : > { %v748_v4 = vld [vmem:[%s4126_s4] sm:$0xff]  ;;  %v3271_v6 = vpack.c.bf16 %v664_v3, %v663_v2  ;;  %v749_v7 = vld [vmem:[%s4126_s4 + $0x8] sm:$0xff]  ;;  %v666_v9 = vld [vmem:[%s4125_s3 + $0x18] sm:$0xff] }
  0x20   : > { %s4107_s25 = sshll.u32 %s3638_s26, 3  ;;  %v3277_v10 = vpack.c.bf16 %v749_v7, %v748_v4  ;;  %v3274_v11 = vpack.c.bf16 %v666_v9, %v665_v8  ;;  %v750_v13 = vld [vmem:[%s4126_s4 + $0x10] sm:$0xff]  ;;  %v751_v14 = vld [vmem:[%s4126_s4 + $0x18] sm:$0xff]  ;;  %v829_v16 = vld [vmem:[%s4128_s5] sm:$0xff] }
  0x21   : > { %3272 = vmatpush3.bf16.msra.mxu1 %v3271_v6  ;;  %s577_s20 = scalar_lea.vmem %s4127_s1, %s4107_s25  ;;  %v3280_v15 = vpack.c.bf16 %v751_v14, %v750_v13  ;;  %v830_v17 = vld [vmem:[%s4128_s5 + $0x8] sm:$0xff]  ;;  %v584_v18 = vld [vmem:[%s4129_s22] sm:$0xff]  ;;  %v831_v23 = vld [vmem:[%s4128_s5 + $0x10] sm:$0xff]  ;;  %s4130_s25 = sand.u32 1, %s3464_s28  }
  0x22   : > { %3273 = vmatprep.subr.bf16.mxu1 %v3476_v5  ;;  %v582_v12 = vld [vmem:[%s577_s20] sm:$0xff]  ;;  %v3283_v20 = vpack.c.bf16 %v830_v17, %v829_v16  ;;  %v832_v24 = vld [vmem:[%s4128_s5 + $0x18] sm:$0xff]  ;;  %v2882_v27 = vld [vmem:[%s4125_s3 + $0x28] sm:$0xff]  ;;  %s4110_s20 = sand.u32 1, %s3464_s28  }
  0x23   : > { %3065 = vmatmul.mubr.msk.f32.vlgmr.msra.gmra.mrb[0].mxu0 %vm585_vm2, %v582_v12  ;;  %v3286_v25 = vpack.c.bf16 %v832_v24, %v831_v23  ;;  %v2881_v26 = vld [vmem:[%s4125_s3 + $0x20] sm:$0xff]  ;;  %v2883_v29 = vld [vmem:[%s4125_s3 + $0x30] sm:$0xff]  ;;  %v2884_v30 = vld [vmem:[%s4125_s3 + $0x38] sm:$0xff]  ;;  %s3987_s22 = sshll.u32 %s4110_s20, 3  ;;  %s2764_s20 = scalar_lea.sflag [#allocation3], %s4130_s25 }
  0x24   : > { %3278 = vmatpush3.bf16.msra.mxu0 %v3277_v10  ;;  %3086 = vmatprep.mubr.msk.f32.mxu0 %vm3475_vm1, %v3474_v1  ;;  %v3289_v28 = vpack.c.bf16 %v2882_v27, %v2881_v26  ;;  %v3292_v31 = vpack.c.bf16 %v2884_v30, %v2883_v29  ;;  %v2895_v32 = vld [vmem:[%s4128_s5 + $0x20] sm:$0xff]  ;;  %v2896_v33 = vld [vmem:[%s4128_s5 + $0x28] sm:$0xff]  ;;  %v2897_v35 = vld [vmem:[%s4128_s5 + $0x30] sm:$0xff]  ;;  %s573_s21 = scalar_lea.vmem [#allocation2], %s3987_s22 }
  0x25   : > { %3275 = vmatpush3.bf16.msra.mxu1 %v3274_v11  ;;  %3279 = vmatprep.subr.bf16.mxu0 %v3476_v5  ;;  %v3301_v34 = vpack.c.bf16 %v2896_v33, %v2895_v32  ;;  %v2898_v36 = vld [vmem:[%s4128_s5 + $0x38] sm:$0xff]  ;;  %v2908_v38 = vld [vmem:[%s4125_s3 + $0x40] sm:$0xff]  ;;  %v2909_v39 = vld [vmem:[%s4125_s3 + $0x48] sm:$0xff]  ;;  %s2780_s29 = sshll.u32 %s573_s21, 4  ;;  %s2781_s29 = int_to_ptr.vmem [resolvable:$true] %s2780_s29 }
  0x26   : > { %3282 = vmatprep.subr.bf16.mxu1 %v3476_v5  ;;  %v3304_v37 = vpack.c.bf16 %v2898_v36, %v2897_v35  ;;  %v3307_v40 = vpack.c.bf16 %v2909_v39, %v2908_v38  ;;  %v2910_v41 = vld [vmem:[%s4125_s3 + $0x50] sm:$0xff]  ;;  %v2911_v42 = vld [vmem:[%s4125_s3 + $0x58] sm:$0xff]  ;;  %v2922_v44 = vld [vmem:[%s4128_s5 + $0x40] sm:$0xff]  ;;  %s3410_s19 = scalar_lea.vmem %s2781_s29, 128 }
  0x27   : > { %v3310_v43 = vpack.c.bf16 %v2911_v42, %v2910_v41  ;;  %v2923_v45 = vld [vmem:[%s4128_s5 + $0x48] sm:$0xff]  ;;  %v2924_v47 = vld [vmem:[%s4128_s5 + $0x50] sm:$0xff]  ;;  %v2925_v48 = vld [vmem:[%s4128_s5 + $0x58] sm:$0xff]  ;;  %p3411_p11 = scmp.ne.s32.totalorder %s2781_s29, %s3410_s19 }
  0x28   : > { %3281 = vmatpush3.bf16.msra.mxu0 %v3280_v15  ;;  %v3319_v46 = vpack.c.bf16 %v2923_v45, %v2922_v44  ;;  %v3322_v49 = vpack.c.bf16 %v2925_v48, %v2924_v47  ;;  %v2888_v17 = vld [vmem:[%s4126_s4 + $0x20] sm:$0xff]  ;;  %v2890_v23 = vld [vmem:[%s4126_s4 + $0x30] sm:$0xff]  ;;  %v2891_v24 = vld [vmem:[%s4126_s4 + $0x38] sm:$0xff] }
  0x29   : > { %3100 = vmatprep.subr.mxu0 %v3474_v1  ;;  %v2886_v30 = vld [vmem:[%s4091_s6 + $0x1] ss:$0 sm:$0xff]  ;;  %v2905_v47 = vld [vmem:[%s4094_s9 + $0x8] sm:$0xff]  ;;  %p3412_p12 = pnand %p3411_p11, %p3611_p5 }
  0x2a   : > { %v2900_v33 = vld [vmem:[%s4093_s8 + $0x1] ss:$0 sm:$0xff] }
  0x2b   : > { %v1072_v48 = vld [vmem:[%s4094_s9] sm:$0xff]  ;;  %p3413_p13 = pneg %p3412_p12 }
  0xf6   : > { %v659_v19 = vpop.f32.mrb[0].mxu0 }
  0xf7   : > { %v3680_v21 = vadd.f32 %v659_v19, %v584_v18  ;;  %v3066_v22 = vpop.f32.mrb[1].mxu0  ;;  %v2889_v18 = vld [vmem:[%s4126_s4 + $0x28] sm:$0xff] }
  0xf9   : > { %3076 = vmatmul.mubr.msk.f32.vlgmr.msra.gmra.mrb[0].mxu1 %vm674_vm3, %v3680_v21  ;;  %3087 = vmatmul.mubr.msk.f32.vlgmr.msra.gmra.mrb[2].mxu0 %vm674_vm3, %v3680_v21 }
  0xfa   : > { %3284 = vmatpush3.bf16.msra.mxu1 %v3283_v20  ;;  %3097 = vmatprep.mubr.msk.f32.mxu1 %vm3475_vm1, %v3474_v1  ;;  %v3295_v20 = vpack.c.bf16 %v2889_v18, %v2888_v17  ;;  %v2934_v18 = vld [vmem:[%s4125_s3 + $0x60] sm:$0xff] }
  0xfb   : > { %3285 = vmatprep.subr.bf16.mxu1 %v3476_v5  ;;  %3102 = vmatprep.mubr.msk.f32.mxu0 %vm3475_vm1, %v3474_v1 }
  0xfe   : > { %3287 = vmatpush3.bf16.msra.mxu1 %v3286_v25  ;;  %v3298_v25 = vpack.c.bf16 %v2891_v24, %v2890_v23 }
  0xff   : > { %3288 = vmatprep.subr.bf16.mxu1 %v3476_v5 }
 0x101   : > { %3098 = vmatmul.mubr.msk.f32.vlgmr.msra.gmra.mrb[2].mxu1 %vm674_vm3, %v3680_v21 }
 0x102   : > { %3290 = vmatpush3.bf16.msra.mxu1 %v3289_v28  ;;  %3118 = vmatprep.mubr.msk.f32.mxu1 %vm3475_vm1, %v3474_v1  ;;  %v2893_v28 = vld [vmem:[%s4092_s7 + $0x1] ss:$0 sm:$0xff] }
 0x103   : > { %3291 = vmatprep.subr.bf16.mxu1 %v3476_v5 }
 0x106   : > { %3293 = vmatpush3.bf16.msra.mxu1 %v3292_v31 }
 0x107   : > { %3300 = vmatprep.subr.bf16.mxu1 %v3476_v5 }
 0x109   : > { %3119 = vmatmul.mubr.msk.f32.vlgmr.msra.gmra.mrb[4].mxu1 %vm674_vm3, %v3680_v21 }
 0x10a   : > { %3302 = vmatpush3.bf16.msra.mxu1 %v3301_v34  ;;  %3140 = vmatprep.mubr.msk.f32.mxu1 %vm3475_vm1, %v3474_v1 }
 0x10b   : > { %3303 = vmatprep.subr.bf16.mxu1 %v3476_v5 }
 0x10e   : > { %3305 = vmatpush3.bf16.msra.mxu1 %v3304_v37 }
 0x10f   : > { %3306 = vmatprep.subr.bf16.mxu1 %v3476_v5 }
 0x111   : > { %3141 = vmatmul.mubr.msk.f32.vlgmr.msra.gmra.mrb[6].mxu1 %vm674_vm3, %v3680_v21 }
 0x112   : > { %3308 = vmatpush3.bf16.msra.mxu1 %v3307_v40  ;;  %3171 = vmatprep.mubr.msk.f32.mxu1 %vm3475_vm1, %v3474_v1 }
 0x113   : > { %3309 = vmatprep.subr.bf16.mxu1 %v3476_v5 }
 0x116   : > { %3311 = vmatpush3.bf16.msra.mxu1 %v3310_v43 }
 0x117   : > { %3318 = vmatprep.subr.bf16.mxu1 %v3476_v5 }
 0x119   : > { %3172 = vmatmul.mubr.msk.f32.vlgmr.msra.gmra.mrb[8].mxu1 %vm674_vm3, %v3680_v21 }
 0x11a   : > { %3320 = vmatpush3.bf16.msra.mxu1 %v3319_v46  ;;  %3193 = vmatprep.mubr.msk.f32.mxu1 %vm3475_vm1, %v3474_v1 }
 0x11b   : > { %3321 = vmatprep.subr.bf16.mxu1 %v3476_v5 }
 0x11e   : > { %3323 = vmatpush3.bf16.msra.mxu1 %v3322_v49  ;;  %v2915_v49 = vld [vmem:[%s4126_s4 + $0x40] sm:$0xff] }
 0x11f   : > { %3206 = vmatprep.subr.mxu1 %v3474_v1 }
 0x121   : > { %3194 = vmatmul.mubr.msk.f32.vlgmr.msra.gmra.mrb[10].mxu1 %vm674_vm3, %v3680_v21 }
 0x122   : > { %3208 = vmatprep.mubr.msk.f32.mxu1 %vm3475_vm1, %v3474_v1 }
 0x1cc   : > { %v744_v51 = vpop.f32.mrb[0].mxu1  ;;  %v825_v52 = vpop.f32.mrb[2].mxu0 }
 0x1cd   : > { %v826_v54 = vadd.f32 %v2874_v50, %v825_v52  ;;  %v3077_v55 = vpop.f32.mrb[1].mxu1  ;;  %v3088_v56 = vpop.f32.mrb[3].mxu0  ;;  %v745_v57 = vadd.f32 %v2872_v53, %v744_v51  ;;  %v2916_v50 = vld [vmem:[%s4126_s4 + $0x48] sm:$0xff] }
 0x1ce   : > { %v3313_v53 = vpack.c.bf16 %v2916_v50, %v2915_v49  ;;  %v2918_v55 = vld [vmem:[%s4126_s4 + $0x58] sm:$0xff]  ;;  %v2946_v50 = vld [vmem:[%s4092_s7 + $0x3] ss:$0 sm:$0xff] }
 0x1cf   : > { %3101 = vmatpush3.xpose.msk.msra.mxu0 %vm910_vm4, %v826_v54  ;;  %v2917_v54 = vld [vmem:[%s4126_s4 + $0x50] sm:$0xff] }
 0x1d0   : > { %3105 = vmatprep.subr.mxu0 %v3474_v1  ;;  %v3316_v56 = vpack.c.bf16 %v2918_v55, %v2917_v54  ;;  %v2953_v55 = vld [vmem:[%s4093_s8 + $0x3] ss:$0 sm:$0xff] }
 0x1d2   : > { %3103 = vmatmul.mubr.msk.f32.vlgmr.msra.gmra.mrb[4].mxu0 %vm910_vm4, %v745_v57 }
 0x1d3   : > { %3107 = vmatprep.mubr.msk.f32.mxu0 %vm3475_vm1, %v3474_v1 }
 0x1d4   : > { %v906_v59 = vpop.f32.mrb[2].mxu1 }
 0x1d5   : > { %v907_v60 = vadd.f32 %v2876_v58, %v906_v59  ;;  %v3099_v61 = vpop.f32.mrb[3].mxu1 }
 0x1d7   : > { %3106 = vmatpush3.msra.mxu0 %v907_v60 }
 0x1d8   : > { %3294 = vmatprep.subr.bf16.mxu0 %v3476_v5 }
 0x1dc   : > { %v1152_v62 = vpop.f32.mrb[4].mxu1 }
 0x1dd   : > { %v3120_v63 = vpop.f32.mrb[5].mxu1  ;;  %v1153_v34 = vadd.f32 %v2886_v30, %v1152_v62  ;;  %v2920_v62 = vld [vmem:[%s4092_s7 + $0x2] ss:$0 sm:$0xff] }
 0x1de   : > { %v2948_v30 = vld [vmem:[%s4128_s5 + $0x60] sm:$0xff] }
 0x1e4   : > { %v1318_v0 = vpop.f32.mrb[6].mxu1 }
 0x1e5   : > { %v3142_v2 = vpop.f32.mrb[7].mxu1  ;;  %v1319_v35 = vadd.f32 %v2900_v33, %v1318_v0  ;;  %v2913_v0 = vld [vmem:[%s4091_s6 + $0x2] ss:$0 sm:$0xff]  ;;  %v2951_v33 = vld [vmem:[%s4128_s5 + $0x78] sm:$0xff] }
 0x1ec   : > { %v3789_v3 = vpop.f32.mrb[8].mxu1 }
 0x1ed   : > { %v3173_v4 = vpop.f32.mrb[9].mxu1 }
 0x1f4   : > { %v3791_v6 = vpop.f32.mrb[10].mxu1 }
 0x1f5   : > { %v3195_v7 = vpop.f32.mrb[11].mxu1 }
 0x1f6   : > { %v2927_v7 = vld [vmem:[%s4093_s8 + $0x2] ss:$0 sm:$0xff] }
 0x2a5   : > { %v983_v8 = vpop.f32.mrb[4].mxu0 }
 0x2a6   : > { %v3104_v9 = vpop.f32.mrb[5].mxu0  ;;  %v987_v10 = vsel %vm910_vm4, %v983_v8, -inf }
 0x2a7   : > { %988 = vmax.xlane.f32.xlu0 %v987_v10  ;;  %v1877_v9 = vadd.f32 %v2927_v7, %v3791_v6 }
 0x334   : > { %v989_v11 = vpop.xlane.xlu0 %988 }
 0x335   : > { %v990_v12 = vsub.f32 %v983_v8, %v989_v11  ;;  %v1711_v8 = vadd.f32 %v2913_v0, %v3789_v3 }
 0x337   : > { %v991_v13 = vmul.f32 1.442695, %v990_v12 }
 0x339   : > { %3390 = vpow2.f32 %v991_v13 }
 0x343   : > { %v3391_v14 = vpop.eup %3390 }
 0x344   : > { %v993_v15 = vsel %vm910_vm4, %v3391_v14, 0.0 }
 0x345   : > { %994 = vadd.xlane.f32.xlu0 %v993_v15 }
 0x3d2   : > { %v995_v16 = vpop.xlane.xlu0 %994 }
 0x3d3   : > { %3392 = vrcp.f32 %v995_v16  ;;  %v2932_v16 = vld [vmem:[%s4094_s9 + $0x10] sm:$0xff] }
 0x3d4   : > { %3207 = vmatpush3.msra.mxu1 %v2932_v16 }
 0x3d5   : > { %3330 = vmatprep.subr.bf16.mxu1 %v3476_v5 }
 0x3dd   : > { %v3393_v19 = vpop.eup %3392 }
 0x3de   : > { %v3801_v22 = vmul.f32 %v3393_v19, %v3391_v14  ;;  %v2935_v19 = vld [vmem:[%s4125_s3 + $0x68] sm:$0xff] }
 0x3df   : > { %v3325_v23 = vpack.c.bf16 %v2935_v19, %v2934_v18 }
 0x3e0   : > { %3108 = vmatmul.mubr.msk.f32.vlgmr.msra.gmra.mrb[6].mxu0 %vm910_vm4, %v3801_v22 }
 0x3e1   : > { %3296 = vmatpush3.bf16.msra.mxu0 %v3295_v20  ;;  %3129 = vmatprep.mubr.msk.f32.mxu0 %vm3475_vm1, %v3474_v1 }
 0x3e2   : > { %3297 = vmatprep.subr.bf16.mxu0 %v3476_v5 }
 0x3e5   : > { %3299 = vmatpush3.bf16.msra.mxu0 %v3298_v25  ;;  %v2936_v25 = vld [vmem:[%s4125_s3 + $0x70] sm:$0xff] }
 0x3e6   : > { %3143 = vmatprep.subr.mxu0 %v3474_v1 }
 0x3e8   : > { %3130 = vmatmul.mubr.msk.f32.vlgmr.msra.gmra.mrb[8].mxu0 %vm674_vm3, %v3680_v21 }
 0x3e9   : > { %3145 = vmatprep.mubr.msk.f32.mxu0 %vm3475_vm1, %v3474_v1 }
 0x4b3   : > { %v1068_v26 = vpop.f32.mrb[6].mxu0 }
 0x4b4   : > { %v3109_v27 = vpop.f32.mrb[7].mxu0 }
 0x4bb   : > { %v1235_v29 = vpop.f32.mrb[8].mxu0 }
 0x4bc   : > { %v1236_v31 = vadd.f32 %v2893_v28, %v1235_v29  ;;  %v3131_v32 = vpop.f32.mrb[9].mxu0 }
 0x4bd   : > { %v2950_v32 = vld [vmem:[%s4128_s5 + $0x70] sm:$0xff] }
 0x4be   : > { %3144 = vmatpush3.xpose.msk.msra.mxu0 %vm910_vm4, %v1236_v31  ;;  %v2949_v31 = vld [vmem:[%s4128_s5 + $0x68] sm:$0xff] }
 0x4bf   : > { %3148 = vmatprep.subr.mxu0 %v3474_v1 }
 0x4c1   : > { %3146 = vmatmul.mubr.msk.f32.vlgmr.msra.gmra.mrb[10].mxu0 %vm910_vm4, %v1153_v34  ;;  %v3340_v34 = vpack.c.bf16 %v2951_v33, %v2950_v32  ;;  %v2961_v33 = vld [vmem:[%s4096_s11] ss:$0 sm:$0xff] }
 0x4c2   : > { %3149 = vmatpush3.msra.mxu0 %v1319_v35  ;;  %3150 = vmatprep.mubr.msk.f32.mxu0 %vm3475_vm1, %v3474_v1  ;;  %v2941_v35 = vld [vmem:[%s4126_s4 + $0x60] sm:$0xff] }
 0x4c3   : > { %3153 = vmatprep.subr.mxu0 %v3474_v1 }
 0x594   : > { %v1394_v36 = vpop.f32.mrb[10].mxu0 }
 0x595   : > { %v3147_v37 = vpop.f32.mrb[11].mxu0  ;;  %v1398_v38 = vsel %vm910_vm4, %v1394_v36, -inf }
 0x596   : > { %1399 = vmax.xlane.f32.xlu1 %v1398_v38  ;;  %v2943_v38 = vld [vmem:[%s4126_s4 + $0x70] sm:$0xff] }
 0x623   : > { %v1400_v39 = vpop.xlane.xlu1 %1399 }
 0x624   : > { %v1401_v40 = vsub.f32 %v1394_v36, %v1400_v39  ;;  %v2942_v36 = vld [vmem:[%s4126_s4 + $0x68] sm:$0xff]  ;;  %v2944_v39 = vld [vmem:[%s4126_s4 + $0x78] sm:$0xff] }
 0x625   : > { %v3331_v37 = vpack.c.bf16 %v2942_v36, %v2941_v35 }
 0x626   : > { %v1402_v41 = vmul.f32 1.442695, %v1401_v40 }
 0x628   : > { %3394 = vpow2.f32 %v1402_v41 }
 0x632   : > { %v3395_v42 = vpop.eup %3394 }
 0x633   : > { %v1404_v43 = vsel %vm910_vm4, %v3395_v42, 0.0 }
 0x634   : > { %1405 = vadd.xlane.f32.xlu1 %v1404_v43 }
 0x6c1   : > { %v1406_v44 = vpop.xlane.xlu1 %1405 }
 0x6c2   : > { %3396 = vrcp.f32 %v1406_v44 }
 0x6cc   : > { %v3397_v45 = vpop.eup %3396 }
 0x6cd   : > { %v3836_v46 = vmul.f32 %v3397_v45, %v3395_v42  ;;  %v3334_v42 = vpack.c.bf16 %v2944_v39, %v2943_v38 }
 0x6cf   : > { %3151 = vmatmul.mubr.msk.f32.vlgmr.msra.gmra.mrb[12].mxu0 %vm910_vm4, %v3836_v46  ;;  %v1409_v27 = vadd.f32 %v3836_v46, %v3801_v22  ;;  %v3337_v22 = vpack.c.bf16 %v2949_v31, %v2948_v30 }
 0x6d0   : > { %3154 = vmatpush3.msra.mxu0 %v2905_v47  ;;  %3155 = vmatprep.mubr.msk.f32.mxu0 %vm3475_vm1, %v3474_v1 }
 0x6d1   : > { %3158 = vmatprep.subr.mxu0 %v3474_v1 }
 0x7a2   : > { %v1479_v51 = vpop.f32.mrb[12].mxu0 }
 0x7a3   : > { %v3152_v52 = vpop.f32.mrb[13].mxu0  ;;  %3156 = vmatmul.mubr.msk.f32.vlgmr.msra.gmra.mrb[14].mxu0 %vm910_vm4, %v1479_v51 }
 0x7a4   : > { %3159 = vmatpush3.msra.mxu0 %v1072_v48  ;;  %3160 = vmatprep.mubr.msk.f32.mxu0 %vm3475_vm1, %v3474_v1  ;;  %v2939_v52 = vld [vmem:[%s4091_s6 + $0x3] ss:$0 sm:$0xff] }
 0x7a5   : > { %3312 = vmatprep.subr.bf16.mxu0 %v3476_v5 }
 0x7a7   : > { %3161 = vmatmul.mubr.msk.f32.vlgmr.msra.gmra.mrb[16].mxu0 %vm910_vm4, %v1068_v26  ;;  %v2937_v26 = vld [vmem:[%s4125_s3 + $0x78] sm:$0xff]  ;;  %s3477_s3 = smov [#allocation2]  }
 0x7a8   : > { %3314 = vmatpush3.bf16.msra.mxu0 %v3313_v53  ;;  %3182 = vmatprep.mubr.msk.f32.mxu0 %vm3475_vm1, %v3474_v1  ;;  %v3328_v29 = vpack.c.bf16 %v2937_v26, %v2936_v25  ;;  %v2642_v25 = vld [vmem:[%s4098_s13] sm:$0xff]  ;;  %v2643_v26 = vld [vmem:[%s4098_s13 + $0x8] sm:$0xff]  ;;  %s3414_s4 = sshll.u32 %s3477_s3, 4  ;;  %s3415_s4 = int_to_ptr.vmem [resolvable:$false] %s3414_s4 }
 0x7a9   : > { %3315 = vmatprep.subr.bf16.mxu0 %v3476_v5  ;;  %s3416_s5 = scalar_lea.vmem %s3415_s4, 256  ;;  %p3417_p0 = scmp.lt.s32.totalorder %s2781_s29, %s3415_s4 }
 0x7aa   : > { %p3418_p1 = scmp.lt.s32.totalorder %s3416_s5, %s3410_s19 }
 0x7ac   : > { %3317 = vmatpush3.bf16.msra.mxu0 %v3316_v56  ;;  %p3419_p2 = por %p3418_p1, %p3417_p0 }
 0x7ad   : > { %3196 = vmatprep.subr.mxu0 %v3474_v1 }
 0x7ae   : > { %p3420_p3 = pnand %p3419_p2, %p3413_p13 }
 0x7af   : > { %3183 = vmatmul.mubr.msk.f32.vlgmr.msra.gmra.mrb[18].mxu0 %vm674_vm3, %v3680_v21 }
 0x7b0   : > { %3198 = vmatprep.mubr.msk.f32.mxu0 %vm3475_vm1, %v3474_v1 }
 0x876   : > { %v1554_v57 = vpop.f32.mrb[14].mxu0 }
 0x877   : > { %v3157_v58 = vpop.f32.mrb[15].mxu0 }
 0x87a   : > { %v1627_v59 = vpop.f32.mrb[16].mxu0 }
 0x87b   : > { %v3874_v60 = vadd.f32 %v1627_v59, %v1554_v57  ;;  %v3162_v61 = vpop.f32.mrb[17].mxu0 }
 0x882   : > { %v1793_v63 = vpop.f32.mrb[18].mxu0 }
 0x883   : > { %v1794_v2 = vadd.f32 %v2920_v62, %v1793_v63  ;;  %v3184_v4 = vpop.f32.mrb[19].mxu0 }
 0x884   : > { %v2958_v4 = vld [vmem:[%s4094_s9 + $0x18] sm:$0xff] }
 0x885   : > { %3197 = vmatpush3.xpose.msk.msra.mxu0 %vm910_vm4, %v1794_v2 }
 0x886   : > { %3201 = vmatprep.subr.mxu0 %v3474_v1 }
 0x888   : > { %3199 = vmatmul.mubr.msk.f32.vlgmr.msra.gmra.mrb[20].mxu0 %vm910_vm4, %v1711_v8 }
 0x889   : > { %3202 = vmatpush3.msra.mxu0 %v1877_v9  ;;  %3203 = vmatprep.mubr.msk.f32.mxu0 %vm3475_vm1, %v3474_v1 }
 0x88a   : > { %3324 = vmatprep.subr.bf16.mxu0 %v3476_v5 }
 0x95b   : > { %v1952_v10 = vpop.f32.mrb[20].mxu0 }
 0x95c   : > { %v3200_v11 = vpop.f32.mrb[21].mxu0  ;;  %v1956_v12 = vsel %vm910_vm4, %v1952_v10, -inf }
 0x95d   : > { %1957 = vmax.xlane.f32.xlu0 %v1956_v12 }
 0x9ea   : > { %v1958_v13 = vpop.xlane.xlu0 %1957 }
 0x9eb   : > { %v1959_v14 = vsub.f32 %v1952_v10, %v1958_v13 }
 0x9ed   : > { %v1960_v3 = vmul.f32 1.442695, %v1959_v14 }
 0x9ef   : > { %3398 = vpow2.f32 %v1960_v3  ;;  %v2960_v3 = vld [vmem:[%s4095_s10] ss:$0 sm:$0xff] }
 0x9f9   : > { %v3399_v15 = vpop.eup %3398 }
 0x9fa   : > { %v1962_v6 = vsel %vm910_vm4, %v3399_v15, 0.0 }
 0x9fb   : > { %1963 = vadd.xlane.f32.xlu1 %v1962_v6 }
 0xa88   : > { %v1964_v17 = vpop.xlane.xlu1 %1963 }
 0xa89   : > { %3400 = vrcp.f32 %v1964_v17 }
 0xa93   : > { %v3401_v20 = vpop.eup %3400 }
 0xa94   : > { %v1966_v24 = vmul.f32 %v3401_v20, %v3399_v15 }
 0xa96   : > { %3204 = vmatmul.mubr.msk.f32.vlgmr.msra.gmra.mrb[22].mxu0 %vm910_vm4, %v1966_v24  ;;  %v3914_v28 = vadd.f32 %v1966_v24, %v1409_v27  ;;  %v3343_v27 = vpack.c.bf16 %v2643_v26, %v2642_v25 }
 0xa97   : > { %3326 = vmatpush3.bf16.msra.mxu0 %v3325_v23  ;;  %3219 = vmatprep.mubr.msk.f32.mxu0 %vm3475_vm1, %v3474_v1 }
 0xa98   : > { %3327 = vmatprep.subr.bf16.mxu0 %v3476_v5 }
 0xa9b   : > { %3329 = vmatpush3.bf16.msra.mxu0 %v3328_v29 }
 0xa9c   : > { %3336 = vmatprep.subr.bf16.mxu0 %v3476_v5 }
 0xa9e   : > { %3220 = vmatmul.mubr.msk.f32.vlgmr.msra.gmra.mrb[24].mxu0 %vm674_vm3, %v3680_v21 }
 0xa9f   : > { %3338 = vmatpush3.bf16.msra.mxu0 %v3337_v22  ;;  %3241 = vmatprep.mubr.msk.f32.mxu0 %vm3475_vm1, %v3474_v1 }
 0xaa0   : > { %3339 = vmatprep.subr.bf16.mxu0 %v3476_v5 }
 0xaa3   : > { %3341 = vmatpush3.bf16.msra.mxu0 %v3340_v34  ;;  %v2962_v34 = vld [vmem:[%s4097_s12] ss:$0 sm:$0xff] }
 0xaa4   : > { %3254 = vmatprep.subr.mxu0 %v3474_v1 }
 0xaa6   : > { %3242 = vmatmul.mubr.msk.f32.vlgmr.msra.gmra.mrb[26].mxu0 %vm674_vm3, %v3680_v21 }
 0xaa7   : > { %3256 = vmatprep.mubr.msk.f32.mxu0 %vm3475_vm1, %v3474_v1  ;;  %3255 = vmatpush3.msra.mxu0 %v2958_v4 }
 0xb69   : > { %v2037_v40 = vpop.f32.mrb[22].mxu0 }
 0xb6a   : > { %v3205_v41 = vpop.f32.mrb[23].mxu0  ;;  %3209 = vmatmul.mubr.msk.f32.vlgmr.msra.gmra.mrb[12].mxu1 %vm910_vm4, %v2037_v40 }
 0xb6b   : > { %3332 = vmatpush3.bf16.msra.mxu1 %v3331_v37  ;;  %3230 = vmatprep.mubr.msk.f32.mxu1 %vm3475_vm1, %v3474_v1  ;;  %v2963_v37 = vld [vmem:[%s4099_s14] ss:$0 sm:$0xff] }
 0xb6c   : > { %3333 = vmatprep.subr.bf16.mxu1 %v3476_v5 }
 0xb6f   : > { %3335 = vmatpush3.bf16.msra.mxu1 %v3334_v42 }
 0xb70   : > { %3244 = vmatprep.subr.mxu1 %v3474_v1 }
 0xb71   : > { %v2196_v43 = vpop.f32.mrb[24].mxu0 }
 0xb72   : > { %v3221_v44 = vpop.f32.mrb[25].mxu0  ;;  %3231 = vmatmul.mubr.msk.f32.vlgmr.msra.gmra.mrb[14].mxu1 %vm674_vm3, %v3680_v21  ;;  %v2197_v56 = vadd.f32 %v2939_v52, %v2196_v43 }
 0xb73   : > { %3246 = vmatprep.mubr.msk.f32.mxu1 %vm3475_vm1, %v3474_v1 }
 0xb79   : > { %v2362_v45 = vpop.f32.mrb[26].mxu0 }
 0xb7a   : > { %v3243_v46 = vpop.f32.mrb[27].mxu0  ;;  %v2363_v57 = vadd.f32 %v2953_v55, %v2362_v45 }
 0xc3d   : > { %v2112_v47 = vpop.f32.mrb[12].mxu1 }
 0xc3e   : > { %v2116_v48 = vadd.f32 %v2112_v47, %v3874_v60  ;;  %v3210_v49 = vpop.f32.mrb[13].mxu1 }
 0xc45   : > { %v2279_v51 = vpop.f32.mrb[14].mxu1 }
 0xc46   : > { %v2280_v53 = vadd.f32 %v2946_v50, %v2279_v51  ;;  %v3232_v54 = vpop.f32.mrb[15].mxu1 }
 0xc48   : > { %3245 = vmatpush3.xpose.msk.msra.mxu1 %vm910_vm4, %v2280_v53 }
 0xc49   : > { %3249 = vmatprep.subr.mxu1 %v3474_v1 }
 0xc4b   : > { %3247 = vmatmul.mubr.msk.f32.vlgmr.msra.gmra.mrb[16].mxu1 %vm910_vm4, %v2197_v56 }
 0xc4c   : > { %3250 = vmatpush3.msra.mxu1 %v2363_v57  ;;  %3251 = vmatprep.mubr.msk.f32.mxu1 %vm3475_vm1, %v3474_v1 }
 0xc4d   : > { %3342 = vmatprep.subr.bf16.mxu1 %v3476_v5 }
 0xd1e   : > { %v2438_v58 = vpop.f32.mrb[16].mxu1 }
 0xd1f   : > { %v3248_v59 = vpop.f32.mrb[17].mxu1  ;;  %v2442_v60 = vsel %vm910_vm4, %v2438_v58, -inf }
 0xd20   : > { %2443 = vmax.xlane.f32.xlu0 %v2442_v60 }
 0xdad   : > { %v2444_v61 = vpop.xlane.xlu0 %2443 }
 0xdae   : > { %v2445_v62 = vsub.f32 %v2438_v58, %v2444_v61 }
 0xdb0   : > { %v2446_v63 = vmul.f32 1.442695, %v2445_v62 }
 0xdb2   : > { %3402 = vpow2.f32 %v2446_v63 }
 0xdbc   : > { %v3403_v0 = vpop.eup %3402 }
 0xdbd   : > { %v2448_v2 = vsel %vm910_vm4, %v3403_v0, 0.0 }
 0xdbe   : > { %2449 = vadd.xlane.f32.xlu1 %v2448_v2 }
 0xe4b   : > { %v2450_v7 = vpop.xlane.xlu1 %2449 }
 0xe4c   : > { %3404 = vrcp.f32 %v2450_v7 }
 0xe56   : > { %v3405_v8 = vpop.eup %3404 }
 0xe57   : > { %v2452_v9 = vmul.f32 %v3405_v8, %v3403_v0 }
 0xe59   : > { %3252 = vmatmul.mubr.msk.f32.vlgmr.msra.gmra.mrb[18].mxu1 %vm910_vm4, %v2452_v9  ;;  %v2453_v10 = vadd.f32 %v2452_v9, %v3914_v28  ;;  %v2645_v28 = vld [vmem:[%s4098_s13 + $0x18] sm:$0xff] }
 0xe5a   : > { %3267 = vmatprep.mubr.msk.f32.mxu1 %vm3475_vm1, %v3474_v1  ;;  %3344 = vmatpush3.bf16.msra.mxu1 %v3343_v27 }
 0xe5b   : > { %v2756_v11 = vmul.f32 0.25, %v2453_v10  ;;  %3345 = vmatprep.subr.bf16.mxu1 %v3476_v5 }
 0xe5d   : > { %2757 = vst.msk [vmem:[%s573_s21] sm:$0xff] %vm910_vm4, %v2756_v11 }
 0xf2c   : > { %v2523_v12 = vpop.f32.mrb[18].mxu1 }
 0xf2d   : > { %v3253_v13 = vpop.f32.mrb[19].mxu1  ;;  %3257 = vmatmul.mubr.msk.f32.vlgmr.msra.gmra.mrb[28].mxu0 %vm910_vm4, %v2523_v12 }
0x1000   : > { %v2598_v14 = vpop.f32.mrb[28].mxu0 }
0x1001   : > { %v2602_v15 = vadd.f32 %v2598_v14, %v2116_v48  ;;  %v3258_v6 = vpop.f32.mrb[29].mxu0 }
0x1003   : > { %v2610_v16 = vadd.f32 %v2960_v3, %v2602_v15 }
0x1005   : > { %v2611_v17 = vadd.f32 %v2610_v16, %v3680_v21  ;;  %v2644_v21 = vld [vmem:[%s4098_s13 + $0x10] sm:$0xff] }
0x1006   : > { %v3346_v29 = vpack.c.bf16 %v2645_v28, %v2644_v21 }
0x1007   : > { %v2614_v1 = vsel %vm674_vm3, %v2611_v17, 0.0 }
0x1008   : > { %2615 = vadd.xlane.f32.xlu0 %v2614_v1  ;;  %3347 = vmatpush3.bf16.msra.mxu1 %v3346_v29 }
0x1095   : > { %v2616_v18 = vpop.xlane.xlu0 %2615 }
0x1096   : > { %v2618_v19 = vmul.f32 0.03125, %v2616_v18 }
0x1098   : > { %v2619_v20 = vsub.f32 %v2611_v17, %v2618_v19 }
0x109a   : > { %v2620_v23 = vmul.f32 %v2619_v20, %v2619_v20 }
0x109c   : > { %v2621_v24 = vsel %vm674_vm3, %v2620_v23, 0.0 }
0x109d   : > { %2622 = vadd.xlane.f32.xlu1 %v2621_v24 }
0x112a   : > { %v2623_v30 = vpop.xlane.xlu1 %2622 }
0x112b   : > { %v2624_v31 = vmul.f32 0.03125, %v2623_v30 }
0x112d   : > { %v2625_v22 = vadd.f32 1e-05, %v2624_v31 }
0x112f   : > { %3406 = vrsqrt.f32 %v2625_v22 }
0x1139   : > { %v3407_v32 = vpop.eup %3406 }
0x113a   : > { %v2627_v5 = vmul.f32 %v3407_v32, %v2619_v20 }
0x113c   : > { %v2634_v35 = vmul.f32 %v2961_v33, %v2627_v5 }
0x113e   : > { %v2641_v36 = vadd.f32 %v2962_v34, %v2634_v35 }
0x1140   : > { %3268 = vmatmul.mubr.msk.f32.vlgmr.msra.gmra.mrb[20].mxu1 %vm674_vm3, %v2641_v36 }
0x1213   : > { %v2722_v38 = vpop.f32.mrb[20].mxu1 }
0x1214   : > { %v2723_v39 = vadd.f32 %v2963_v37, %v2722_v38  ;;  %v3269_v40 = vpop.f32.mrb[21].mxu1 }
0x1216   : > { %v2726_v41 = vadd.f32 %v2723_v39, %v2641_v36 }
0x1218   : > { %v2729_v42 = vsel %vm674_vm3, %v2726_v41, 0.0 }
0x1219   : > { %2730 = vadd.xlane.f32.xlu0 %v2729_v42 }
0x12a6   : > { %v2731_v43 = vpop.xlane.xlu0 %2730 }
0x12a7   : > { %v2732_v44 = vmul.f32 0.03125, %v2731_v43 }
0x12a9   : > { %v2733_v45 = vsub.f32 %v2726_v41, %v2732_v44 }
0x12ab   : > { %v2734_v46 = vmul.f32 %v2733_v45, %v2733_v45 }
0x12ad   : > { %v2735_v47 = vsel %vm674_vm3, %v2734_v46, 0.0 }
0x12ae   : > { %2736 = vadd.xlane.f32.xlu1 %v2735_v47 }
0x12af   : > { %3423 = shalt.err (!%p3420_p3)
}
0x12b0   : > { %s3424_s0 = scalar_lea.hbm %s4035_s23, 128  ;;  %s3428_s3 = scalar_lea.hbm %s4103_s18, 256 }
0x12b1   : > { %p3425_p4 = scmp.ne.s32.totalorder %s4035_s23, %s3424_s0  ;;  %p3429_p9 = scmp.lt.u32.totalorder %s4035_s23, %s4103_s18 }
0x12b2   : > { %p3430_p10 = scmp.lt.u32.totalorder %s3428_s3, %s3424_s0  ;;  %p3432_p12 = scmp.lt.u32.totalorder %s3424_s0, %s4035_s23 }
0x12b3   : > { %p3426_p7 = pnand %p3425_p4, %p3611_p5 }
0x12b4   : > { %p3431_p11 = por %p3430_p10, %p3429_p9 }
0x12b5   : > { %p3427_p8 = pneg %p3426_p7 }
0x12b6   : > { %p3433_p13 = por %p3432_p12, %p3431_p11 }
0x12b8   : > { %p3434_p0 = pnand %p3433_p13, %p3427_p8 }
0x12ba   : > { %3437 = shalt.err (!%p3434_p0)
}
0x12bb   : > { %3348 = dma.vmem_to_hbm [thread:$0]  (%p3611_p5), %s2781_s29, 128, %s4035_s23, %s2764_s20   ;;  %v2965_v52 = vld [vmem:[%s4100_s15] ss:$0 sm:$0xff] }
0x12bc   : > { %v2966_v54 = vld [vmem:[%s4101_s16] ss:$0 sm:$0xff]  ;;  %s4131_s19 = sshll.u32 %s3638_s26, 3 }
0x12bd   : > { %s581_s29 = scalar_lea.vmem %s4102_s17, %s4131_s19 }
0x133b   : > { %v2737_v48 = vpop.xlane.xlu1 %2736 }
0x133c   : > { %v2738_v49 = vmul.f32 0.03125, %v2737_v48 }
0x133e   : > { %v2739_v50 = vadd.f32 1e-05, %v2738_v49 }
0x1340   : > { %3408 = vrsqrt.f32 %v2739_v50 }
0x134a   : > { %v3409_v51 = vpop.eup %3408 }
0x134b   : > { %v2741_v53 = vmul.f32 %v3409_v51, %v2733_v45 }
0x134d   : > { %v2748_v55 = vmul.f32 %v2965_v52, %v2741_v53 }
0x134f   : > { %v2755_v56 = vadd.f32 %v2966_v54, %v2748_v55 }
0x1351   : > { %2758 = vst.msk [vmem:[%s581_s29] sm:$0xff] %vm674_vm3, %v2755_v56 }
0x1352 PF: > { %s4132_s23 = sld [smem:[#allocation5_spill]]  ;;  %p3354_p5 = scmp.ge.s32.totalorder %s3472_s30, 2 }
0x1354   : > { %p3351_p1 = pnand %p3354_p5, %p3615_p6 }
0x1358   : > { %s2799_s22 = sand.u32 1, %s4132_s23  }
0x1359   : > { %s2800_s21 = scalar_lea.sflag [#allocation3], %s2799_s22 }
0x135a   : > { %3455 = dma.done.wait (!%p3351_p1), %s2800_s21, 128  }
0x135b   : > { %3457 = vsyncadd (!%p3351_p1), %s2800_s21, 4294967168  ;;  %s4134_s30 = sld [smem:[#allocation7_spill]]  ;;  %s4135_s26 = sld [smem:[#allocation6_spill]] }
0x135c   : > { %s4136_s29 = sld [smem:[#allocation8_spill]]  ;;  %s4137_s27 = smov %s3464_s28 }
0x1361   : > { %p29_p2 = scmp.ge.s32.totalorder %s4134_s30, 4   ;;  %s4138_s28 = smov %s4135_s26 }
0x1363   :  { %31 = sbr.rel (!%p29_p2) target bundleno = 10 (0xa), region = 156 }
0x136a   :  { %2805 = vsyncpa [#allocation3], 1 }
0x136b   :  { %2807 = vsyncpa [#allocation3 + $0x1], 1 }

// kernel: classification_model_forward.4
= control target key start
LH: loop header
LB: loop body
LE: loop exit
PB: predicated region body
PF: predicated region fallthrough
CT: control target
= control target key end

     0   :  { %s3484_s27 = smov 0   ;;  %s3910_s0 = inlined_call_operand.vmem [shape: f32[2,6,1], index: 0, kind: input, shape index: {}]   ;;  %s3911_s1 = inlined_call_operand.vmem [shape: f32[1,32], index: 1, kind: input, shape index: {}]   ;;  %s3912_s2 = inlined_call_operand.vmem [shape: f32[6,32], index: 2, kind: input, shape index: {}]   ;;  %s3913_s3 = inlined_call_operand.vmem [shape: f32[4,32,8], index: 3, kind: input, shape index: {}]   ;;  %s3914_s4 = inlined_call_operand.vmem [shape: f32[4,32,8], index: 4, kind: input, shape index: {}]   ;;  %s3915_s5 = inlined_call_operand.vmem [shape: f32[4,32,8], index: 5, kind: input, shape index: {}]   ;;  %s3916_s6 = inlined_call_operand.vmem [shape: f32[4,1,8], index: 6, kind: input, shape index: {}]   ;;  %s3917_s7 = inlined_call_operand.vmem [shape: f32[4,1,8], index: 7, kind: input, shape index: {}]   ;;  %s3918_s8 = inlined_call_operand.vmem [shape: f32[4,1,8], index: 8, kind: input, shape index: {}]   ;;  %s3919_s9 = inlined_call_operand.vmem [shape: f32[4,8,32], index: 9, kind: input, shape index: {}]   ;;  %s3920_s10 = inlined_call_operand.vmem [shape: f32[1,32], index: 10, kind: input, shape index: {}]   ;;  %s3921_s11 = inlined_call_operand.vmem [shape: f32[1,32], index: 11, kind: input, shape index: {}]   ;;  %s3922_s12 = inlined_call_operand.vmem [shape: f32[1,32], index: 12, kind: input, shape index: {}]   ;;  %s3923_s13 = inlined_call_operand.vmem [shape: f32[32,32], index: 13, kind: input, shape index: {}]   ;;  %s3924_s14 = inlined_call_operand.vmem [shape: f32[1,32], index: 14, kind: input, shape index: {}]   ;;  %s3925_s15 = inlined_call_operand.vmem [shape: f32[1,32], index: 15, kind: input, shape index: {}]   ;;  %s3926_s16 = inlined_call_operand.vmem [shape: f32[1,32], index: 16, kind: input, shape index: {}]   ;;  %s3927_s17 = inlined_call_operand.vmem [shape: f32[2,6,32], index: 17, kind: output, shape index: {0}]   ;;  %s3928_s18 = inlined_call_operand.vmem [shape: f32[2,1,6,6], index: 18, kind: output, shape index: {1}]  }
   0x1   :  { %3929 = sst [smem:[#allocation2_spill]] %s3910_s0 }
   0x2   :  { %3930 = sst [smem:[#allocation3_spill]] %s3911_s1 }
   0x3   :  { %3931 = sst [smem:[#allocation4_spill]] %s3912_s2 }
   0x4 LB: > { %s2859_s28 = sadd.s32 4294967295, %s3384_s27   ;;  %p2863_p0 = scmp.ge.s32.totalorder %s3384_s27, 1  ;;  %s3384_s27 = sphi %s3484_s27, %s29_s27  }
   0x5   : > { %p514_p1 = scmp.lt.s32.totalorder %s3384_s27, 3 }
   0x7   : > { %p515_p2 = pnand %p2863_p0, %p514_p1 }
   0x8   : > { %s3932_s0 = sld [smem:[#allocation3_spill]] (!%p515_p2)  ;;  %vm589_vm0 = vcmask (!%p515_p2), 1040384   ;;  %p570_p3 = scmp.lt.s32.totalorder (!%p515_p2), %s2859_s28, 1  ;;  %v3386_v1 = vmov (!%p515_p2), 0.0   ;;  %vm3387_vm1 = vmmov (!%p515_p2), 0   ;;  %v663_v2 = vld [vmem:[%s3913_s3] sm:$0xff] (!%p515_p2) }
   0x9   : > { %518 = sbr.rel (%p515_p2) target bundleno = 4931 (0x1343), region = 88  ;;  %3061 = vmatprep.subr.mxu0 (!%p515_p2), %v3386_v1  ;;  %3063 = vmatprep.mubr.msk.f32.mxu0 (!%p515_p2), %vm3387_vm1, %v3386_v1  ;;  %v664_v3 = vld [vmem:[%s3913_s3 + $0x8] sm:$0xff] (!%p515_p2)  ;;  %v748_v4 = vld [vmem:[%s3914_s4] sm:$0xff] (!%p515_p2)  ;;  %v3388_v5 = vmov (!%p515_p2), 0.0|0.0   ;;  %v665_v8 = vld [vmem:[%s3913_s3 + $0x10] sm:$0xff] (!%p515_p2)  ;;  %vm585_vm2 = vcmask (!%p515_p2), 7168  }
   0xa   : > { %3269 = vmatprep.subr.bf16.mxu1 (!%p515_p2), %v3388_v5  ;;  %v3270_v6 = vpack.c.bf16 (!%p515_p2), %v664_v3, %v663_v2  ;;  %v749_v7 = vld [vmem:[%s3914_s4 + $0x8] sm:$0xff] (!%p515_p2)  ;;  %v666_v9 = vld [vmem:[%s3913_s3 + $0x18] sm:$0xff] (!%p515_p2)  ;;  %3074 = vmatprep.mubr.msk.f32.mxu1 (!%p515_p2), %vm3387_vm1, %v3386_v1  ;;  %s3933_s20 = sld [smem:[#allocation2_spill]] (!%p515_p2)  ;;  %v750_v13 = vld [vmem:[%s3914_s4 + $0x10] sm:$0xff] (!%p515_p2)  ;;  %s3934_s1 = sld [smem:[#allocation4_spill]] (!%p515_p2)  ;;  %vm674_vm3 = vcmask (!%p515_p2), 261120  }
   0xb   : > { %v3276_v10 = vpack.c.bf16 (!%p515_p2), %v749_v7, %v748_v4  ;;  %v3273_v11 = vpack.c.bf16 (!%p515_p2), %v666_v9, %v665_v8  ;;  %v751_v14 = vld [vmem:[%s3914_s4 + $0x18] sm:$0xff] (!%p515_p2)  ;;  %v829_v16 = vld [vmem:[%s3915_s5] sm:$0xff] (!%p515_p2)  ;;  %v830_v17 = vld [vmem:[%s3915_s5 + $0x8] sm:$0xff] (!%p515_p2)  ;;  %vm910_vm4 = vcmask (!%p515_p2), 64512   ;;  %vm1004_vm5 = vcmask (!%p515_p2), 1045504  }
   0xc   : > { %3271 = vmatpush3.bf16.msra.mxu1 (!%p515_p2), %v3270_v6  ;;  %v3279_v15 = vpack.c.bf16 (!%p515_p2), %v751_v14, %v750_v13  ;;  %v3282_v20 = vpack.c.bf16 (!%p515_p2), %v830_v17, %v829_v16  ;;  %v831_v23 = vld [vmem:[%s3915_s5 + $0x10] sm:$0xff] (!%p515_p2)  ;;  %v832_v24 = vld [vmem:[%s3915_s5 + $0x18] sm:$0xff] (!%p515_p2)  ;;  %v2879_v26 = vld [vmem:[%s3913_s3 + $0x20] sm:$0xff] (!%p515_p2)  ;;  %vm987_vm6 = vcmask (!%p515_p2), 46080   ;;  %vm1000_vm7 = vcmask (!%p515_p2), 48128  }
   0xd   : > { %3272 = vmatprep.subr.bf16.mxu1 (!%p515_p2), %v3388_v5  ;;  %v3285_v25 = vpack.c.bf16 (!%p515_p2), %v832_v24, %v831_v23  ;;  %v2880_v27 = vld [vmem:[%s3913_s3 + $0x28] sm:$0xff] (!%p515_p2)  ;;  %v2881_v29 = vld [vmem:[%s3913_s3 + $0x30] sm:$0xff] (!%p515_p2)  ;;  %v2882_v30 = vld [vmem:[%s3913_s3 + $0x38] sm:$0xff] (!%p515_p2)  ;;  %vm2629_vm8 = vcmask (!%p515_p2), 259072  }
   0xe   : > { %v583_v0 = vld [vmem:[%s3932_s0] sm:$0x1] (!%p515_p2)  ;;  %v3288_v28 = vpack.c.bf16 (!%p515_p2), %v2880_v27, %v2879_v26  ;;  %v3291_v31 = vpack.c.bf16 (!%p515_p2), %v2882_v30, %v2881_v29  ;;  %v2894_v33 = vld [vmem:[%s3915_s5 + $0x28] sm:$0xff] (!%p515_p2)  ;;  %v2895_v35 = vld [vmem:[%s3915_s5 + $0x30] sm:$0xff] (!%p515_p2) }
   0xf   : > { %3062 = vmatpush3.msk.msra.mxu0 (!%p515_p2), %vm589_vm0, %v583_v0  ;;  %v2893_v32 = vld [vmem:[%s3915_s5 + $0x20] sm:$0xff] (!%p515_p2)  ;;  %v2896_v36 = vld [vmem:[%s3915_s5 + $0x38] sm:$0xff] (!%p515_p2)  ;;  %v2908_v39 = vld [vmem:[%s3913_s3 + $0x48] sm:$0xff] (!%p515_p2) }
  0x10   : > { %s3936_s28 = smov (!%p570_p3, %s2859_s28), 1  ;;  %3275 = vmatprep.subr.bf16.mxu0 %v3388_v5  ;;  %3274 = vmatpush3.bf16.msra.mxu1 %v3273_v11  ;;  %v584_v18 = vld [vmem:[%s3934_s1] sm:$0x3f]  ;;  %v3300_v34 = vpack.c.bf16 %v2894_v33, %v2893_v32  ;;  %v3303_v37 = vpack.c.bf16 %v2896_v36, %v2895_v35  ;;  %v2909_v41 = vld [vmem:[%s3913_s3 + $0x50] sm:$0xff]  ;;  %v2910_v42 = vld [vmem:[%s3913_s3 + $0x58] sm:$0xff] }
  0x11   : > { %s3520_s0 = sshll.u32 %s3936_s28, 3  ;;  %3281 = vmatprep.subr.bf16.mxu1 %v3388_v5  ;;  %v2907_v38 = vld [vmem:[%s3913_s3 + $0x40] sm:$0xff]  ;;  %v3309_v43 = vpack.c.bf16 %v2910_v42, %v2909_v41  ;;  %v2922_v45 = vld [vmem:[%s3915_s5 + $0x48] sm:$0xff]  ;;  %v2923_v47 = vld [vmem:[%s3915_s5 + $0x50] sm:$0xff] }
  0x12   : > { %s573_s21 = scalar_lea.vmem %s3933_s20, %s3520_s0  ;;  %v3306_v40 = vpack.c.bf16 %v2908_v39, %v2907_v38  ;;  %v2921_v44 = vld [vmem:[%s3915_s5 + $0x40] sm:$0xff]  ;;  %v2924_v48 = vld [vmem:[%s3915_s5 + $0x58] sm:$0xff]  ;;  %v2888_v23 = vld [vmem:[%s3914_s4 + $0x30] sm:$0xff]  ;;  %s581_s24 = scalar_lea.vmem %s3928_s18, %s3520_s0 }
  0x13   : > { %v582_v12 = vld [vmem:[%s573_s21] sm:$0x3f]  ;;  %v3318_v46 = vpack.c.bf16 %v2922_v45, %v2921_v44  ;;  %v3321_v49 = vpack.c.bf16 %v2924_v48, %v2923_v47  ;;  %v2889_v24 = vld [vmem:[%s3914_s4 + $0x38] sm:$0xff]  ;;  %v2904_v47 = vld [vmem:[%s3919_s9 + $0x8] sm:$0xff]  ;;  %s577_s22 = scalar_lea.vmem %s3927_s17, %s3520_s0 }
  0x14   : > { %3064 = vmatmul.mubr.msk.f32.vlgmr.msra.gmra.mrb[0].mxu0 %vm585_vm2, %v582_v12  ;;  %v2871_v50 = vld [vmem:[%s3917_s7] ss:$0 sm:$0xff]  ;;  %v2884_v30 = vld [vmem:[%s3916_s6 + $0x1] ss:$0 sm:$0xff] }
  0x15   : > { %3277 = vmatpush3.bf16.msra.mxu0 %v3276_v10  ;;  %3085 = vmatprep.mubr.msk.f32.mxu0 %vm3387_vm1, %v3386_v1  ;;  %v2869_v53 = vld [vmem:[%s3916_s6] ss:$0 sm:$0xff]  ;;  %v2898_v33 = vld [vmem:[%s3918_s8 + $0x1] ss:$0 sm:$0xff] }
  0x16   : > { %3278 = vmatprep.subr.bf16.mxu0 %v3388_v5  ;;  %v2873_v58 = vld [vmem:[%s3918_s8] ss:$0 sm:$0xff] }
  0x17   : > { %v2886_v17 = vld [vmem:[%s3914_s4 + $0x20] sm:$0xff] }
  0x18   : > { %v1078_v48 = vld [vmem:[%s3919_s9] sm:$0xff] }
  0x19   : > { %3280 = vmatpush3.bf16.msra.mxu0 %v3279_v15 }
  0x1a   : > { %3099 = vmatprep.subr.mxu0 %v3386_v1 }
  0xe7   : > { %v659_v19 = vpop.f32.mrb[0].mxu0 }
  0xe8   : > { %v3547_v21 = vadd.f32 %v659_v19, %v584_v18  ;;  %v3065_v22 = vpop.f32.mrb[1].mxu0  ;;  %v2887_v18 = vld [vmem:[%s3914_s4 + $0x28] sm:$0xff] }
  0xea   : > { %3075 = vmatmul.mubr.msk.f32.vlgmr.msra.gmra.mrb[0].mxu1 %vm674_vm3, %v3547_v21  ;;  %3086 = vmatmul.mubr.msk.f32.vlgmr.msra.gmra.mrb[2].mxu0 %vm674_vm3, %v3547_v21 }
  0xeb   : > { %3283 = vmatpush3.bf16.msra.mxu1 %v3282_v20  ;;  %3096 = vmatprep.mubr.msk.f32.mxu1 %vm3387_vm1, %v3386_v1  ;;  %v3294_v20 = vpack.c.bf16 %v2887_v18, %v2886_v17  ;;  %v2934_v18 = vld [vmem:[%s3913_s3 + $0x60] sm:$0xff] }
  0xec   : > { %3284 = vmatprep.subr.bf16.mxu1 %v3388_v5  ;;  %3101 = vmatprep.mubr.msk.f32.mxu0 %vm3387_vm1, %v3386_v1 }
  0xef   : > { %3286 = vmatpush3.bf16.msra.mxu1 %v3285_v25  ;;  %v3297_v25 = vpack.c.bf16 %v2889_v24, %v2888_v23 }
  0xf0   : > { %3287 = vmatprep.subr.bf16.mxu1 %v3388_v5 }
  0xf2   : > { %3097 = vmatmul.mubr.msk.f32.vlgmr.msra.gmra.mrb[2].mxu1 %vm674_vm3, %v3547_v21 }
  0xf3   : > { %3289 = vmatpush3.bf16.msra.mxu1 %v3288_v28  ;;  %3117 = vmatprep.mubr.msk.f32.mxu1 %vm3387_vm1, %v3386_v1  ;;  %v2891_v28 = vld [vmem:[%s3917_s7 + $0x1] ss:$0 sm:$0xff] }
  0xf4   : > { %3290 = vmatprep.subr.bf16.mxu1 %v3388_v5 }
  0xf7   : > { %3292 = vmatpush3.bf16.msra.mxu1 %v3291_v31 }
  0xf8   : > { %3299 = vmatprep.subr.bf16.mxu1 %v3388_v5 }
  0xfa   : > { %3118 = vmatmul.mubr.msk.f32.vlgmr.msra.gmra.mrb[4].mxu1 %vm674_vm3, %v3547_v21 }
  0xfb   : > { %3301 = vmatpush3.bf16.msra.mxu1 %v3300_v34  ;;  %3139 = vmatprep.mubr.msk.f32.mxu1 %vm3387_vm1, %v3386_v1 }
  0xfc   : > { %3302 = vmatprep.subr.bf16.mxu1 %v3388_v5 }
  0xff   : > { %3304 = vmatpush3.bf16.msra.mxu1 %v3303_v37 }
 0x100   : > { %3305 = vmatprep.subr.bf16.mxu1 %v3388_v5 }
 0x102   : > { %3140 = vmatmul.mubr.msk.f32.vlgmr.msra.gmra.mrb[6].mxu1 %vm674_vm3, %v3547_v21 }
 0x103   : > { %3307 = vmatpush3.bf16.msra.mxu1 %v3306_v40  ;;  %3170 = vmatprep.mubr.msk.f32.mxu1 %vm3387_vm1, %v3386_v1 }
 0x104   : > { %3308 = vmatprep.subr.bf16.mxu1 %v3388_v5 }
 0x107   : > { %3310 = vmatpush3.bf16.msra.mxu1 %v3309_v43 }
 0x108   : > { %3317 = vmatprep.subr.bf16.mxu1 %v3388_v5 }
 0x10a   : > { %3171 = vmatmul.mubr.msk.f32.vlgmr.msra.gmra.mrb[8].mxu1 %vm674_vm3, %v3547_v21 }
 0x10b   : > { %3319 = vmatpush3.bf16.msra.mxu1 %v3318_v46  ;;  %3192 = vmatprep.mubr.msk.f32.mxu1 %vm3387_vm1, %v3386_v1 }
 0x10c   : > { %3320 = vmatprep.subr.bf16.mxu1 %v3388_v5 }
 0x10f   : > { %3322 = vmatpush3.bf16.msra.mxu1 %v3321_v49  ;;  %v2914_v49 = vld [vmem:[%s3914_s4 + $0x40] sm:$0xff] }
 0x110   : > { %3205 = vmatprep.subr.mxu1 %v3386_v1 }
 0x112   : > { %3193 = vmatmul.mubr.msk.f32.vlgmr.msra.gmra.mrb[10].mxu1 %vm674_vm3, %v3547_v21 }
 0x113   : > { %3207 = vmatprep.mubr.msk.f32.mxu1 %vm3387_vm1, %v3386_v1 }
 0x1bd   : > { %v744_v51 = vpop.f32.mrb[0].mxu1  ;;  %v825_v52 = vpop.f32.mrb[2].mxu0 }
 0x1be   : > { %v826_v54 = vadd.f32 %v2871_v50, %v825_v52  ;;  %v3076_v55 = vpop.f32.mrb[1].mxu1  ;;  %v3087_v56 = vpop.f32.mrb[3].mxu0  ;;  %v745_v57 = vadd.f32 %v2869_v53, %v744_v51  ;;  %v2915_v50 = vld [vmem:[%s3914_s4 + $0x48] sm:$0xff] }
 0x1bf   : > { %v3312_v53 = vpack.c.bf16 %v2915_v50, %v2914_v49  ;;  %v2917_v55 = vld [vmem:[%s3914_s4 + $0x58] sm:$0xff]  ;;  %v2946_v50 = vld [vmem:[%s3917_s7 + $0x3] ss:$0 sm:$0xff] }
 0x1c0   : > { %3100 = vmatpush3.xpose.msk.msra.mxu0 %vm910_vm4, %v826_v54  ;;  %v2916_v54 = vld [vmem:[%s3914_s4 + $0x50] sm:$0xff] }
 0x1c1   : > { %3104 = vmatprep.subr.mxu0 %v3386_v1  ;;  %v3315_v56 = vpack.c.bf16 %v2917_v55, %v2916_v54  ;;  %v2953_v55 = vld [vmem:[%s3918_s8 + $0x3] ss:$0 sm:$0xff] }
 0x1c3   : > { %3102 = vmatmul.mubr.msk.f32.vlgmr.msra.gmra.mrb[4].mxu0 %vm910_vm4, %v745_v57 }
 0x1c4   : > { %3106 = vmatprep.mubr.msk.f32.mxu0 %vm3387_vm1, %v3386_v1 }
 0x1c5   : > { %v906_v59 = vpop.f32.mrb[2].mxu1 }
 0x1c6   : > { %v907_v60 = vadd.f32 %v2873_v58, %v906_v59  ;;  %v3098_v61 = vpop.f32.mrb[3].mxu1 }
 0x1c8   : > { %3105 = vmatpush3.msk.msra.mxu0 %vm1004_vm5, %v907_v60 }
 0x1c9   : > { %3293 = vmatprep.subr.bf16.mxu0 %v3388_v5 }
 0x1cd   : > { %v1158_v62 = vpop.f32.mrb[4].mxu1 }
 0x1ce   : > { %v3119_v63 = vpop.f32.mrb[5].mxu1  ;;  %v1159_v34 = vadd.f32 %v2884_v30, %v1158_v62  ;;  %v2919_v62 = vld [vmem:[%s3917_s7 + $0x2] ss:$0 sm:$0xff]  ;;  %v2949_v30 = vld [vmem:[%s3915_s5 + $0x68] sm:$0xff] }
 0x1d5   : > { %v1324_v0 = vpop.f32.mrb[6].mxu1 }
 0x1d6   : > { %v3141_v2 = vpop.f32.mrb[7].mxu1  ;;  %v1325_v35 = vadd.f32 %v2898_v33, %v1324_v0  ;;  %v2912_v0 = vld [vmem:[%s3916_s6 + $0x2] ss:$0 sm:$0xff]  ;;  %v2951_v33 = vld [vmem:[%s3915_s5 + $0x78] sm:$0xff] }
 0x1dd   : > { %v3657_v3 = vpop.f32.mrb[8].mxu1 }
 0x1de   : > { %v3172_v4 = vpop.f32.mrb[9].mxu1 }
 0x1e5   : > { %v3659_v6 = vpop.f32.mrb[10].mxu1 }
 0x1e6   : > { %v3194_v7 = vpop.f32.mrb[11].mxu1 }
 0x1e7   : > { %v2926_v7 = vld [vmem:[%s3918_s8 + $0x2] ss:$0 sm:$0xff] }
 0x296   : > { %v983_v8 = vpop.f32.mrb[4].mxu0 }
 0x297   : > { %v3103_v9 = vpop.f32.mrb[5].mxu0  ;;  %v988_v10 = vsel %vm987_vm6, %v983_v8, -inf }
 0x298   : > { %989 = vmax.xlane.f32.xlu0 %v988_v10  ;;  %v1886_v9 = vadd.f32 %v2926_v7, %v3659_v6 }
 0x325   : > { %v990_v11 = vpop.xlane.xlu0 %989 }
 0x326   : > { %v991_v12 = vsub.f32 %v983_v8, %v990_v11  ;;  %v1720_v8 = vadd.f32 %v2912_v0, %v3657_v3 }
 0x328   : > { %v992_v13 = vmul.f32 1.442695, %v991_v12 }
 0x32a   : > { %3358 = vpow2.f32 %v992_v13 }
 0x334   : > { %v3359_v14 = vpop.eup %3358 }
 0x335   : > { %v994_v15 = vsel %vm987_vm6, %v3359_v14, 0.0 }
 0x336   : > { %995 = vadd.xlane.f32.xlu0 %v994_v15 }
 0x3c3   : > { %v996_v16 = vpop.xlane.xlu0 %995 }
 0x3c4   : > { %3360 = vrcp.f32 %v996_v16  ;;  %v2932_v16 = vld [vmem:[%s3919_s9 + $0x10] sm:$0xff] }
 0x3c5   : > { %3206 = vmatpush3.msra.mxu1 %v2932_v16 }
 0x3c6   : > { %3329 = vmatprep.subr.bf16.mxu1 %v3388_v5 }
 0x3ce   : > { %v3361_v19 = vpop.eup %3360 }
 0x3cf   : > { %v3669_v22 = vmul.f32 %v3361_v19, %v3359_v14  ;;  %v2935_v19 = vld [vmem:[%s3913_s3 + $0x68] sm:$0xff] }
 0x3d0   : > { %v3324_v23 = vpack.c.bf16 %v2935_v19, %v2934_v18 }
 0x3d1   : > { %3107 = vmatmul.mubr.msk.f32.vlgmr.msra.gmra.mrb[6].mxu0 %vm1000_vm7, %v3669_v22 }
 0x3d2   : > { %3295 = vmatpush3.bf16.msra.mxu0 %v3294_v20  ;;  %3128 = vmatprep.mubr.msk.f32.mxu0 %vm3387_vm1, %v3386_v1 }
 0x3d3   : > { %3296 = vmatprep.subr.bf16.mxu0 %v3388_v5 }
 0x3d6   : > { %3298 = vmatpush3.bf16.msra.mxu0 %v3297_v25 }
 0x3d7   : > { %3142 = vmatprep.subr.mxu0 %v3386_v1 }
 0x3d9   : > { %3129 = vmatmul.mubr.msk.f32.vlgmr.msra.gmra.mrb[8].mxu0 %vm674_vm3, %v3547_v21 }
 0x3da   : > { %3144 = vmatprep.mubr.msk.f32.mxu0 %vm3387_vm1, %v3386_v1 }
 0x4a4   : > { %v1074_v26 = vpop.f32.mrb[6].mxu0 }
 0x4a5   : > { %v3108_v27 = vpop.f32.mrb[7].mxu0 }
 0x4a6   : > { %v2937_v27 = vld [vmem:[%s3913_s3 + $0x78] sm:$0xff] }
 0x4ac   : > { %v1241_v29 = vpop.f32.mrb[8].mxu0 }
 0x4ad   : > { %v1242_v31 = vadd.f32 %v2891_v28, %v1241_v29  ;;  %v3130_v32 = vpop.f32.mrb[9].mxu0 }
 0x4ae   : > { %v2950_v32 = vld [vmem:[%s3915_s5 + $0x70] sm:$0xff] }
 0x4af   : > { %3143 = vmatpush3.xpose.msk.msra.mxu0 %vm910_vm4, %v1242_v31 }
 0x4b0   : > { %3147 = vmatprep.subr.mxu0 %v3386_v1 }
 0x4b2   : > { %3145 = vmatmul.mubr.msk.f32.vlgmr.msra.gmra.mrb[10].mxu0 %vm910_vm4, %v1159_v34  ;;  %v3339_v34 = vpack.c.bf16 %v2951_v33, %v2950_v32  ;;  %v2962_v33 = vld [vmem:[%s3921_s11] ss:$0 sm:$0xff] }
 0x4b3   : > { %3148 = vmatpush3.msk.msra.mxu0 %vm1004_vm5, %v1325_v35  ;;  %3149 = vmatprep.mubr.msk.f32.mxu0 %vm3387_vm1, %v3386_v1  ;;  %v2941_v35 = vld [vmem:[%s3914_s4 + $0x60] sm:$0xff] }
 0x4b4   : > { %3152 = vmatprep.subr.mxu0 %v3386_v1 }
 0x585   : > { %v1400_v36 = vpop.f32.mrb[10].mxu0 }
 0x586   : > { %v3146_v37 = vpop.f32.mrb[11].mxu0  ;;  %v1404_v38 = vsel %vm987_vm6, %v1400_v36, -inf }
 0x587   : > { %1405 = vmax.xlane.f32.xlu1 %v1404_v38  ;;  %v2943_v38 = vld [vmem:[%s3914_s4 + $0x70] sm:$0xff] }
 0x614   : > { %v1406_v39 = vpop.xlane.xlu1 %1405 }
 0x615   : > { %v1407_v40 = vsub.f32 %v1400_v36, %v1406_v39  ;;  %v2942_v36 = vld [vmem:[%s3914_s4 + $0x68] sm:$0xff]  ;;  %v2944_v39 = vld [vmem:[%s3914_s4 + $0x78] sm:$0xff] }
 0x616   : > { %v3330_v37 = vpack.c.bf16 %v2942_v36, %v2941_v35 }
 0x617   : > { %v1408_v41 = vmul.f32 1.442695, %v1407_v40 }
 0x619   : > { %3362 = vpow2.f32 %v1408_v41 }
 0x623   : > { %v3363_v42 = vpop.eup %3362 }
 0x624   : > { %v1410_v43 = vsel %vm987_vm6, %v3363_v42, 0.0 }
 0x625   : > { %1411 = vadd.xlane.f32.xlu1 %v1410_v43 }
 0x6b2   : > { %v1412_v44 = vpop.xlane.xlu1 %1411 }
 0x6b3   : > { %3364 = vrcp.f32 %v1412_v44 }
 0x6bd   : > { %v3365_v45 = vpop.eup %3364 }
 0x6be   : > { %v3705_v46 = vmul.f32 %v3365_v45, %v3363_v42  ;;  %v3333_v42 = vpack.c.bf16 %v2944_v39, %v2943_v38 }
 0x6c0   : > { %3150 = vmatmul.mubr.msk.f32.vlgmr.msra.gmra.mrb[12].mxu0 %vm1000_vm7, %v3705_v46  ;;  %v1415_v24 = vadd.f32 %v3705_v46, %v3669_v22  ;;  %v2948_v22 = vld [vmem:[%s3915_s5 + $0x60] sm:$0xff] }
 0x6c1   : > { %3153 = vmatpush3.msra.mxu0 %v2904_v47  ;;  %3154 = vmatprep.mubr.msk.f32.mxu0 %vm3387_vm1, %v3386_v1  ;;  %v3336_v31 = vpack.c.bf16 %v2949_v30, %v2948_v22 }
 0x6c2   : > { %3157 = vmatprep.subr.mxu0 %v3386_v1 }
 0x793   : > { %v1488_v51 = vpop.f32.mrb[12].mxu0 }
 0x794   : > { %v3151_v52 = vpop.f32.mrb[13].mxu0  ;;  %3155 = vmatmul.mubr.msk.f32.vlgmr.msra.gmra.mrb[14].mxu0 %vm910_vm4, %v1488_v51 }
 0x795   : > { %3158 = vmatpush3.msra.mxu0 %v1078_v48  ;;  %3159 = vmatprep.mubr.msk.f32.mxu0 %vm3387_vm1, %v3386_v1  ;;  %v2939_v52 = vld [vmem:[%s3916_s6 + $0x3] ss:$0 sm:$0xff] }
 0x796   : > { %3311 = vmatprep.subr.bf16.mxu0 %v3388_v5 }
 0x798   : > { %3160 = vmatmul.mubr.msk.f32.vlgmr.msra.gmra.mrb[16].mxu0 %vm910_vm4, %v1074_v26  ;;  %v2936_v26 = vld [vmem:[%s3913_s3 + $0x70] sm:$0xff] }
 0x799   : > { %3313 = vmatpush3.bf16.msra.mxu0 %v3312_v53  ;;  %3181 = vmatprep.mubr.msk.f32.mxu0 %vm3387_vm1, %v3386_v1  ;;  %v3327_v29 = vpack.c.bf16 %v2937_v27, %v2936_v26  ;;  %v2659_v26 = vld [vmem:[%s3923_s13 + $0x8] sm:$0xff] }
 0x79a   : > { %3314 = vmatprep.subr.bf16.mxu0 %v3388_v5 }
 0x79d   : > { %3316 = vmatpush3.bf16.msra.mxu0 %v3315_v56 }
 0x79e   : > { %3195 = vmatprep.subr.mxu0 %v3386_v1 }
 0x7a0   : > { %3182 = vmatmul.mubr.msk.f32.vlgmr.msra.gmra.mrb[18].mxu0 %vm674_vm3, %v3547_v21 }
 0x7a1   : > { %3197 = vmatprep.mubr.msk.f32.mxu0 %vm3387_vm1, %v3386_v1 }
 0x867   : > { %v1563_v57 = vpop.f32.mrb[14].mxu0 }
 0x868   : > { %v3156_v58 = vpop.f32.mrb[15].mxu0 }
 0x86b   : > { %v1636_v59 = vpop.f32.mrb[16].mxu0 }
 0x86c   : > { %v3743_v60 = vadd.f32 %v1636_v59, %v1563_v57  ;;  %v3161_v61 = vpop.f32.mrb[17].mxu0 }
 0x873   : > { %v1802_v63 = vpop.f32.mrb[18].mxu0 }
 0x874   : > { %v1803_v2 = vadd.f32 %v2919_v62, %v1802_v63  ;;  %v3183_v4 = vpop.f32.mrb[19].mxu0 }
 0x875   : > { %v2959_v4 = vld [vmem:[%s3919_s9 + $0x18] sm:$0xff] }
 0x876   : > { %3196 = vmatpush3.xpose.msk.msra.mxu0 %vm910_vm4, %v1803_v2 }
 0x877   : > { %3200 = vmatprep.subr.mxu0 %v3386_v1 }
 0x879   : > { %3198 = vmatmul.mubr.msk.f32.vlgmr.msra.gmra.mrb[20].mxu0 %vm910_vm4, %v1720_v8 }
 0x87a   : > { %3201 = vmatpush3.msk.msra.mxu0 %vm1004_vm5, %v1886_v9  ;;  %3202 = vmatprep.mubr.msk.f32.mxu0 %vm3387_vm1, %v3386_v1 }
 0x87b   : > { %3323 = vmatprep.subr.bf16.mxu0 %v3388_v5 }
 0x94c   : > { %v1961_v10 = vpop.f32.mrb[20].mxu0 }
 0x94d   : > { %v3199_v11 = vpop.f32.mrb[21].mxu0  ;;  %v1965_v12 = vsel %vm987_vm6, %v1961_v10, -inf }
 0x94e   : > { %1966 = vmax.xlane.f32.xlu0 %v1965_v12 }
 0x9db   : > { %v1967_v13 = vpop.xlane.xlu0 %1966 }
 0x9dc   : > { %v1968_v3 = vsub.f32 %v1961_v10, %v1967_v13 }
 0x9de   : > { %v1969_v14 = vmul.f32 1.442695, %v1968_v3 }
 0x9e0   : > { %3366 = vpow2.f32 %v1969_v14  ;;  %v2961_v14 = vld [vmem:[%s3920_s10] ss:$0 sm:$0xff] }
 0x9ea   : > { %v3367_v15 = vpop.eup %3366 }
 0x9eb   : > { %v1971_v6 = vsel %vm987_vm6, %v3367_v15, 0.0 }
 0x9ec   : > { %1972 = vadd.xlane.f32.xlu1 %v1971_v6 }
 0xa79   : > { %v1973_v17 = vpop.xlane.xlu1 %1972 }
 0xa7a   : > { %3368 = vrcp.f32 %v1973_v17 }
 0xa84   : > { %v3369_v20 = vpop.eup %3368 }
 0xa85   : > { %v1975_v25 = vmul.f32 %v3369_v20, %v3367_v15 }
 0xa87   : > { %v3783_v28 = vadd.f32 %v1975_v25, %v1415_v24  ;;  %3203 = vmatmul.mubr.msk.f32.vlgmr.msra.gmra.mrb[22].mxu0 %vm1000_vm7, %v1975_v25  ;;  %v2658_v25 = vld [vmem:[%s3923_s13] sm:$0xff] }
 0xa88   : > { %3325 = vmatpush3.bf16.msra.mxu0 %v3324_v23  ;;  %3218 = vmatprep.mubr.msk.f32.mxu0 %vm3387_vm1, %v3386_v1  ;;  %v3342_v27 = vpack.c.bf16 %v2659_v26, %v2658_v25 }
 0xa89   : > { %3326 = vmatprep.subr.bf16.mxu0 %v3388_v5 }
 0xa8c   : > { %3328 = vmatpush3.bf16.msra.mxu0 %v3327_v29 }
 0xa8d   : > { %3335 = vmatprep.subr.bf16.mxu0 %v3388_v5 }
 0xa8f   : > { %3219 = vmatmul.mubr.msk.f32.vlgmr.msra.gmra.mrb[24].mxu0 %vm674_vm3, %v3547_v21 }
 0xa90   : > { %3337 = vmatpush3.bf16.msra.mxu0 %v3336_v31  ;;  %3240 = vmatprep.mubr.msk.f32.mxu0 %vm3387_vm1, %v3386_v1 }
 0xa91   : > { %3338 = vmatprep.subr.bf16.mxu0 %v3388_v5 }
 0xa94   : > { %3340 = vmatpush3.bf16.msra.mxu0 %v3339_v34  ;;  %v2963_v34 = vld [vmem:[%s3922_s12] ss:$0 sm:$0xff] }
 0xa95   : > { %3253 = vmatprep.subr.mxu0 %v3386_v1 }
 0xa97   : > { %3241 = vmatmul.mubr.msk.f32.vlgmr.msra.gmra.mrb[26].mxu0 %vm674_vm3, %v3547_v21 }
 0xa98   : > { %3255 = vmatprep.mubr.msk.f32.mxu0 %vm3387_vm1, %v3386_v1  ;;  %3254 = vmatpush3.msra.mxu0 %v2959_v4 }
 0xb5a   : > { %v2049_v40 = vpop.f32.mrb[22].mxu0 }
 0xb5b   : > { %v3204_v41 = vpop.f32.mrb[23].mxu0  ;;  %3208 = vmatmul.mubr.msk.f32.vlgmr.msra.gmra.mrb[12].mxu1 %vm910_vm4, %v2049_v40 }
 0xb5c   : > { %3331 = vmatpush3.bf16.msra.mxu1 %v3330_v37  ;;  %3229 = vmatprep.mubr.msk.f32.mxu1 %vm3387_vm1, %v3386_v1  ;;  %v2964_v37 = vld [vmem:[%s3924_s14] ss:$0 sm:$0xff] }
 0xb5d   : > { %3332 = vmatprep.subr.bf16.mxu1 %v3388_v5 }
 0xb60   : > { %3334 = vmatpush3.bf16.msra.mxu1 %v3333_v42 }
 0xb61   : > { %3243 = vmatprep.subr.mxu1 %v3386_v1 }
 0xb62   : > { %v2208_v43 = vpop.f32.mrb[24].mxu0 }
 0xb63   : > { %v3220_v44 = vpop.f32.mrb[25].mxu0  ;;  %3230 = vmatmul.mubr.msk.f32.vlgmr.msra.gmra.mrb[14].mxu1 %vm674_vm3, %v3547_v21  ;;  %v2209_v56 = vadd.f32 %v2939_v52, %v2208_v43  ;;  %v2966_v52 = vld [vmem:[%s3925_s15] ss:$0 sm:$0xff] }
 0xb64   : > { %3245 = vmatprep.mubr.msk.f32.mxu1 %vm3387_vm1, %v3386_v1 }
 0xb6a   : > { %v2374_v45 = vpop.f32.mrb[26].mxu0 }
 0xb6b   : > { %v3242_v46 = vpop.f32.mrb[27].mxu0  ;;  %v2375_v57 = vadd.f32 %v2953_v55, %v2374_v45 }
 0xc2e   : > { %v2124_v47 = vpop.f32.mrb[12].mxu1 }
 0xc2f   : > { %v2128_v48 = vadd.f32 %v2124_v47, %v3743_v60  ;;  %v3209_v49 = vpop.f32.mrb[13].mxu1 }
 0xc36   : > { %v2291_v51 = vpop.f32.mrb[14].mxu1 }
 0xc37   : > { %v2292_v53 = vadd.f32 %v2946_v50, %v2291_v51  ;;  %v3231_v54 = vpop.f32.mrb[15].mxu1 }
 0xc38   : > { %v2967_v54 = vld [vmem:[%s3926_s16] ss:$0 sm:$0xff] }
 0xc39   : > { %3244 = vmatpush3.xpose.msk.msra.mxu1 %vm910_vm4, %v2292_v53 }
 0xc3a   : > { %3248 = vmatprep.subr.mxu1 %v3386_v1 }
 0xc3c   : > { %3246 = vmatmul.mubr.msk.f32.vlgmr.msra.gmra.mrb[16].mxu1 %vm910_vm4, %v2209_v56 }
 0xc3d   : > { %3249 = vmatpush3.msk.msra.mxu1 %vm1004_vm5, %v2375_v57  ;;  %3250 = vmatprep.mubr.msk.f32.mxu1 %vm3387_vm1, %v3386_v1 }
 0xc3e   : > { %3341 = vmatprep.subr.bf16.mxu1 %v3388_v5 }
 0xd0f   : > { %v2450_v58 = vpop.f32.mrb[16].mxu1 }
 0xd10   : > { %v3247_v59 = vpop.f32.mrb[17].mxu1  ;;  %v2454_v60 = vsel %vm987_vm6, %v2450_v58, -inf }
 0xd11   : > { %2455 = vmax.xlane.f32.xlu0 %v2454_v60 }
 0xd9e   : > { %v2456_v61 = vpop.xlane.xlu0 %2455 }
 0xd9f   : > { %v2457_v62 = vsub.f32 %v2450_v58, %v2456_v61 }
 0xda1   : > { %v2458_v63 = vmul.f32 1.442695, %v2457_v62 }
 0xda3   : > { %3370 = vpow2.f32 %v2458_v63 }
 0xdad   : > { %v3371_v0 = vpop.eup %3370 }
 0xdae   : > { %v2460_v2 = vsel %vm987_vm6, %v3371_v0, 0.0 }
 0xdaf   : > { %2461 = vadd.xlane.f32.xlu1 %v2460_v2 }
 0xe3c   : > { %v2462_v7 = vpop.xlane.xlu1 %2461 }
 0xe3d   : > { %3372 = vrcp.f32 %v2462_v7 }
 0xe47   : > { %v3373_v8 = vpop.eup %3372 }
 0xe48   : > { %v2464_v9 = vmul.f32 %v3373_v8, %v3371_v0 }
 0xe4a   : > { %v2465_v10 = vadd.f32 %v2464_v9, %v3783_v28  ;;  %3251 = vmatmul.mubr.msk.f32.vlgmr.msra.gmra.mrb[18].mxu1 %vm1000_vm7, %v2464_v9  ;;  %v2661_v28 = vld [vmem:[%s3923_s13 + $0x18] sm:$0xff] }
 0xe4b   : > { %3266 = vmatprep.mubr.msk.f32.mxu1 %vm3387_vm1, %v3386_v1  ;;  %3343 = vmatpush3.bf16.msra.mxu1 %v3342_v27 }
 0xe4c   : > { %v2772_v11 = vmul.f32 0.25, %v2465_v10  ;;  %3344 = vmatprep.subr.bf16.mxu1 %v3388_v5 }
 0xe4e   : > { %2773 = vst.msk [vmem:[%s581_s24] sm:$0x3f] %vm987_vm6, %v2772_v11 }
 0xf1d   : > { %v2538_v12 = vpop.f32.mrb[18].mxu1 }
 0xf1e   : > { %v3252_v13 = vpop.f32.mrb[19].mxu1  ;;  %3256 = vmatmul.mubr.msk.f32.vlgmr.msra.gmra.mrb[28].mxu0 %vm910_vm4, %v2538_v12 }
 0xff1   : > { %v2613_v3 = vpop.f32.mrb[28].mxu0 }
 0xff2   : > { %v2617_v15 = vadd.f32 %v2613_v3, %v2128_v48  ;;  %v3257_v6 = vpop.f32.mrb[29].mxu0 }
 0xff4   : > { %v2625_v16 = vadd.f32 %v2961_v14, %v2617_v15 }
 0xff6   : > { %v2626_v17 = vadd.f32 %v2625_v16, %v3547_v21  ;;  %v2660_v21 = vld [vmem:[%s3923_s13 + $0x10] sm:$0xff] }
 0xff7   : > { %v3345_v29 = vpack.c.bf16 %v2661_v28, %v2660_v21 }
 0xff8   : > { %v2630_v1 = vsel %vm2629_vm8, %v2626_v17, 0.0 }
 0xff9   : > { %2631 = vadd.xlane.f32.xlu0 %v2630_v1  ;;  %3346 = vmatpush3.bf16.msra.mxu1 %v3345_v29 }
0x1086   : > { %v2632_v18 = vpop.xlane.xlu0 %2631 }
0x1087   : > { %v2634_v19 = vmul.f32 0.03125, %v2632_v18 }
0x1089   : > { %v2635_v20 = vsub.f32 %v2626_v17, %v2634_v19 }
0x108b   : > { %v2636_v23 = vmul.f32 %v2635_v20, %v2635_v20 }
0x108d   : > { %v2637_v24 = vsel %vm2629_vm8, %v2636_v23, 0.0 }
0x108e   : > { %2638 = vadd.xlane.f32.xlu1 %v2637_v24 }
0x111b   : > { %v2639_v22 = vpop.xlane.xlu1 %2638 }
0x111c   : > { %v2640_v30 = vmul.f32 0.03125, %v2639_v22 }
0x111e   : > { %v2641_v31 = vadd.f32 1e-05, %v2640_v30 }
0x1120   : > { %3374 = vrsqrt.f32 %v2641_v31 }
0x112a   : > { %v3375_v32 = vpop.eup %3374 }
0x112b   : > { %v2643_v5 = vmul.f32 %v3375_v32, %v2635_v20 }
0x112d   : > { %v2650_v35 = vmul.f32 %v2962_v33, %v2643_v5 }
0x112f   : > { %v2657_v36 = vadd.f32 %v2963_v34, %v2650_v35 }
0x1131   : > { %3267 = vmatmul.mubr.msk.f32.vlgmr.msra.gmra.mrb[20].mxu1 %vm674_vm3, %v2657_v36 }
0x1204   : > { %v2738_v38 = vpop.f32.mrb[20].mxu1 }
0x1205   : > { %v2739_v39 = vadd.f32 %v2964_v37, %v2738_v38  ;;  %v3268_v40 = vpop.f32.mrb[21].mxu1 }
0x1207   : > { %v2742_v41 = vadd.f32 %v2739_v39, %v2657_v36 }
0x1209   : > { %v2745_v42 = vsel %vm2629_vm8, %v2742_v41, 0.0 }
0x120a   : > { %2746 = vadd.xlane.f32.xlu0 %v2745_v42 }
0x1297   : > { %v2747_v43 = vpop.xlane.xlu0 %2746 }
0x1298   : > { %v2748_v44 = vmul.f32 0.03125, %v2747_v43 }
0x129a   : > { %v2749_v45 = vsub.f32 %v2742_v41, %v2748_v44 }
0x129c   : > { %v2750_v46 = vmul.f32 %v2749_v45, %v2749_v45 }
0x129e   : > { %v2751_v47 = vsel %vm2629_vm8, %v2750_v46, 0.0 }
0x129f   : > { %2752 = vadd.xlane.f32.xlu1 %v2751_v47 }
0x132c   : > { %v2753_v48 = vpop.xlane.xlu1 %2752 }
0x132d   : > { %v2754_v49 = vmul.f32 0.03125, %v2753_v48 }
0x132f   : > { %v2755_v50 = vadd.f32 1e-05, %v2754_v49 }
0x1331   : > { %3376 = vrsqrt.f32 %v2755_v50 }
0x133b   : > { %v3377_v51 = vpop.eup %3376 }
0x133c   : > { %v2757_v53 = vmul.f32 %v3377_v51, %v2749_v45 }
0x133e   : > { %v2764_v55 = vmul.f32 %v2966_v52, %v2757_v53 }
0x1340   : > { %v2771_v56 = vadd.f32 %v2967_v54, %v2764_v55 }
0x1342   : > { %2774 = vst.msk [vmem:[%s577_s22] sm:$0x3f] %vm2629_vm8, %v2771_v56 }
0x1343 PF: > { %s29_s27 = sadd.s32 1, %s3384_s27  }
0x1344   : > { %p26_p4 = scmp.ge.s32.totalorder %s29_s27, 4  }
0x1346   :  { %28 = sbr.rel (!%p26_p4) target bundleno = 4 (0x4), region = 151 }

// kernel: classification_model_forward.6
= control target key start
LH: loop header
LB: loop body
LE: loop exit
PB: predicated region body
PF: predicated region fallthrough
CT: control target
= control target key end

     0   :  { %s5656_s0 = inlined_call_operand.vmem [shape: f32[2,32,4], index: 0, kind: input, shape index: {}]   ;;  %s5657_s1 = inlined_call_operand.vmem [shape: f32[4,32], index: 1, kind: input, shape index: {}]   ;;  %s5658_s2 = inlined_call_operand.vmem [shape: f32[32,32], index: 2, kind: input, shape index: {}]   ;;  %s5659_s3 = inlined_call_operand.vmem [shape: f32[4,32,8], index: 3, kind: input, shape index: {}]   ;;  %s5660_s4 = inlined_call_operand.vmem [shape: f32[4,32,8], index: 4, kind: input, shape index: {}]   ;;  %s5661_s5 = inlined_call_operand.vmem [shape: f32[4,32,8], index: 5, kind: input, shape index: {}]   ;;  %s5662_s6 = inlined_call_operand.vmem [shape: f32[4,1,8], index: 6, kind: input, shape index: {}]   ;;  %s5663_s7 = inlined_call_operand.vmem [shape: f32[4,1,8], index: 7, kind: input, shape index: {}]   ;;  %s5664_s8 = inlined_call_operand.vmem [shape: f32[4,1,8], index: 8, kind: input, shape index: {}]   ;;  %s5665_s9 = inlined_call_operand.vmem [shape: f32[4,8,32], index: 9, kind: input, shape index: {}]   ;;  %s5666_s10 = inlined_call_operand.vmem [shape: f32[1,32], index: 10, kind: input, shape index: {}]   ;;  %s5667_s11 = inlined_call_operand.vmem [shape: f32[1,32], index: 11, kind: input, shape index: {}]   ;;  %s5668_s12 = inlined_call_operand.vmem [shape: f32[1,32], index: 12, kind: input, shape index: {}]   ;;  %s5669_s13 = inlined_call_operand.vmem [shape: f32[32,32], index: 13, kind: input, shape index: {}]   ;;  %s5670_s14 = inlined_call_operand.vmem [shape: f32[1,32], index: 14, kind: input, shape index: {}]   ;;  %s5671_s15 = inlined_call_operand.vmem [shape: f32[1,32], index: 15, kind: input, shape index: {}]   ;;  %s5672_s16 = inlined_call_operand.vmem [shape: f32[1,32], index: 16, kind: input, shape index: {}]   ;;  %s5673_s17 = inlined_call_operand.vmem [shape: f32[2,32,32], index: 17, kind: output, shape index: {0}]   ;;  %s5674_s18 = inlined_call_operand.hbm [shape: f32[2,1,32,32], index: 18, kind: output, shape index: {1}]  }
   0x1   :  { %5683 = sst [smem:[#allocation11_spill]] %s5656_s0 }
   0x2   :  { %5684 = sst [smem:[#allocation12_spill]] %s5657_s1 }
   0x3   :  { %5685 = sst [smem:[#allocation13_spill]] %s5658_s2 }
   0x4   :  { %24 = vsyncpa [#allocation3], 0 }
   0x5   :  { %26 = vsyncpa [#allocation3 + $0x1], 0  ;;  %s4908_s27 = smov 0   ;;  %s4910_s28 = smov 0  }
   0x6   :  { %s4912_s29 = smov 0   ;;  %s4914_s30 = smov 0  }
   0x7 LB: > { %5686 = sst [smem:[#allocation5_spill]] %s4796_s27  ;;  %s4929_s0 = sadd.s32 4294967295, %s4808_s30   ;;  %s4808_s30 = sphi %s4914_s30, %s5703_s30   ;;  %s4804_s29 = sphi %s4912_s29, %s5705_s29   ;;  %s4800_s28 = sphi %s4910_s28, %s5707_s28   ;;  %s4796_s27 = sphi %s4908_s27, %s5706_s27  }
   0x8   : > { %5687 = sst [smem:[#allocation6_spill]] %s4804_s29  ;;  %s3698_s19 = sadd.s32 4294967294, %s4808_s30  }
   0x9   : > { %5688 = sst [smem:[#allocation7_spill]] %s4808_s30  ;;  %s4933_s1 = sadd.s32 1, %s4808_s30  }
   0xa   : > { %5689 = sst [smem:[#allocation8_spill]] %s4933_s1  ;;  %s427_s20 = sadd.s32 1, %s4804_s29 }
   0xb   : > { %s424_s21 = ssub.s32 %s4808_s30, %s4933_s1  ;;  %p437_p0 = scmp.ne.s32.totalorder %s4804_s29, %s4800_s28 }
   0xc   : > { %p425_p1 = scmp.eq.s32.totalorder %s424_s21, 0  ;;  %p438_p2 = scmp.eq.s32.totalorder %s4929_s0, 1 }
   0xd   : > { %p443_p3 = scmp.ne.s32.totalorder %s4800_s28, %s4796_s27  ;;  %p444_p4 = scmp.eq.s32.totalorder %s3698_s19, 1 }
   0xe   : > { %s4944_s22 = scalar_select %p425_p1, %s4804_s29, %s427_s20  }
   0xf   : > { %p4946_p5 = por %p438_p2, %p437_p0  ;;  %p4950_p6 = por %p444_p4, %p443_p3 }
  0x10   : > { %5690 = sst [smem:[#allocation9_spill]] %s4944_s22  ;;  %p3701_p7 = scmp.ge.s32.totalorder %s4808_s30, 1 }
  0x11   : > { %s5692_s23 = scalar_select %p4950_p6, 1, 0 }
  0x12   : > { %p518_p8 = scmp.lt.s32.totalorder %s4808_s30, 3 }
  0x13   : > { %5693 = sst [smem:[#allocation10_spill]] %s5692_s23 }
  0x14   : > { %p519_p9 = pnand %p3701_p7, %p518_p8 }
  0x15   : > { %s5694_s26 = sld [smem:[#allocation12_spill]] (!%p519_p9)  ;;  %vm609_vm0 = vcmask (!%p519_p9), 1043456   ;;  %p577_p10 = scmp.lt.s32.totalorder (!%p519_p9), %s4929_s0, 1  ;;  %v698_v1 = vld [vmem:[%s5659_s3] sm:$0xff] (!%p519_p9)  ;;  %v699_v2 = vld [vmem:[%s5659_s3 + $0x8] sm:$0xff] (!%p519_p9)  ;;  %vm596_vm1 = vcmask (!%p519_p9), 31744  }
  0x16   : > { %522 = sbr.rel (%p519_p9) target bundleno = 4485 (0x1185), region = 88  ;;  %v807_v3 = vld [vmem:[%s5660_s4] sm:$0xff] (!%p519_p9)  ;;  %v808_v4 = vld [vmem:[%s5660_s4 + $0x8] sm:$0xff] (!%p519_p9)  ;;  %v4429_v5 = vpack.c.bf16 (!%p519_p9), %v699_v2, %v698_v1  ;;  %s5695_s29 = sld [smem:[#allocation11_spill]] (!%p519_p9)  ;;  %v700_v11 = vld [vmem:[%s5659_s3 + $0x10] sm:$0xff] (!%p519_p9)  ;;  %vm709_vm2 = vcmask (!%p519_p9), 261120  }
  0x17   : > { %v4437_v6 = vpack.c.bf16 (!%p519_p9), %v808_v4, %v807_v3  ;;  %v701_v12 = vld [vmem:[%s5659_s3 + $0x18] sm:$0xff] (!%p519_p9)  ;;  %v809_v13 = vld [vmem:[%s5660_s4 + $0x10] sm:$0xff] (!%p519_p9)  ;;  %v903_v17 = vld [vmem:[%s5661_s5] sm:$0xff] (!%p519_p9)  ;;  %s5696_s19 = sld [smem:[#allocation13_spill]] (!%p519_p9)  ;;  %vm999_vm3 = vcmask (!%p519_p9), 64512   ;;  %s3901_s21 = sshll.u32 (!%p519_p9), %s4929_s0, 9 }
  0x18   : > { %4430 = vmatprep.subr.bf16.mxu1 (!%p519_p9), %v4429_v5  ;;  %v4433_v14 = vpack.c.bf16 (!%p519_p9), %v701_v12, %v700_v11  ;;  %v810_v15 = vld [vmem:[%s5660_s4 + $0x18] sm:$0xff] (!%p519_p9)  ;;  %v904_v18 = vld [vmem:[%s5661_s5 + $0x8] sm:$0xff] (!%p519_p9)  ;;  %v905_v23 = vld [vmem:[%s5661_s5 + $0x10] sm:$0xff] (!%p519_p9)  ;;  %s5590_s30 = scalar_lea.hbm (!%p519_p9), %s5674_s18, %s3901_s21 }
  0x19   : > { %4432 = vmatpush3.bf16.msra.mxu1 (!%p519_p9), %v4429_v5  ;;  %v4441_v16 = vpack.c.bf16 (!%p519_p9), %v810_v15, %v809_v13  ;;  %v4445_v19 = vpack.c.bf16 (!%p519_p9), %v904_v18, %v903_v17  ;;  %v906_v24 = vld [vmem:[%s5661_s5 + $0x18] sm:$0xff] (!%p519_p9)  ;;  %v3717_v35 = vld [vmem:[%s5663_s7] ss:$0 sm:$0xff] (!%p519_p9)  ;;  %vm5057_vm4 = vmpackc.low (!%p519_p9), %vm999_vm3, %vm999_vm3 }
  0x1a   : > { %4434 = vmatprep.subr.bf16.mxu1 (!%p519_p9), %v4433_v14  ;;  %v4449_v30 = vpack.c.bf16 (!%p519_p9), %v906_v24, %v905_v23  ;;  %v3712_v36 = vld [vmem:[%s5662_s6] ss:$0 sm:$0xff] (!%p519_p9)  ;;  %v3750_v58 = vld [vmem:[%s5660_s4 + $0x28] sm:$0xff] (!%p519_p9)  ;;  %v3751_v3 = vld [vmem:[%s5660_s4 + $0x30] sm:$0xff] (!%p519_p9) }
  0x1b   : > { %v591_v0 = vld [vmem:[%s5694_s26] sm:$0xf] (!%p519_p9)  ;;  %v3752_v4 = vld [vmem:[%s5660_s4 + $0x38] sm:$0xff] (!%p519_p9) }
  0x1c   : > { %4095 = vmatprep.subr.msk.mxu0 (!%p519_p9), %vm609_vm0, %v591_v0  ;;  %v3722_v52 = vld [vmem:[%s5664_s8] ss:$0 sm:$0xff] (!%p519_p9) }
  0x1d   : > { %4096 = vmatpush3.msk.msra.mxu0 %vm609_vm0, %v591_v0  ;;  %s4973_s25 = scalar_select %p577_p10, %s4929_s0, 1  ;;  %4436 = vmatpush3.bf16.msra.mxu1 %v4433_v14  ;;  %v592_v20 = vld [vmem:[%s5696_s19] sm:$0xff]  ;;  %v593_v21 = vld [vmem:[%s5696_s19 + $0x8] sm:$0xff]  ;;  %v595_v27 = vld [vmem:[%s5696_s19 + $0x18] sm:$0xff] }
  0x1e   : > { %4438 = vmatprep.subr.bf16.mxu0 %v4437_v6  ;;  %4446 = vmatprep.subr.bf16.mxu1 %v4445_v19  ;;  %v594_v29 = vld [vmem:[%s5696_s19 + $0x10] sm:$0xff]  ;;  %v3749_v57 = vld [vmem:[%s5660_s4 + $0x20] sm:$0xff]  ;;  %s4810_s0 = smov [#allocation2]  }
  0x1f   : > { %s5680_s26 = sshll.u32 %s4973_s25, 5  ;;  %v4481_v62 = vpack.c.bf16 %v3750_v58, %v3749_v57 }
  0x20   : > { %s581_s1 = scalar_lea.vmem %s5695_s29, %s5680_s26 }
  0x21   : > { %v587_v7 = vld [vmem:[%s581_s1] sm:$0xff]  ;;  %v588_v8 = vld [vmem:[%s581_s1 + $0x8] sm:$0xff]  ;;  %v589_v9 = vld [vmem:[%s581_s1 + $0x10] sm:$0xff] }
  0x22   : > { %4097 = vmatprep.mubr.msk.f32.mxu0 %vm596_vm1, %v587_v7  ;;  %v590_v10 = vld [vmem:[%s581_s1 + $0x18] sm:$0xff]  ;;  %s574_s1 = sand.u32 1, %s4800_s28  }
  0x23   : > { %4098 = vmatmul.mubr.msk.f32.vlgmr.msra.gmra.mrb[0].mxu0 %vm596_vm1, %v588_v8  ;;  %s3702_s23 = sshll.u32 %s574_s1, 5  ;;  %s5596_s26 = scalar_lea.sflag [#allocation3], %s574_s1 }
  0x24   : > { %4100 = vmatprep.mubr.msk.f32.mxu0 %vm596_vm1, %v589_v9  ;;  %4440 = vmatpush3.bf16.msra.mxu0 %v4437_v6  ;;  %v4485_v6 = vpack.c.bf16 %v3752_v4, %v3751_v3  ;;  %s5505_s20 = scalar_lea.vmem [#allocation2], %s3702_s23 }
  0x25   : > { %4442 = vmatprep.subr.bf16.mxu0 %v4441_v16  ;;  %s3611_s24 = sshll.u32 %s5505_s20, 4  ;;  %s5592_s24 = int_to_ptr.vmem [resolvable:$true] %s3611_s24 }
  0x26   : > { %s4746_s29 = scalar_lea.vmem %s5592_s24, 512 }
  0x27   : > { %4101 = vmatmul.mubr.msk.f32.gmra.mrb[2].mxu0 %vm596_vm1, %v590_v10  ;;  %p4747_p11 = scmp.ne.s32.totalorder %s5592_s24, %s4746_s29 }
  0x28   : > { %4444 = vmatpush3.bf16.msra.mxu0 %v4441_v16  ;;  %v3754_v16 = vld [vmem:[%s5663_s7 + $0x1] ss:$0 sm:$0xff] }
  0x29   : > { %p4748_p12 = pnand %p4747_p11, %p4946_p5 }
  0x2b   : > { %p4749_p13 = pneg %p4748_p12 }
  0xf6   : > { %v4099_v22 = vpop.f32.mrb[0].mxu0 }
  0xf7   : > { %v679_v25 = vpop.f32.mrb[1].mxu0  ;;  %v5016_v28 = vadd.f32 %v4099_v22, %v593_v21 }
  0xf8   : > { %v5011_v26 = vadd.f32 %v679_v25, %v592_v20 }
  0xfa   : > { %v4102_v31 = vpop.f32.mrb[2].mxu0  ;;  %4111 = vmatprep.mubr.msk.f32.mxu1 %vm709_vm2, %v5011_v26  ;;  %4125 = vmatprep.mubr.msk.f32.mxu0 %vm709_vm2, %v5011_v26 }
  0xfb   : > { %v5025_v32 = vadd.f32 %v4102_v31, %v595_v27  ;;  %v689_v33 = vpop.f32.mrb[3].mxu0  ;;  %4112 = vmatmul.mubr.msk.f32.vlgmr.msra.gmra.mrb[0].mxu1 %vm709_vm2, %v5016_v28  ;;  %4126 = vmatmul.mubr.msk.f32.vlgmr.msra.gmra.mrb[4].mxu0 %vm709_vm2, %v5016_v28 }
  0xfc   : > { %v5031_v34 = vadd.f32 %v689_v33, %v594_v29  ;;  %4448 = vmatpush3.bf16.msra.mxu1 %v4445_v19 }
  0xfd   : > { %4450 = vmatprep.subr.bf16.mxu1 %v4449_v30 }
  0xfe   : > { %4114 = vmatprep.mubr.msk.f32.mxu1 %vm709_vm2, %v5031_v34  ;;  %4128 = vmatprep.mubr.msk.f32.mxu0 %vm709_vm2, %v5031_v34 }
  0xff   : > { %4115 = vmatmul.mubr.msk.f32.gmra.mrb[2].mxu1 %vm709_vm2, %v5025_v32  ;;  %4129 = vmatmul.mubr.msk.f32.gmra.mrb[6].mxu0 %vm709_vm2, %v5025_v32 }
 0x100   : > { %4452 = vmatpush3.bf16.msra.mxu1 %v4449_v30  ;;  %4139 = vmatprep.mubr.msk.f32.mxu1 %vm709_vm2, %v5011_v26 }
 0x103   : > { %4140 = vmatmul.mubr.msk.f32.vlgmr.msra.gmra.mrb[4].mxu1 %vm709_vm2, %v5016_v28 }
 0x104   : > { %4142 = vmatprep.mubr.msk.f32.mxu1 %vm709_vm2, %v5031_v34 }
 0x107   : > { %4143 = vmatmul.mubr.msk.f32.gmra.mrb[6].mxu1 %vm709_vm2, %v5025_v32 }
 0x1ce   : > { %v4113_v37 = vpop.f32.mrb[0].mxu1  ;;  %v4127_v38 = vpop.f32.mrb[4].mxu0 }
 0x1cf   : > { %v890_v39 = vadd.f32 %v4127_v38, %v3717_v35  ;;  %v788_v40 = vpop.f32.mrb[1].mxu1  ;;  %v884_v41 = vpop.f32.mrb[5].mxu0  ;;  %v794_v5 = vadd.f32 %v4113_v37, %v3712_v36 }
 0x1d0   : > { %v789_v42 = vadd.f32 %v3712_v36, %v788_v40  ;;  %v885_v43 = vadd.f32 %v3717_v35, %v884_v41 }
 0x1d2   : > { %v4453_v45 = vpack.c.bf16 %v890_v39, %v885_v43  ;;  %4153 = vmatprep.mubr.msk.f32.mxu0 %vm999_vm3, %v789_v42  ;;  %v4116_v46 = vpop.f32.mrb[2].mxu1  ;;  %v4130_v47 = vpop.f32.mrb[6].mxu0 }
 0x1d3   : > { %v900_v48 = vadd.f32 %v4130_v47, %v3717_v35  ;;  %v798_v49 = vpop.f32.mrb[3].mxu1  ;;  %v894_v50 = vpop.f32.mrb[7].mxu0  ;;  %v804_v8 = vadd.f32 %v4116_v46, %v3712_v36 }
 0x1d4   : > { %v895_v51 = vadd.f32 %v3717_v35, %v894_v50  ;;  %4455 = vmatprep.subr.msk.bf16.mxu0 %vm5057_vm4, %v4453_v45  ;;  %v799_v7 = vadd.f32 %v3712_v36, %v798_v49 }
 0x1d5   : > { %4458 = vmatpush3.bf16.xpose.msk.msra.mxu0 %vm5057_vm4, %v4453_v45 }
 0x1d6   : > { %v4459_v53 = vpack.c.bf16 %v900_v48, %v895_v51  ;;  %v4141_v54 = vpop.f32.mrb[4].mxu1 }
 0x1d7   : > { %v986_v55 = vadd.f32 %v4141_v54, %v3722_v52  ;;  %v980_v56 = vpop.f32.mrb[5].mxu1  ;;  %v3740_v54 = vld [vmem:[%s5659_s3 + $0x28] sm:$0xff] }
 0x1d8   : > { %v981_v59 = vadd.f32 %v3722_v52, %v980_v56  ;;  %4461 = vmatprep.subr.msk.bf16.mxu0 %vm5057_vm4, %v4459_v53 }
 0x1da   : > { %v4465_v60 = vpack.c.bf16 %v986_v55, %v981_v59  ;;  %v4144_v61 = vpop.f32.mrb[6].mxu1 }
 0x1db   : > { %v996_v63 = vadd.f32 %v4144_v61, %v3722_v52  ;;  %v990_v0 = vpop.f32.mrb[7].mxu1 }
 0x1dc   : > { %v991_v1 = vadd.f32 %v3722_v52, %v990_v0  ;;  %4466 = vmatprep.subr.bf16.mxu1 %v4465_v60 }
 0x1dd   : > { %4464 = vmatpush3.bf16.xpose.msk.msra.mxu0 %vm5057_vm4, %v4459_v53  ;;  %4468 = vmatpush3.bf16.msra.mxu1 %v4465_v60  ;;  %v3739_v53 = vld [vmem:[%s5659_s3 + $0x20] sm:$0xff] }
 0x1de   : > { %v4469_v2 = vpack.c.bf16 %v996_v63, %v991_v1  ;;  %4482 = vmatprep.subr.bf16.mxu0 %v4481_v62  ;;  %v4473_v55 = vpack.c.bf16 %v3740_v54, %v3739_v53  ;;  %v3742_v63 = vld [vmem:[%s5659_s3 + $0x38] sm:$0xff] }
 0x1e0   : > { %4470 = vmatprep.subr.bf16.mxu1 %v4469_v2 }
 0x1e1   : > { %4472 = vmatpush3.bf16.msra.mxu1 %v4469_v2 }
 0x1e2   : > { %4474 = vmatprep.subr.bf16.mxu1 %v4473_v55 }
 0x1e4   : > { %4154 = vmatmul.mubr.msk.f32.vlgmr.msra.gmra.mrb[8].mxu0 %vm999_vm3, %v794_v5  ;;  %v3759_v5 = vld [vmem:[%s5661_s5 + $0x20] sm:$0xff] }
 0x1e5   : > { %4156 = vmatprep.mubr.msk.f32.mxu0 %vm999_vm3, %v799_v7  ;;  %4484 = vmatpush3.bf16.msra.mxu0 %v4481_v62  ;;  %v3741_v62 = vld [vmem:[%s5659_s3 + $0x30] sm:$0xff] }
 0x1e6   : > { %4486 = vmatprep.subr.bf16.mxu0 %v4485_v6  ;;  %v4477_v3 = vpack.c.bf16 %v3742_v63, %v3741_v62  ;;  %v3795_v63 = vld [vmem:[%s5662_s6 + $0x2] ss:$0 sm:$0xff] }
 0x1e8   : > { %4157 = vmatmul.mubr.msk.f32.gmra.mrb[10].mxu0 %vm999_vm3, %v804_v8 }
 0x1e9   : > { %4488 = vmatpush3.bf16.msra.mxu0 %v4485_v6  ;;  %4195 = vmatprep.mubr.msk.f32.mxu0 %vm709_vm2, %v5011_v26  ;;  %v3760_v6 = vld [vmem:[%s5661_s5 + $0x28] sm:$0xff] }
 0x1ec   : > { %4196 = vmatmul.mubr.msk.f32.vlgmr.msra.gmra.mrb[12].mxu0 %vm709_vm2, %v5016_v28 }
 0x1ed   : > { %4198 = vmatprep.mubr.msk.f32.mxu0 %vm709_vm2, %v5031_v34 }
 0x1f0   : > { %4199 = vmatmul.mubr.msk.f32.gmra.mrb[14].mxu0 %vm709_vm2, %v5025_v32 }
 0x2b7   : > { %v4155_v9 = vpop.f32.mrb[8].mxu0 }
 0x2b8   : > { %v1090_v10 = vpop.f32.mrb[9].mxu0  ;;  %v1112_v14 = vsel %vm709_vm2, %v4155_v9, -inf }
 0x2b9   : > { %v1109_v11 = vsel %vm709_vm2, %v1090_v10, -inf }
 0x2ba   : > { %1110 = vmax.xlane.f32.xlu0 %v1109_v11  ;;  %v3762_v11 = vld [vmem:[%s5661_s5 + $0x38] sm:$0xff] }
 0x2bb   : > { %v4158_v12 = vpop.f32.mrb[10].mxu0 }
 0x2bc   : > { %v1100_v13 = vpop.f32.mrb[11].mxu0  ;;  %v1118_v21 = vsel %vm709_vm2, %v4158_v12, -inf }
 0x2bd   : > { %v1115_v15 = vsel %vm709_vm2, %v1100_v13, -inf }
 0x2be   : > { %1113 = vmax.xlane.f32.xlu0 %v1112_v14  ;;  %1116 = vmax.xlane.f32.xlu1 %v1115_v15  ;;  %v3791_v14 = vld [vmem:[%s5659_s3 + $0x48] sm:$0xff] }
 0x2bf   : > { %v4197_v17 = vpop.f32.mrb[12].mxu0 }
 0x2c0   : > { %v1438_v18 = vadd.f32 %v4197_v17, %v3754_v16  ;;  %v1432_v19 = vpop.f32.mrb[13].mxu0 }
 0x2c1   : > { %v1433_v20 = vadd.f32 %v3754_v16, %v1432_v19 }
 0x2c2   : > { %1119 = vmax.xlane.f32.xlu1 %v1118_v21 }
 0x2c3   : > { %v4497_v22 = vpack.c.bf16 %v1438_v18, %v1433_v20  ;;  %v4200_v23 = vpop.f32.mrb[14].mxu0  ;;  %v3744_v20 = vld [vmem:[%s5662_s6 + $0x1] ss:$0 sm:$0xff] }
 0x2c4   : > { %v1448_v24 = vadd.f32 %v4200_v23, %v3754_v16  ;;  %v1442_v25 = vpop.f32.mrb[15].mxu0  ;;  %v3793_v23 = vld [vmem:[%s5659_s3 + $0x58] sm:$0xff] }
 0x2c5   : > { %v1443_v27 = vadd.f32 %v3754_v16, %v1442_v25  ;;  %4499 = vmatprep.subr.msk.bf16.mxu0 %vm5057_vm4, %v4497_v22 }
 0x2c6   : > { %4502 = vmatpush3.bf16.xpose.msk.msra.mxu0 %vm5057_vm4, %v4497_v22  ;;  %v3792_v22 = vld [vmem:[%s5659_s3 + $0x50] sm:$0xff] }
 0x2c7   : > { %v4503_v29 = vpack.c.bf16 %v1448_v24, %v1443_v27 }
 0x2c9   : > { %4505 = vmatprep.subr.msk.bf16.mxu0 %vm5057_vm4, %v4503_v29 }
 0x2ce   : > { %4508 = vmatpush3.bf16.xpose.msk.msra.mxu0 %vm5057_vm4, %v4503_v29  ;;  %v4521_v29 = vpack.c.bf16 %v3793_v23, %v3792_v22  ;;  %v3837_v23 = vld [vmem:[%s5659_s3 + $0x60] sm:$0xff] }
 0x347   : > { %v1111_v30 = vpop.xlane.xlu0 %1110 }
 0x348   : > { %v1121_v31 = vsub.f32 %v1090_v10, %v1111_v30  ;;  %v3761_v10 = vld [vmem:[%s5661_s5 + $0x30] sm:$0xff] }
 0x34a   : > { %v1125_v33 = vmul.f32 1.442695, %v1121_v31  ;;  %v3800_v31 = vld [vmem:[%s5660_s4 + $0x40] sm:$0xff] }
 0x34b   : > { %v1114_v35 = vpop.xlane.xlu0 %1113  ;;  %v1117_v36 = vpop.xlane.xlu1 %1116 }
 0x34c   : > { %4666 = vpow2.f32 %v1125_v33  ;;  %v1122_v37 = vsub.f32 %v4155_v9, %v1114_v35  ;;  %v1123_v38 = vsub.f32 %v1100_v13, %v1117_v36  ;;  %v4489_v9 = vpack.c.bf16 %v3760_v6, %v3759_v5  ;;  %v3790_v13 = vld [vmem:[%s5659_s3 + $0x40] sm:$0xff]  ;;  %v3801_v33 = vld [vmem:[%s5660_s4 + $0x48] sm:$0xff] }
 0x34d   : > { %v4517_v15 = vpack.c.bf16 %v3791_v14, %v3790_v13 }
 0x34e   : > { %v1127_v39 = vmul.f32 1.442695, %v1122_v37  ;;  %v1129_v40 = vmul.f32 1.442695, %v1123_v38  ;;  %v3764_v37 = vld [vmem:[%s5664_s8 + $0x1] ss:$0 sm:$0xff] }
 0x34f   : > { %v1120_v41 = vpop.xlane.xlu1 %1119  ;;  %4518 = vmatprep.subr.bf16.mxu0 %v4517_v15 }
 0x350   : > { %4668 = vpow2.f32 %v1127_v39  ;;  %v1124_v42 = vsub.f32 %v4158_v12, %v1120_v41  ;;  %v4493_v12 = vpack.c.bf16 %v3762_v11, %v3761_v10  ;;  %v4525_v39 = vpack.c.bf16 %v3801_v33, %v3800_v31 }
 0x351   : > { %4670 = vpow2.f32 %v1129_v40 }
 0x352   : > { %v1131_v43 = vmul.f32 1.442695, %v1124_v42 }
 0x354   : > { %4672 = vpow2.f32 %v1131_v43  ;;  %v3802_v43 = vld [vmem:[%s5660_s4 + $0x50] sm:$0xff] }
 0x356   : > { %v4667_v45 = vpop.eup %4666 }
 0x357   : > { %v1133_v46 = vsel %vm709_vm2, %v4667_v45, 0.0 }
 0x358   : > { %1134 = vadd.xlane.f32.xlu0 %v1133_v46 }
 0x35a   : > { %v4669_v47 = vpop.eup %4668 }
 0x35b   : > { %v4671_v48 = vpop.eup %4670  ;;  %v1136_v49 = vsel %vm709_vm2, %v4669_v47, 0.0 }
 0x35c   : > { %1137 = vadd.xlane.f32.xlu1 %v1136_v49  ;;  %v1139_v50 = vsel %vm709_vm2, %v4671_v48, 0.0 }
 0x35d   : > { %1140 = vadd.xlane.f32.xlu0 %v1139_v50 }
 0x35e   : > { %v4673_v51 = vpop.eup %4672 }
 0x35f   : > { %v1142_v52 = vsel %vm709_vm2, %v4673_v51, 0.0 }
 0x360   : > { %1143 = vadd.xlane.f32.xlu1 %v1142_v52 }
 0x3e5   : > { %v1135_v56 = vpop.xlane.xlu0 %1134 }
 0x3e6   : > { %4674 = vrcp.f32 %v1135_v56 }
 0x3e9   : > { %v1138_v57 = vpop.xlane.xlu1 %1137 }
 0x3ea   : > { %v1141_v58 = vpop.xlane.xlu0 %1140  ;;  %4676 = vrcp.f32 %v1138_v57 }
 0x3eb   : > { %4678 = vrcp.f32 %v1141_v58 }
 0x3ed   : > { %v1144_v59 = vpop.xlane.xlu1 %1143 }
 0x3ee   : > { %4680 = vrcp.f32 %v1144_v59 }
 0x3f0   : > { %v4675_v60 = vpop.eup %4674 }
 0x3f1   : > { %v5121_v61 = vmul.f32 %v4675_v60, %v4667_v45  ;;  %v3803_v45 = vld [vmem:[%s5660_s4 + $0x58] sm:$0xff] }
 0x3f2   : > { %v4529_v49 = vpack.c.bf16 %v3803_v45, %v3802_v43 }
 0x3f3   : > { %4167 = vmatprep.mubr.msk.f32.mxu1 %vm709_vm2, %v5121_v61 }
 0x3f4   : > { %v4677_v0 = vpop.eup %4676 }
 0x3f5   : > { %v4679_v1 = vpop.eup %4678  ;;  %v5131_v2 = vmul.f32 %v4677_v0, %v4669_v47 }
 0x3f6   : > { %v5133_v4 = vmul.f32 %v4679_v1, %v4671_v48 }
 0x3f7   : > { %4168 = vmatmul.mubr.msk.f32.vlgmr.msra.gmra.mrb[8].mxu1 %vm709_vm2, %v5131_v2 }
 0x3f8   : > { %v4681_v7 = vpop.eup %4680  ;;  %4170 = vmatprep.mubr.msk.f32.mxu1 %vm709_vm2, %v5133_v4  ;;  %4476 = vmatpush3.bf16.msra.mxu1 %v4473_v55 }
 0x3f9   : > { %v5145_v8 = vmul.f32 %v4681_v7, %v4673_v51  ;;  %4478 = vmatprep.subr.bf16.mxu1 %v4477_v3  ;;  %v3805_v7 = vld [vmem:[%s5663_s7 + $0x2] ss:$0 sm:$0xff] }
 0x3fb   : > { %4171 = vmatmul.mubr.msk.f32.gmra.mrb[10].mxu1 %vm709_vm2, %v5145_v8 }
 0x3fc   : > { %4480 = vmatpush3.bf16.msra.mxu1 %v4477_v3  ;;  %4181 = vmatprep.mubr.msk.f32.mxu1 %vm709_vm2, %v5011_v26 }
 0x3fd   : > { %4490 = vmatprep.subr.bf16.mxu1 %v4489_v9 }
 0x3ff   : > { %4182 = vmatmul.mubr.msk.f32.vlgmr.msra.gmra.mrb[12].mxu1 %vm709_vm2, %v5016_v28 }
 0x400   : > { %4184 = vmatprep.mubr.msk.f32.mxu1 %vm709_vm2, %v5031_v34  ;;  %4492 = vmatpush3.bf16.msra.mxu1 %v4489_v9 }
 0x401   : > { %4494 = vmatprep.subr.bf16.mxu1 %v4493_v12 }
 0x403   : > { %4185 = vmatmul.mubr.msk.f32.gmra.mrb[14].mxu1 %vm709_vm2, %v5025_v32 }
 0x404   : > { %4496 = vmatpush3.bf16.msra.mxu1 %v4493_v12  ;;  %4209 = vmatprep.mubr.msk.f32.mxu1 %vm709_vm2, %v5011_v26 }
 0x407   : > { %4210 = vmatmul.mubr.msk.f32.vlgmr.msra.gmra.mrb[16].mxu1 %vm709_vm2, %v5016_v28 }
 0x408   : > { %4212 = vmatprep.mubr.msk.f32.mxu1 %vm709_vm2, %v5031_v34 }
 0x40b   : > { %4213 = vmatmul.mubr.msk.f32.gmra.mrb[18].mxu1 %vm709_vm2, %v5025_v32 }
 0x4ca   : > { %v5177_v16 = vpop.f32.mrb[8].mxu1 }
 0x4cb   : > { %v5179_v17 = vpop.f32.mrb[9].mxu1 }
 0x4ce   : > { %v5181_v18 = vpop.f32.mrb[10].mxu1 }
 0x4cf   : > { %v5183_v19 = vpop.f32.mrb[11].mxu1 }
 0x4d2   : > { %v4183_v21 = vpop.f32.mrb[12].mxu1 }
 0x4d3   : > { %v1334_v24 = vpop.f32.mrb[13].mxu1  ;;  %v1340_v27 = vadd.f32 %v4183_v21, %v3744_v20 }
 0x4d4   : > { %v1335_v25 = vadd.f32 %v3744_v20, %v1334_v24  ;;  %v3838_v24 = vld [vmem:[%s5659_s3 + $0x68] sm:$0xff] }
 0x4d6   : > { %v4186_v30 = vpop.f32.mrb[14].mxu1  ;;  %4223 = vmatprep.mubr.msk.f32.mxu0 %vm999_vm3, %v1335_v25  ;;  %v4561_v25 = vpack.c.bf16 %v3838_v24, %v3837_v23  ;;  %v3862_v23 = vld [vmem:[%s5664_s8 + $0x3] ss:$0 sm:$0xff] }
 0x4d7   : > { %v1344_v35 = vpop.f32.mrb[15].mxu1  ;;  %4224 = vmatmul.mubr.msk.f32.vlgmr.msra.gmra.mrb[16].mxu0 %vm999_vm3, %v1340_v27  ;;  %v1350_v38 = vadd.f32 %v4186_v30, %v3744_v20  ;;  %v3839_v27 = vld [vmem:[%s5659_s3 + $0x70] sm:$0xff] }
 0x4d8   : > { %v1345_v36 = vadd.f32 %v3744_v20, %v1344_v35  ;;  %4520 = vmatpush3.bf16.msra.mxu0 %v4517_v15  ;;  %v3857_v35 = vld [vmem:[%s5661_s5 + $0x60] sm:$0xff] }
 0x4d9   : > { %4522 = vmatprep.subr.bf16.mxu0 %v4521_v29 }
 0x4da   : > { %v4211_v40 = vpop.f32.mrb[16].mxu1  ;;  %4226 = vmatprep.mubr.msk.f32.mxu0 %vm999_vm3, %v1345_v36  ;;  %v3858_v36 = vld [vmem:[%s5661_s5 + $0x68] sm:$0xff] }
 0x4db   : > { %v1536_v41 = vadd.f32 %v4211_v40, %v3764_v37  ;;  %v1530_v42 = vpop.f32.mrb[17].mxu1  ;;  %4227 = vmatmul.mubr.msk.f32.gmra.mrb[18].mxu0 %vm999_vm3, %v1350_v38  ;;  %v4577_v38 = vpack.c.bf16 %v3858_v36, %v3857_v35  ;;  %v3860_v40 = vld [vmem:[%s5661_s5 + $0x78] sm:$0xff] }
 0x4dc   : > { %v1531_v46 = vadd.f32 %v3764_v37, %v1530_v42  ;;  %4524 = vmatpush3.bf16.msra.mxu0 %v4521_v29  ;;  %4267 = vmatprep.mubr.msk.f32.mxu0 %vm709_vm2, %v5011_v26  ;;  %v3840_v29 = vld [vmem:[%s5659_s3 + $0x78] sm:$0xff] }
 0x4dd   : > { %4526 = vmatprep.subr.bf16.mxu0 %v4525_v39  ;;  %v4565_v31 = vpack.c.bf16 %v3840_v29, %v3839_v27 }
 0x4de   : > { %v4509_v47 = vpack.c.bf16 %v1536_v41, %v1531_v46  ;;  %v4214_v48 = vpop.f32.mrb[18].mxu1 }
 0x4df   : > { %v1546_v50 = vadd.f32 %v4214_v48, %v3764_v37  ;;  %v1540_v51 = vpop.f32.mrb[19].mxu1  ;;  %4268 = vmatmul.mubr.msk.f32.vlgmr.msra.gmra.mrb[20].mxu0 %vm709_vm2, %v5016_v28 }
 0x4e0   : > { %v1541_v52 = vadd.f32 %v3764_v37, %v1540_v51  ;;  %4510 = vmatprep.subr.bf16.mxu1 %v4509_v47  ;;  %4270 = vmatprep.mubr.msk.f32.mxu0 %vm709_vm2, %v5031_v34 }
 0x4e1   : > { %4528 = vmatpush3.bf16.msra.mxu0 %v4525_v39  ;;  %4512 = vmatpush3.bf16.msra.mxu1 %v4509_v47  ;;  %v3859_v39 = vld [vmem:[%s5661_s5 + $0x70] sm:$0xff] }
 0x4e2   : > { %v4513_v53 = vpack.c.bf16 %v1546_v50, %v1541_v52  ;;  %4530 = vmatprep.subr.bf16.mxu0 %v4529_v49  ;;  %v4581_v41 = vpack.c.bf16 %v3860_v40, %v3859_v39 }
 0x4e3   : > { %4271 = vmatmul.mubr.msk.f32.gmra.mrb[22].mxu0 %vm709_vm2, %v5025_v32 }
 0x4e4   : > { %4514 = vmatprep.subr.bf16.mxu1 %v4513_v53  ;;  %4281 = vmatprep.mubr.msk.f32.mxu0 %vm709_vm2, %v5011_v26 }
 0x4e5   : > { %4532 = vmatpush3.bf16.msra.mxu0 %v4529_v49  ;;  %4516 = vmatpush3.bf16.msra.mxu1 %v4513_v53 }
 0x4e8   : > { %4282 = vmatmul.mubr.msk.f32.vlgmr.msra.gmra.mrb[24].mxu0 %vm709_vm2, %v5016_v28 }
 0x4e9   : > { %4284 = vmatprep.mubr.msk.f32.mxu0 %vm709_vm2, %v5031_v34 }
 0x4ec   : > { %4285 = vmatmul.mubr.msk.f32.gmra.mrb[26].mxu0 %vm709_vm2, %v5025_v32 }
 0x5aa   : > { %v5229_v54 = vpop.f32.mrb[16].mxu0 }
 0x5ab   : > { %v5231_v55 = vpop.f32.mrb[17].mxu0  ;;  %v1661_v56 = vsel %vm709_vm2, %v5229_v54, -inf }
 0x5ac   : > { %1662 = vmax.xlane.f32.xlu1 %v1661_v56  ;;  %v1658_v57 = vsel %vm709_vm2, %v5231_v55, -inf }
 0x5ad   : > { %1659 = vmax.xlane.f32.xlu0 %v1658_v57 }
 0x5ae   : > { %v5237_v58 = vpop.f32.mrb[18].mxu0 }
 0x5af   : > { %v5239_v59 = vpop.f32.mrb[19].mxu0  ;;  %v1667_v60 = vsel %vm709_vm2, %v5237_v58, -inf }
 0x5b0   : > { %1668 = vmax.xlane.f32.xlu1 %v1667_v60  ;;  %v1664_v62 = vsel %vm709_vm2, %v5239_v59, -inf }
 0x5b1   : > { %1665 = vmax.xlane.f32.xlu0 %v1664_v62 }
 0x5b2   : > { %v4269_v0 = vpop.f32.mrb[20].mxu0 }
 0x5b3   : > { %v2078_v1 = vpop.f32.mrb[21].mxu0  ;;  %v2084_v30 = vadd.f32 %v4269_v0, %v3795_v63 }
 0x5b4   : > { %v2079_v3 = vadd.f32 %v3795_v63, %v2078_v1 }
 0x5b6   : > { %v4272_v5 = vpop.f32.mrb[22].mxu0  ;;  %4309 = vmatprep.mubr.msk.f32.mxu0 %vm999_vm3, %v2079_v3 }
 0x5b7   : > { %v2088_v6 = vpop.f32.mrb[23].mxu0  ;;  %v2094_v37 = vadd.f32 %v4272_v5, %v3795_v63 }
 0x5b8   : > { %v2089_v33 = vadd.f32 %v3795_v63, %v2088_v6 }
 0x5bb   : > { %v4283_v9 = vpop.f32.mrb[24].mxu0 }
 0x5bc   : > { %v2182_v10 = vadd.f32 %v4283_v9, %v3805_v7  ;;  %v2176_v11 = vpop.f32.mrb[25].mxu0 }
 0x5bd   : > { %v2177_v12 = vadd.f32 %v3805_v7, %v2176_v11  ;;  %v5324_v11 = vld [vmem:[%s5662_s6 + $0x3] ss:$0 sm:$0xff] }
 0x5bf   : > { %v4541_v13 = vpack.c.bf16 %v2182_v10, %v2177_v12  ;;  %v4286_v14 = vpop.f32.mrb[26].mxu0 }
 0x5c0   : > { %v2192_v15 = vadd.f32 %v4286_v14, %v3805_v7  ;;  %v2186_v20 = vpop.f32.mrb[27].mxu0 }
 0x5c1   : > { %v2187_v21 = vadd.f32 %v3805_v7, %v2186_v20  ;;  %4543 = vmatprep.subr.msk.bf16.mxu0 %vm5057_vm4, %v4541_v13 }
 0x5c2   : > { %4546 = vmatpush3.bf16.xpose.msk.msra.mxu0 %vm5057_vm4, %v4541_v13 }
 0x5c3   : > { %v4547_v22 = vpack.c.bf16 %v2192_v15, %v2187_v21 }
 0x5c5   : > { %4549 = vmatprep.subr.msk.bf16.mxu0 %vm5057_vm4, %v4547_v22 }
 0x5ca   : > { %4552 = vmatpush3.bf16.xpose.msk.msra.mxu0 %vm5057_vm4, %v4547_v22 }
 0x5cb   : > { %4562 = vmatprep.subr.bf16.mxu0 %v4561_v25 }
 0x5d1   : > { %4310 = vmatmul.mubr.msk.f32.vlgmr.msra.gmra.mrb[28].mxu0 %vm999_vm3, %v2084_v30 }
 0x5d2   : > { %4312 = vmatprep.mubr.msk.f32.mxu0 %vm999_vm3, %v2089_v33  ;;  %4564 = vmatpush3.bf16.msra.mxu0 %v4561_v25 }
 0x5d3   : > { %4566 = vmatprep.subr.bf16.mxu0 %v4565_v31 }
 0x5d5   : > { %4313 = vmatmul.mubr.msk.f32.gmra.mrb[30].mxu0 %vm999_vm3, %v2094_v37 }
 0x5d6   : > { %4568 = vmatpush3.bf16.msra.mxu0 %v4565_v31  ;;  %4345 = vmatprep.mubr.msk.f32.mxu0 %vm709_vm2, %v5011_v26 }
 0x5d7   : > { %4578 = vmatprep.subr.bf16.mxu0 %v4577_v38 }
 0x5d9   : > { %4346 = vmatmul.mubr.msk.f32.vlgmr.msra.gmra.mrb[32].mxu0 %vm709_vm2, %v5016_v28 }
 0x5da   : > { %4348 = vmatprep.mubr.msk.f32.mxu0 %vm709_vm2, %v5031_v34  ;;  %4580 = vmatpush3.bf16.msra.mxu0 %v4577_v38  ;;  %v3781_v38 = vld [vmem:[%s5665_s9 + $0x8] sm:$0xff] }
 0x5db   : > { %4582 = vmatprep.subr.bf16.mxu0 %v4581_v41  ;;  %4243 = vmatprep.subr.mxu1 %v3781_v38 }
 0x5dd   : > { %4349 = vmatmul.mubr.msk.f32.gmra.mrb[34].mxu0 %vm709_vm2, %v5025_v32 }
 0x5de   : > { %4584 = vmatpush3.bf16.msra.mxu0 %v4581_v41  ;;  %4373 = vmatprep.mubr.msk.f32.mxu0 %vm709_vm2, %v5011_v26 }
 0x5e1   : > { %4374 = vmatmul.mubr.msk.f32.vlgmr.msra.gmra.mrb[36].mxu0 %vm709_vm2, %v5016_v28 }
 0x5e2   : > { %4376 = vmatprep.mubr.msk.f32.mxu0 %vm709_vm2, %v5031_v34 }
 0x5e5   : > { %4377 = vmatmul.mubr.msk.f32.gmra.mrb[38].mxu0 %vm709_vm2, %v5025_v32 }
 0x639   : > { %v1663_v42 = vpop.xlane.xlu1 %1662 }
 0x63a   : > { %v1671_v43 = vsub.f32 %v5229_v54, %v1663_v42  ;;  %v1660_v45 = vpop.xlane.xlu0 %1659 }
 0x63b   : > { %v1670_v46 = vsub.f32 %v5231_v55, %v1660_v45 }
 0x63c   : > { %v1676_v47 = vmul.f32 1.442695, %v1671_v43 }
 0x63d   : > { %v1674_v48 = vmul.f32 1.442695, %v1670_v46  ;;  %v1669_v49 = vpop.xlane.xlu1 %1668 }
 0x63e   : > { %4682 = vpow2.f32 %v1676_v47  ;;  %v1673_v50 = vsub.f32 %v5237_v58, %v1669_v49  ;;  %v1666_v51 = vpop.xlane.xlu0 %1665 }
 0x63f   : > { %4684 = vpow2.f32 %v1674_v48  ;;  %v1672_v52 = vsub.f32 %v5239_v59, %v1666_v51 }
 0x640   : > { %v1680_v53 = vmul.f32 1.442695, %v1673_v50 }
 0x641   : > { %v1678_v56 = vmul.f32 1.442695, %v1672_v52 }
 0x642   : > { %4686 = vpow2.f32 %v1680_v53 }
 0x643   : > { %4688 = vpow2.f32 %v1678_v56 }
 0x648   : > { %v4683_v57 = vpop.eup %4682 }
 0x649   : > { %v4685_v60 = vpop.eup %4684  ;;  %v1685_v54 = vsel %vm709_vm2, %v4683_v57, 0.0 }
 0x64a   : > { %1686 = vadd.xlane.f32.xlu1 %v1685_v54  ;;  %v1682_v55 = vsel %vm709_vm2, %v4685_v60, 0.0 }
 0x64b   : > { %1683 = vadd.xlane.f32.xlu0 %v1682_v55 }
 0x64c   : > { %v4687_v62 = vpop.eup %4686 }
 0x64d   : > { %v4689_v63 = vpop.eup %4688  ;;  %v1691_v58 = vsel %vm709_vm2, %v4687_v62, 0.0 }
 0x64e   : > { %1692 = vadd.xlane.f32.xlu1 %v1691_v58  ;;  %v1688_v0 = vsel %vm709_vm2, %v4689_v63, 0.0 }
 0x64f   : > { %1689 = vadd.xlane.f32.xlu0 %v1688_v0 }
 0x6a4   : > { %v4311_v59 = vpop.f32.mrb[28].mxu0 }
 0x6a5   : > { %v2383_v1 = vpop.f32.mrb[29].mxu0  ;;  %v2405_v3 = vsel %vm709_vm2, %v4311_v59, -inf }
 0x6a6   : > { %2406 = vmax.xlane.f32.xlu1 %v2405_v3  ;;  %v2402_v5 = vsel %vm709_vm2, %v2383_v1, -inf }
 0x6a7   : > { %2403 = vmax.xlane.f32.xlu0 %v2402_v5 }
 0x6a8   : > { %v5313_v6 = vpop.f32.mrb[30].mxu0 }
 0x6a9   : > { %v5315_v7 = vpop.f32.mrb[31].mxu0  ;;  %v2411_v9 = vsel %vm709_vm2, %v5313_v6, -inf }
 0x6aa   : > { %2412 = vmax.xlane.f32.xlu1 %v2411_v9  ;;  %v2408_v10 = vsel %vm709_vm2, %v5315_v7, -inf }
 0x6ab   : > { %2409 = vmax.xlane.f32.xlu0 %v2408_v10 }
 0x6ac   : > { %v4347_v12 = vpop.f32.mrb[32].mxu0 }
 0x6ad   : > { %v5327_v13 = vadd.f32 %v4347_v12, %v5324_v11  ;;  %v5329_v14 = vpop.f32.mrb[33].mxu0 }
 0x6b0   : > { %v4350_v15 = vpop.f32.mrb[34].mxu0 }
 0x6b1   : > { %v5332_v20 = vadd.f32 %v4350_v15, %v5324_v11  ;;  %v2739_v21 = vpop.f32.mrb[35].mxu0 }
 0x6b2   : > { %v5335_v22 = vadd.f32 %v5324_v11, %v2739_v21  ;;  %v3810_v21 = vld [vmem:[%s5661_s5 + $0x40] sm:$0xff] }
 0x6b4   : > { %v4375_v24 = vpop.f32.mrb[36].mxu0 }
 0x6b5   : > { %v2931_v25 = vadd.f32 %v4375_v24, %v3862_v23  ;;  %v2925_v27 = vpop.f32.mrb[37].mxu0 }
 0x6b6   : > { %v2926_v29 = vadd.f32 %v3862_v23, %v2925_v27 }
 0x6b8   : > { %v4597_v30 = vpack.c.bf16 %v2931_v25, %v2926_v29  ;;  %v4378_v31 = vpop.f32.mrb[38].mxu0 }
 0x6b9   : > { %v2941_v33 = vadd.f32 %v4378_v31, %v3862_v23  ;;  %v2935_v35 = vpop.f32.mrb[39].mxu0  ;;  %v3812_v31 = vld [vmem:[%s5661_s5 + $0x50] sm:$0xff] }
 0x6ba   : > { %v2936_v36 = vadd.f32 %v3862_v23, %v2935_v35  ;;  %4598 = vmatprep.subr.bf16.mxu0 %v4597_v30  ;;  %v3811_v23 = vld [vmem:[%s5661_s5 + $0x48] sm:$0xff] }
 0x6bb   : > { %4600 = vmatpush3.bf16.msra.mxu0 %v4597_v30  ;;  %v4533_v27 = vpack.c.bf16 %v3811_v23, %v3810_v21 }
 0x6bc   : > { %v4601_v37 = vpack.c.bf16 %v2941_v33, %v2936_v36  ;;  %v3813_v33 = vld [vmem:[%s5661_s5 + $0x58] sm:$0xff] }
 0x6bd   : > { %v4537_v35 = vpack.c.bf16 %v3813_v33, %v3812_v31 }
 0x6be   : > { %4602 = vmatprep.subr.bf16.mxu0 %v4601_v37 }
 0x6bf   : > { %4604 = vmatpush3.bf16.msra.mxu0 %v4601_v37 }
 0x6d7   : > { %v1687_v39 = vpop.xlane.xlu1 %1686 }
 0x6d8   : > { %4690 = vrcp.f32 %v1687_v39  ;;  %v1684_v40 = vpop.xlane.xlu0 %1683  ;;  %v3815_v39 = vld [vmem:[%s5664_s8 + $0x2] ss:$0 sm:$0xff] }
 0x6d9   : > { %4692 = vrcp.f32 %v1684_v40 }
 0x6db   : > { %v1693_v41 = vpop.xlane.xlu1 %1692 }
 0x6dc   : > { %4694 = vrcp.f32 %v1693_v41  ;;  %v1690_v42 = vpop.xlane.xlu0 %1689 }
 0x6dd   : > { %4696 = vrcp.f32 %v1690_v42 }
 0x6e2   : > { %v4691_v43 = vpop.eup %4690 }
 0x6e3   : > { %v4693_v45 = vpop.eup %4692  ;;  %v5345_v47 = vmul.f32 %v4691_v43, %v4683_v57 }
 0x6e4   : > { %v5343_v46 = vmul.f32 %v4693_v45, %v4685_v60 }
 0x6e6   : > { %v4695_v48 = vpop.eup %4694  ;;  %4237 = vmatprep.mubr.msk.f32.mxu1 %vm709_vm2, %v5343_v46 }
 0x6e7   : > { %v4697_v49 = vpop.eup %4696  ;;  %4238 = vmatmul.mubr.msk.f32.vlgmr.msra.gmra.mrb[20].mxu1 %vm709_vm2, %v5345_v47  ;;  %v5353_v51 = vmul.f32 %v4695_v48, %v4687_v62 }
 0x6e8   : > { %v5351_v50 = vmul.f32 %v4697_v49, %v4689_v63  ;;  %4244 = vmatpush3.msra.mxu1 %v3781_v38 }
 0x6ea   : > { %4240 = vmatprep.mubr.msk.f32.mxu1 %vm709_vm2, %v5351_v50 }
 0x6eb   : > { %4241 = vmatmul.mubr.msk.f32.gmra.mrb[22].mxu1 %vm709_vm2, %v5353_v51 }
 0x733   : > { %v2407_v52 = vpop.xlane.xlu1 %2406 }
 0x734   : > { %v2415_v53 = vsub.f32 %v4311_v59, %v2407_v52  ;;  %v2404_v56 = vpop.xlane.xlu0 %2403  ;;  %v1254_v59 = vld [vmem:[%s5665_s9] sm:$0xff] }
 0x735   : > { %v2414_v57 = vsub.f32 %v2383_v1, %v2404_v56  ;;  %4251 = vmatprep.subr.mxu1 %v1254_v59 }
 0x736   : > { %v2420_v60 = vmul.f32 1.442695, %v2415_v53 }
 0x737   : > { %v2418_v54 = vmul.f32 1.442695, %v2414_v57  ;;  %v2413_v55 = vpop.xlane.xlu1 %2412  ;;  %v3832_v57 = vld [vmem:[%s5665_s9 + $0x10] sm:$0xff] }
 0x738   : > { %4698 = vpow2.f32 %v2420_v60  ;;  %v2417_v63 = vsub.f32 %v5313_v6, %v2413_v55  ;;  %v2410_v58 = vpop.xlane.xlu0 %2409 }
 0x739   : > { %4700 = vpow2.f32 %v2418_v54  ;;  %v2416_v62 = vsub.f32 %v5315_v7, %v2410_v58 }
 0x73a   : > { %v2424_v0 = vmul.f32 1.442695, %v2417_v63 }
 0x73b   : > { %v2422_v3 = vmul.f32 1.442695, %v2416_v62  ;;  %v3847_v62 = vld [vmem:[%s5660_s4 + $0x60] sm:$0xff] }
 0x73c   : > { %4702 = vpow2.f32 %v2424_v0  ;;  %v3848_v0 = vld [vmem:[%s5660_s4 + $0x68] sm:$0xff] }
 0x73d   : > { %4704 = vpow2.f32 %v2422_v3  ;;  %v4569_v3 = vpack.c.bf16 %v3848_v0, %v3847_v62  ;;  %v3879_v62 = vld [vmem:[%s5665_s9 + $0x18] sm:$0xff] }
 0x742   : > { %v5364_v1 = vpop.eup %4698 }
 0x743   : > { %v4701_v5 = vpop.eup %4700  ;;  %v2429_v9 = vsel %vm709_vm2, %v5364_v1, 0.0 }
 0x744   : > { %2430 = vadd.xlane.f32.xlu1 %v2429_v9  ;;  %v2426_v6 = vsel %vm709_vm2, %v4701_v5, 0.0 }
 0x745   : > { %2427 = vadd.xlane.f32.xlu0 %v2426_v6 }
 0x746   : > { %v5369_v7 = vpop.eup %4702 }
 0x747   : > { %v5371_v10 = vpop.eup %4704  ;;  %v2435_v12 = vsel %vm709_vm2, %v5369_v7, 0.0 }
 0x748   : > { %2436 = vadd.xlane.f32.xlu1 %v2435_v12  ;;  %v2432_v15 = vsel %vm709_vm2, %v5371_v10, 0.0  ;;  %v2730_v12 = vadd.f32 %v5324_v11, %v5329_v14 }
 0x749   : > { %2433 = vadd.xlane.f32.xlu0 %v2432_v15  ;;  %v3852_v15 = vld [vmem:[%s5663_s7 + $0x3] ss:$0 sm:$0xff] }
 0x7ba   : > { %v4239_v24 = vpop.f32.mrb[20].mxu1 }
 0x7bb   : > { %v1784_v25 = vpop.f32.mrb[21].mxu1 }
 0x7bc   : > { %4245 = vmatprep.mubr.msk.f32.mxu1 %vm999_vm3, %v1784_v25 }
 0x7bd   : > { %4246 = vmatmul.mubr.msk.f32.vlgmr.msra.gmra.mrb[24].mxu1 %vm999_vm3, %v4239_v24 }
 0x7be   : > { %v4242_v29 = vpop.f32.mrb[22].mxu1  ;;  %4252 = vmatpush3.msra.mxu1 %v1254_v59  ;;  %v3849_v59 = vld [vmem:[%s5660_s4 + $0x70] sm:$0xff] }
 0x7bf   : > { %v1794_v30 = vpop.f32.mrb[23].mxu1  ;;  %4534 = vmatprep.subr.bf16.mxu1 %v4533_v27 }
 0x7c0   : > { %4248 = vmatprep.mubr.msk.f32.mxu1 %vm999_vm3, %v1794_v30 }
 0x7c1   : > { %4249 = vmatmul.mubr.msk.f32.gmra.mrb[26].mxu1 %vm999_vm3, %v4242_v29 }
 0x7c2   : > { %4253 = vmatprep.mubr.msk.f32.mxu1 %vm999_vm3, %v5179_v17 }
 0x7c5   : > { %4254 = vmatmul.mubr.msk.f32.vlgmr.msra.gmra.mrb[24].mxu1 %vm999_vm3, %v5177_v16 }
 0x7c6   : > { %4256 = vmatprep.mubr.msk.f32.mxu1 %vm999_vm3, %v5183_v19  ;;  %4536 = vmatpush3.bf16.msra.mxu1 %v4533_v27  ;;  %v1702_v19 = vadd.f32 %v5343_v46, %v5121_v61 }
 0x7c7   : > { %4538 = vmatprep.subr.bf16.mxu1 %v4537_v35 }
 0x7c9   : > { %4257 = vmatmul.mubr.msk.f32.gmra.mrb[26].mxu1 %vm999_vm3, %v5181_v18 }
 0x7ca   : > { %4540 = vmatpush3.bf16.msra.mxu1 %v4537_v35  ;;  %4295 = vmatprep.mubr.msk.f32.mxu1 %vm709_vm2, %v5011_v26 }
 0x7cd   : > { %4296 = vmatmul.mubr.msk.f32.vlgmr.msra.gmra.mrb[28].mxu1 %vm709_vm2, %v5016_v28 }
 0x7ce   : > { %4298 = vmatprep.mubr.msk.f32.mxu1 %vm709_vm2, %v5031_v34 }
 0x7d1   : > { %4299 = vmatmul.mubr.msk.f32.gmra.mrb[30].mxu1 %vm709_vm2, %v5025_v32  ;;  %v2431_v37 = vpop.xlane.xlu1 %2430 }
 0x7d2   : > { %v2428_v16 = vpop.xlane.xlu0 %2427 }
 0x7d3   : > { %4706 = vrcp.f32 %v2428_v16 }
 0x7d4   : > { %4708 = vrcp.f32 %v2431_v37 }
 0x7d5   : > { %v2437_v40 = vpop.xlane.xlu1 %2436 }
 0x7d6   : > { %v2434_v38 = vpop.xlane.xlu0 %2433 }
 0x7d7   : > { %4710 = vrcp.f32 %v2434_v38 }
 0x7d8   : > { %4712 = vrcp.f32 %v2437_v40 }
 0x7dd   : > { %v4707_v17 = vpop.eup %4706 }
 0x7de   : > { %v2439_v18 = vmul.f32 %v4707_v17, %v4701_v5  ;;  %v4709_v56 = vpop.eup %4708 }
 0x7df   : > { %v5421_v54 = vmul.f32 %v4709_v56, %v5364_v1  ;;  %v3850_v1 = vld [vmem:[%s5660_s4 + $0x78] sm:$0xff] }
 0x7e0   : > { %v5411_v36 = vadd.f32 %v2439_v18, %v1702_v19  ;;  %4323 = vmatprep.mubr.msk.f32.mxu1 %vm709_vm2, %v2439_v18  ;;  %v4573_v6 = vpack.c.bf16 %v3850_v1, %v3849_v59 }
 0x7e1   : > { %v4711_v60 = vpop.eup %4710 }
 0x7e2   : > { %v4713_v55 = vpop.eup %4712  ;;  %v5424_v63 = vmul.f32 %v4711_v60, %v5371_v10 }
 0x7e3   : > { %v5431_v58 = vmul.f32 %v4713_v55, %v5369_v7 }
 0x8a0   : > { %v4297_v41 = vpop.f32.mrb[28].mxu1 }
 0x8a1   : > { %v2280_v42 = vadd.f32 %v4297_v41, %v3815_v39  ;;  %v2274_v43 = vpop.f32.mrb[29].mxu1 }
 0x8a2   : > { %v2275_v45 = vadd.f32 %v3815_v39, %v2274_v43 }
 0x8a4   : > { %v4553_v61 = vpack.c.bf16 %v2280_v42, %v2275_v45  ;;  %v4300_v46 = vpop.f32.mrb[30].mxu1 }
 0x8a5   : > { %v2290_v48 = vadd.f32 %v4300_v46, %v3815_v39  ;;  %v2284_v49 = vpop.f32.mrb[31].mxu1 }
 0x8a6   : > { %v2285_v52 = vadd.f32 %v3815_v39, %v2284_v49  ;;  %4554 = vmatprep.subr.bf16.mxu1 %v4553_v61 }
 0x8a7   : > { %4556 = vmatpush3.bf16.msra.mxu1 %v4553_v61 }
 0x8a8   : > { %v4557_v53 = vpack.c.bf16 %v2290_v48, %v2285_v52 }
 0x8aa   : > { %4558 = vmatprep.subr.bf16.mxu1 %v4557_v53 }
 0x8ab   : > { %4560 = vmatpush3.bf16.msra.mxu1 %v4557_v53 }
 0x8ac   : > { %4329 = vmatprep.subr.mxu1 %v3832_v57 }
 0x8ae   : > { %4324 = vmatmul.mubr.msk.f32.vlgmr.msra.gmra.mrb[32].mxu1 %vm709_vm2, %v5421_v54 }
 0x8af   : > { %4326 = vmatprep.mubr.msk.f32.mxu1 %vm709_vm2, %v5424_v63  ;;  %4330 = vmatpush3.msra.mxu1 %v3832_v57 }
 0x8b0   : > { %4570 = vmatprep.subr.bf16.mxu1 %v4569_v3 }
 0x8b2   : > { %4327 = vmatmul.mubr.msk.f32.gmra.mrb[34].mxu1 %vm709_vm2, %v5431_v58 }
 0x981   : > { %v4325_v5 = vpop.f32.mrb[32].mxu1 }
 0x982   : > { %v2528_v9 = vpop.f32.mrb[33].mxu1 }
 0x983   : > { %4331 = vmatprep.mubr.msk.f32.mxu1 %vm999_vm3, %v2528_v9 }
 0x984   : > { %4332 = vmatmul.mubr.msk.f32.vlgmr.msra.gmra.mrb[24].mxu1 %vm999_vm3, %v4325_v5  ;;  %v1703_v5 = vadd.f32 %v5345_v47, %v5131_v2 }
 0x985   : > { %v4328_v7 = vpop.f32.mrb[34].mxu1  ;;  %4572 = vmatpush3.bf16.msra.mxu1 %v4569_v3 }
 0x986   : > { %v2538_v10 = vpop.f32.mrb[35].mxu1  ;;  %4574 = vmatprep.subr.bf16.mxu1 %v4573_v6 }
 0x987   : > { %4334 = vmatprep.mubr.msk.f32.mxu1 %vm999_vm3, %v2538_v10 }
 0x988   : > { %4335 = vmatmul.mubr.msk.f32.gmra.mrb[26].mxu1 %vm999_vm3, %v4328_v7  ;;  %v2447_v7 = vadd.f32 %v5421_v54, %v1703_v5  ;;  %v3392_v5 = vld [vmem:[%s5669_s13 + $0x8] sm:$0xff] }
 0x989   : > { %4576 = vmatpush3.bf16.msra.mxu1 %v4573_v6  ;;  %4359 = vmatprep.mubr.msk.f32.mxu1 %vm709_vm2, %v5011_v26 }
 0x98c   : > { %4360 = vmatmul.mubr.msk.f32.vlgmr.msra.gmra.mrb[36].mxu1 %vm709_vm2, %v5016_v28 }
 0x98d   : > { %4362 = vmatprep.mubr.msk.f32.mxu1 %vm709_vm2, %v5031_v34 }
 0x990   : > { %4363 = vmatmul.mubr.msk.f32.gmra.mrb[38].mxu1 %vm709_vm2, %v5025_v32 }
 0x991   : > { %4387 = vmatprep.mubr.msk.f32.mxu1 %vm999_vm3, %v2730_v12 }
 0xa5f   : > { %v4361_v21 = vpop.f32.mrb[36].mxu1 }
 0xa60   : > { %v2833_v23 = vadd.f32 %v4361_v21, %v3852_v15  ;;  %v2827_v24 = vpop.f32.mrb[37].mxu1 }
 0xa61   : > { %v2828_v25 = vadd.f32 %v3852_v15, %v2827_v24  ;;  %v1704_v24 = vadd.f32 %v5351_v50, %v5133_v4 }
 0xa63   : > { %v4585_v27 = vpack.c.bf16 %v2833_v23, %v2828_v25  ;;  %v4364_v29 = vpop.f32.mrb[38].mxu1 }
 0xa64   : > { %v2843_v30 = vadd.f32 %v4364_v29, %v3852_v15  ;;  %v2837_v31 = vpop.f32.mrb[39].mxu1  ;;  %v2448_v29 = vadd.f32 %v5424_v63, %v1704_v24 }
 0xa65   : > { %v2838_v33 = vadd.f32 %v3852_v15, %v2837_v31  ;;  %4587 = vmatprep.subr.msk.bf16.mxu1 %vm5057_vm4, %v4585_v27  ;;  %v1705_v15 = vadd.f32 %v5353_v51, %v5145_v8 }
 0xa66   : > { %4590 = vmatpush3.bf16.xpose.msk.msra.mxu1 %vm5057_vm4, %v4585_v27 }
 0xa67   : > { %v4591_v11 = vpack.c.bf16 %v2843_v30, %v2838_v33  ;;  %v2449_v47 = vadd.f32 %v5431_v58, %v1705_v15 }
 0xa69   : > { %4593 = vmatprep.subr.msk.bf16.mxu1 %vm5057_vm4, %v4591_v11 }
 0xa6e   : > { %4596 = vmatpush3.bf16.xpose.msk.msra.mxu1 %vm5057_vm4, %v4591_v11  ;;  %v3884_v11 = vld [vmem:[%s5666_s10] ss:$0 sm:$0xff] }
 0xa6f   : > { %4407 = vmatprep.subr.mxu1 %v3879_v62 }
 0xa75   : > { %4388 = vmatmul.mubr.msk.f32.vlgmr.msra.gmra.mrb[40].mxu1 %vm999_vm3, %v5327_v13 }
 0xa76   : > { %4390 = vmatprep.mubr.msk.f32.mxu1 %vm999_vm3, %v5335_v22  ;;  %4408 = vmatpush3.msra.mxu1 %v3879_v62 }
 0xa79   : > { %4391 = vmatmul.mubr.msk.f32.gmra.mrb[42].mxu1 %vm999_vm3, %v5332_v20 }
 0xb48   : > { %v4389_v14 = vpop.f32.mrb[40].mxu1 }
 0xb49   : > { %v3034_v35 = vpop.f32.mrb[41].mxu1  ;;  %v3056_v16 = vsel %vm709_vm2, %v4389_v14, -inf }
 0xb4a   : > { %3057 = vmax.xlane.f32.xlu1 %v3056_v16  ;;  %v3053_v17 = vsel %vm709_vm2, %v3034_v35, -inf }
 0xb4b   : > { %3054 = vmax.xlane.f32.xlu0 %v3053_v17 }
 0xb4c   : > { %v4392_v19 = vpop.f32.mrb[42].mxu1 }
 0xb4d   : > { %v3044_v44 = vpop.f32.mrb[43].mxu1  ;;  %v3062_v18 = vsel %vm709_vm2, %v4392_v19, -inf }
 0xb4e   : > { %3063 = vmax.xlane.f32.xlu1 %v3062_v18  ;;  %v3059_v13 = vsel %vm709_vm2, %v3044_v44, -inf }
 0xb4f   : > { %3060 = vmax.xlane.f32.xlu0 %v3059_v13 }
 0xbd7   : > { %v3058_v22 = vpop.xlane.xlu1 %3057 }
 0xbd8   : > { %v3066_v37 = vsub.f32 %v4389_v14, %v3058_v22  ;;  %v3055_v38 = vpop.xlane.xlu0 %3054 }
 0xbd9   : > { %v3065_v20 = vsub.f32 %v3034_v35, %v3055_v38 }
 0xbda   : > { %v3071_v39 = vmul.f32 1.442695, %v3066_v37 }
 0xbdb   : > { %v3069_v40 = vmul.f32 1.442695, %v3065_v20  ;;  %v3064_v41 = vpop.xlane.xlu1 %3063 }
 0xbdc   : > { %4714 = vpow2.f32 %v3071_v39  ;;  %v3068_v42 = vsub.f32 %v4392_v19, %v3064_v41  ;;  %v3061_v43 = vpop.xlane.xlu0 %3060 }
 0xbdd   : > { %4716 = vpow2.f32 %v3069_v40  ;;  %v3067_v45 = vsub.f32 %v3044_v44, %v3061_v43 }
 0xbde   : > { %v3075_v61 = vmul.f32 1.442695, %v3068_v42 }
 0xbdf   : > { %v3073_v46 = vmul.f32 1.442695, %v3067_v45 }
 0xbe0   : > { %4718 = vpow2.f32 %v3075_v61 }
 0xbe1   : > { %4720 = vpow2.f32 %v3073_v46 }
 0xbe6   : > { %v4715_v48 = vpop.eup %4714 }
 0xbe7   : > { %v4717_v49 = vpop.eup %4716  ;;  %v3080_v52 = vsel %vm709_vm2, %v4715_v48, 0.0 }
 0xbe8   : > { %3081 = vadd.xlane.f32.xlu1 %v3080_v52  ;;  %v3077_v53 = vsel %vm709_vm2, %v4717_v49, 0.0 }
 0xbe9   : > { %3078 = vadd.xlane.f32.xlu0 %v3077_v53 }
 0xbea   : > { %v4719_v56 = vpop.eup %4718 }
 0xbeb   : > { %v4721_v57 = vpop.eup %4720  ;;  %v3086_v60 = vsel %vm709_vm2, %v4719_v56, 0.0 }
 0xbec   : > { %3087 = vadd.xlane.f32.xlu1 %v3086_v60  ;;  %v3083_v55 = vsel %vm709_vm2, %v4721_v57, 0.0 }
 0xbed   : > { %3084 = vadd.xlane.f32.xlu0 %v3083_v55 }
 0xc75   : > { %v3082_v0 = vpop.xlane.xlu1 %3081 }
 0xc76   : > { %4722 = vrcp.f32 %v3082_v0  ;;  %v3079_v3 = vpop.xlane.xlu0 %3078 }
 0xc77   : > { %4724 = vrcp.f32 %v3079_v3 }
 0xc79   : > { %v3088_v59 = vpop.xlane.xlu1 %3087 }
 0xc7a   : > { %4726 = vrcp.f32 %v3088_v59  ;;  %v3085_v1 = vpop.xlane.xlu0 %3084 }
 0xc7b   : > { %4728 = vrcp.f32 %v3085_v1  ;;  %v3391_v1 = vld [vmem:[%s5669_s13] sm:$0xff] }
 0xc80   : > { %v4723_v9 = vpop.eup %4722 }
 0xc81   : > { %v4725_v6 = vpop.eup %4724  ;;  %v3092_v10 = vmul.f32 %v4723_v9, %v4715_v48  ;;  %v4605_v9 = vpack.c.bf16 %v3392_v5, %v3391_v1 }
 0xc82   : > { %v3090_v12 = vmul.f32 %v4725_v6, %v4717_v49  ;;  %v3393_v6 = vld [vmem:[%s5669_s13 + $0x10] sm:$0xff] }
 0xc83   : > { %v3098_v21 = vadd.f32 %v3092_v10, %v2447_v7  ;;  %v3394_v7 = vld [vmem:[%s5669_s13 + $0x18] sm:$0xff]  ;;  %4606 = vmatprep.subr.bf16.mxu0 %v4605_v9 }
 0xc84   : > { %v4727_v23 = vpop.eup %4726  ;;  %v3097_v25 = vadd.f32 %v3090_v12, %v5411_v36  ;;  %4401 = vmatprep.mubr.msk.f32.mxu0 %vm709_vm2, %v3090_v12 }
 0xc85   : > { %v4729_v2 = vpop.eup %4728  ;;  %v3578_v54 = vmul.f32 0.25, %v3098_v21  ;;  %4402 = vmatmul.mubr.msk.f32.vlgmr.msra.gmra.mrb[40].mxu0 %vm709_vm2, %v3092_v10  ;;  %v3096_v27 = vmul.f32 %v4727_v23, %v4719_v56  ;;  %v4609_v10 = vpack.c.bf16 %v3394_v7, %v3393_v6 }
 0xc86   : > { %v3577_v30 = vmul.f32 0.25, %v3097_v25  ;;  %v3094_v8 = vmul.f32 %v4729_v2, %v4721_v57  ;;  %4608 = vmatpush3.bf16.msra.mxu0 %v4605_v9 }
 0xc87   : > { %3582 = vst.msk [vmem:[%s5505_s20 + $0x8] sm:$0xff] %vm709_vm2, %v3578_v54  ;;  %v3100_v4 = vadd.f32 %v3096_v27, %v2449_v47  ;;  %4610 = vmatprep.subr.bf16.mxu0 %v4609_v10 }
 0xc88   : > { %3581 = vst.msk [vmem:[%s5505_s20] sm:$0xff] %vm709_vm2, %v3577_v30  ;;  %v3099_v50 = vadd.f32 %v3094_v8, %v2448_v29  ;;  %4404 = vmatprep.mubr.msk.f32.mxu0 %vm709_vm2, %v3094_v8 }
 0xc89   : > { %4405 = vmatmul.mubr.msk.f32.gmra.mrb[42].mxu0 %vm709_vm2, %v3096_v27  ;;  %v3580_v51 = vmul.f32 0.25, %v3100_v4  ;;  %v3885_v4 = vld [vmem:[%s5667_s11] ss:$0 sm:$0xff] }
 0xc8a   : > { %v3579_v36 = vmul.f32 0.25, %v3099_v50  ;;  %4612 = vmatpush3.bf16.msra.mxu0 %v4609_v10 }
 0xc8b   : > { %3584 = vst.msk [vmem:[%s5505_s20 + $0x18] sm:$0xff] %vm709_vm2, %v3580_v51 }
 0xc8c   : > { %3583 = vst.msk [vmem:[%s5505_s20 + $0x10] sm:$0xff] %vm709_vm2, %v3579_v36  ;;  %s4750_s20 = sshll.u32 %s4810_s0, 4  ;;  %s4751_s20 = int_to_ptr.vmem [resolvable:$false] %s4750_s20 }
 0xc8d   : > { %s4752_s23 = scalar_lea.vmem %s4751_s20, 1024  ;;  %p4753_p0 = scmp.lt.s32.totalorder %s5592_s24, %s4751_s20 }
 0xc8e   : > { %p4754_p1 = scmp.lt.s32.totalorder %s4752_s23, %s4746_s29 }
 0xc90   : > { %p4755_p2 = por %p4754_p1, %p4753_p0 }
 0xc92   : > { %p4756_p3 = pnand %p4755_p2, %p4749_p13 }
 0xd58   : > { %v4403_v63 = vpop.f32.mrb[40].mxu0 }
 0xd59   : > { %v3179_v58 = vpop.f32.mrb[41].mxu0 }
 0xd5a   : > { %4409 = vmatprep.mubr.msk.f32.mxu1 %vm999_vm3, %v3179_v58 }
 0xd5b   : > { %4410 = vmatmul.mubr.msk.f32.vlgmr.msra.gmra.mrb[24].mxu1 %vm999_vm3, %v4403_v63  ;;  %v3886_v63 = vld [vmem:[%s5668_s12] ss:$0 sm:$0xff] }
 0xd5c   : > { %v4406_v31 = vpop.f32.mrb[42].mxu0 }
 0xd5d   : > { %v3189_v33 = vpop.f32.mrb[43].mxu0 }
 0xd5e   : > { %4412 = vmatprep.mubr.msk.f32.mxu1 %vm999_vm3, %v3189_v33 }
 0xd5f   : > { %4413 = vmatmul.mubr.msk.f32.gmra.mrb[26].mxu1 %vm999_vm3, %v4406_v31 }
 0xe2e   : > { %v4411_v14 = vpop.f32.mrb[24].mxu1 }
 0xe2f   : > { %v3309_v35 = vadd.f32 %v4411_v14, %v3884_v11  ;;  %v3278_v16 = vpop.f32.mrb[25].mxu1 }
 0xe30   : > { %v3308_v17 = vadd.f32 %v3884_v11, %v3278_v16 }
 0xe31   : > { %v3313_v19 = vadd.f32 %v3309_v35, %v5016_v28 }
 0xe32   : > { %v4414_v44 = vpop.f32.mrb[26].mxu1  ;;  %v3312_v18 = vadd.f32 %v3308_v17, %v5011_v26 }
 0xe33   : > { %v3311_v13 = vadd.f32 %v4414_v44, %v3884_v11  ;;  %v3288_v22 = vpop.f32.mrb[27].mxu1  ;;  %v3321_v37 = vsel %vm709_vm2, %v3313_v19, 0.0 }
 0xe34   : > { %v3310_v38 = vadd.f32 %v3884_v11, %v3288_v22  ;;  %3322 = vadd.xlane.f32.xlu1 %v3321_v37  ;;  %v3318_v20 = vsel %vm709_vm2, %v3312_v18, 0.0  ;;  %v3887_v22 = vld [vmem:[%s5670_s14] ss:$0 sm:$0xff] }
 0xe35   : > { %3319 = vadd.xlane.f32.xlu0 %v3318_v20  ;;  %v3315_v39 = vadd.f32 %v3311_v13, %v5025_v32 }
 0xe36   : > { %v3314_v40 = vadd.f32 %v3310_v38, %v5031_v34 }
 0xe37   : > { %v3327_v41 = vsel %vm709_vm2, %v3315_v39, 0.0 }
 0xe38   : > { %3328 = vadd.xlane.f32.xlu1 %v3327_v41  ;;  %v3324_v28 = vsel %vm709_vm2, %v3314_v40, 0.0 }
 0xe39   : > { %3325 = vadd.xlane.f32.xlu0 %v3324_v28 }
 0xec1   : > { %v3323_v26 = vpop.xlane.xlu1 %3322 }
 0xec2   : > { %v3332_v42 = vmul.f32 0.03125, %v3323_v26  ;;  %v3320_v43 = vpop.xlane.xlu0 %3319 }
 0xec3   : > { %v3331_v45 = vmul.f32 0.03125, %v3320_v43 }
 0xec4   : > { %v3336_v61 = vsub.f32 %v3313_v19, %v3332_v42 }
 0xec5   : > { %v3335_v46 = vsub.f32 %v3312_v18, %v3331_v45  ;;  %v3329_v48 = vpop.xlane.xlu1 %3328 }
 0xec6   : > { %v3334_v49 = vmul.f32 0.03125, %v3329_v48  ;;  %v3326_v52 = vpop.xlane.xlu0 %3325  ;;  %v3340_v53 = vmul.f32 %v3336_v61, %v3336_v61 }
 0xec7   : > { %v3333_v56 = vmul.f32 0.03125, %v3326_v52  ;;  %v3339_v32 = vmul.f32 %v3335_v46, %v3335_v46 }
 0xec8   : > { %v3338_v57 = vsub.f32 %v3315_v39, %v3334_v49  ;;  %v3346_v34 = vsel %vm709_vm2, %v3340_v53, 0.0 }
 0xec9   : > { %v3337_v60 = vsub.f32 %v3314_v40, %v3333_v56  ;;  %3347 = vadd.xlane.f32.xlu1 %v3346_v34  ;;  %v3343_v55 = vsel %vm709_vm2, %v3339_v32, 0.0 }
 0xeca   : > { %3344 = vadd.xlane.f32.xlu0 %v3343_v55  ;;  %v3342_v62 = vmul.f32 %v3338_v57, %v3338_v57 }
 0xecb   : > { %v3341_v0 = vmul.f32 %v3337_v60, %v3337_v60 }
 0xecc   : > { %v3352_v3 = vsel %vm709_vm2, %v3342_v62, 0.0 }
 0xecd   : > { %3353 = vadd.xlane.f32.xlu1 %v3352_v3  ;;  %v3349_v59 = vsel %vm709_vm2, %v3341_v0, 0.0 }
 0xece   : > { %3350 = vadd.xlane.f32.xlu0 %v3349_v59 }
 0xf56   : > { %v3348_v12 = vpop.xlane.xlu1 %3347 }
 0xf57   : > { %v3356_v15 = vmul.f32 0.03125, %v3348_v12  ;;  %v3345_v21 = vpop.xlane.xlu0 %3344 }
 0xf58   : > { %v3355_v23 = vmul.f32 0.03125, %v3345_v21 }
 0xf59   : > { %v3360_v24 = vadd.f32 1e-05, %v3356_v15 }
 0xf5a   : > { %v3359_v25 = vadd.f32 1e-05, %v3355_v23  ;;  %v3354_v2 = vpop.xlane.xlu1 %3353 }
 0xf5b   : > { %4730 = vrsqrt.f32 %v3360_v24  ;;  %v3358_v47 = vmul.f32 0.03125, %v3354_v2  ;;  %v3351_v54 = vpop.xlane.xlu0 %3350 }
 0xf5c   : > { %4732 = vrsqrt.f32 %v3359_v25  ;;  %v3357_v27 = vmul.f32 0.03125, %v3351_v54 }
 0xf5d   : > { %v3362_v29 = vadd.f32 1e-05, %v3358_v47 }
 0xf5e   : > { %v3361_v30 = vadd.f32 1e-05, %v3357_v27 }
 0xf5f   : > { %4734 = vrsqrt.f32 %v3362_v29 }
 0xf60   : > { %4736 = vrsqrt.f32 %v3361_v30 }
 0xf65   : > { %v4731_v8 = vpop.eup %4730 }
 0xf66   : > { %v4733_v50 = vpop.eup %4732  ;;  %v3368_v51 = vmul.f32 %v4731_v8, %v3336_v61 }
 0xf67   : > { %v3367_v36 = vmul.f32 %v4733_v50, %v3335_v46 }
 0xf68   : > { %v3378_v58 = vmul.f32 %v3885_v4, %v3368_v51 }
 0xf69   : > { %v4735_v31 = vpop.eup %4734  ;;  %v3377_v33 = vmul.f32 %v3885_v4, %v3367_v36 }
 0xf6a   : > { %v4737_v11 = vpop.eup %4736  ;;  %v3370_v14 = vmul.f32 %v4735_v31, %v3338_v57  ;;  %v3388_v17 = vadd.f32 %v3886_v63, %v3378_v58 }
 0xf6b   : > { %v3387_v35 = vadd.f32 %v3886_v63, %v3377_v33  ;;  %v3369_v16 = vmul.f32 %v4737_v11, %v3337_v60 }
 0xf6c   : > { %v3380_v19 = vmul.f32 %v3885_v4, %v3370_v14 }
 0xf6d   : > { %4423 = vmatprep.mubr.msk.f32.mxu0 %vm709_vm2, %v3387_v35  ;;  %v3379_v44 = vmul.f32 %v3885_v4, %v3369_v16 }
 0xf6e   : > { %4424 = vmatmul.mubr.msk.f32.vlgmr.msra.gmra.mrb[44].mxu0 %vm709_vm2, %v3388_v17  ;;  %v3390_v13 = vadd.f32 %v3886_v63, %v3380_v19 }
 0xf6f   : > { %v3389_v18 = vadd.f32 %v3886_v63, %v3379_v44 }
 0xf71   : > { %4426 = vmatprep.mubr.msk.f32.mxu0 %vm709_vm2, %v3389_v18 }
 0xf72   : > { %4427 = vmatmul.mubr.msk.f32.gmra.mrb[46].mxu0 %vm709_vm2, %v3390_v13 }
0x1041   : > { %v4425_v37 = vpop.f32.mrb[44].mxu0 }
0x1042   : > { %v3486_v38 = vadd.f32 %v4425_v37, %v3887_v22  ;;  %v3480_v20 = vpop.f32.mrb[45].mxu0 }
0x1043   : > { %v3481_v39 = vadd.f32 %v3887_v22, %v3480_v20 }
0x1044   : > { %v3500_v40 = vadd.f32 %v3486_v38, %v3388_v17 }
0x1045   : > { %v4428_v41 = vpop.f32.mrb[46].mxu0  ;;  %v3499_v28 = vadd.f32 %v3481_v39, %v3387_v35 }
0x1046   : > { %v3496_v26 = vadd.f32 %v4428_v41, %v3887_v22  ;;  %v3490_v42 = vpop.f32.mrb[47].mxu0  ;;  %v3508_v43 = vsel %vm709_vm2, %v3500_v40, 0.0 }
0x1047   : > { %v3491_v45 = vadd.f32 %v3887_v22, %v3490_v42  ;;  %3509 = vadd.xlane.f32.xlu1 %v3508_v43  ;;  %v3505_v61 = vsel %vm709_vm2, %v3499_v28, 0.0 }
0x1048   : > { %3506 = vadd.xlane.f32.xlu0 %v3505_v61  ;;  %v3502_v46 = vadd.f32 %v3496_v26, %v3390_v13 }
0x1049   : > { %v3501_v48 = vadd.f32 %v3491_v45, %v3389_v18 }
0x104a   : > { %v3514_v49 = vsel %vm709_vm2, %v3502_v46, 0.0 }
0x104b   : > { %3515 = vadd.xlane.f32.xlu1 %v3514_v49  ;;  %v3511_v52 = vsel %vm709_vm2, %v3501_v48, 0.0 }
0x104c   : > { %3512 = vadd.xlane.f32.xlu0 %v3511_v52 }
0x10d4   : > { %v3510_v53 = vpop.xlane.xlu1 %3509 }
0x10d5   : > { %v3518_v56 = vmul.f32 0.03125, %v3510_v53  ;;  %v3507_v32 = vpop.xlane.xlu0 %3506 }
0x10d6   : > { %v3517_v57 = vmul.f32 0.03125, %v3507_v32 }
0x10d7   : > { %v5565_v34 = vsub.f32 %v3500_v40, %v3518_v56 }
0x10d8   : > { %v5567_v60 = vsub.f32 %v3499_v28, %v3517_v57  ;;  %v3516_v55 = vpop.xlane.xlu1 %3515 }
0x10d9   : > { %v3520_v62 = vmul.f32 0.03125, %v3516_v55  ;;  %v3513_v0 = vpop.xlane.xlu0 %3512  ;;  %v3526_v3 = vmul.f32 %v5565_v34, %v5565_v34 }
0x10da   : > { %v3519_v59 = vmul.f32 0.03125, %v3513_v0  ;;  %v3525_v1 = vmul.f32 %v5567_v60, %v5567_v60 }
0x10db   : > { %v5573_v5 = vsub.f32 %v3502_v46, %v3520_v62  ;;  %v3532_v9 = vsel %vm709_vm2, %v3526_v3, 0.0 }
0x10dc   : > { %v5576_v6 = vsub.f32 %v3501_v48, %v3519_v59  ;;  %3533 = vadd.xlane.f32.xlu1 %v3532_v9  ;;  %v3529_v7 = vsel %vm709_vm2, %v3525_v1, 0.0 }
0x10dd   : > { %3530 = vadd.xlane.f32.xlu0 %v3529_v7  ;;  %v3528_v10 = vmul.f32 %v5573_v5, %v5573_v5 }
0x10de   : > { %v3527_v12 = vmul.f32 %v5576_v6, %v5576_v6 }
0x10df   : > { %v3538_v15 = vsel %vm709_vm2, %v3528_v10, 0.0 }
0x10e0   : > { %3539 = vadd.xlane.f32.xlu1 %v3538_v15  ;;  %v3535_v21 = vsel %vm709_vm2, %v3527_v12, 0.0 }
0x10e1   : > { %3536 = vadd.xlane.f32.xlu0 %v3535_v21 }
0x10e2   : > { %4759 = shalt.err (!%p4756_p3)
}
0x10e3   : > { %s4760_s1 = scalar_lea.hbm %s5590_s30, 512  ;;  %s4764_s27 = scalar_lea.hbm %s5674_s18, 1024 }
0x10e4   : > { %p4761_p4 = scmp.ne.s32.totalorder %s5590_s30, %s4760_s1  ;;  %p4765_p9 = scmp.lt.u32.totalorder %s5590_s30, %s5674_s18 }
0x10e5   : > { %p4766_p10 = scmp.lt.u32.totalorder %s4764_s27, %s4760_s1  ;;  %p4768_p12 = scmp.lt.u32.totalorder %s4760_s1, %s5590_s30 }
0x10e6   : > { %p4762_p7 = pnand %p4761_p4, %p4946_p5 }
0x10e7   : > { %p4767_p11 = por %p4766_p10, %p4765_p9 }
0x10e8   : > { %p4763_p8 = pneg %p4762_p7 }
0x10e9   : > { %p4769_p13 = por %p4768_p12, %p4767_p11 }
0x10eb   : > { %p4770_p0 = pnand %p4769_p13, %p4763_p8 }
0x10ed   : > { %4773 = shalt.err (!%p4770_p0)
}
0x10ee   : > { %s4811_s29 = smov 128   ;;  %s4812_s23 = smov 8   ;;  %v3892_v36 = vld [vmem:[%s5671_s15] ss:$0 sm:$0xff] }
0x10ef   : > { %4625 = dma.vmem_to_hbm [thread:$0]  (%p4946_p5), %s5592_s24, 512, %s5590_s30, %s5596_s26, %s4811_s29, %s4811_s29, %s4812_s23  }
0x10f0   : > { %v3893_v31 = vld [vmem:[%s5672_s16] ss:$0 sm:$0xff]  ;;  %s5699_s1 = sshll.u32 %s4973_s25, 5 }
0x10f1   : > { %s586_s27 = scalar_lea.vmem %s5673_s17, %s5699_s1 }
0x1169   : > { %v3534_v23 = vpop.xlane.xlu1 %3533 }
0x116a   : > { %v3542_v24 = vmul.f32 0.03125, %v3534_v23  ;;  %v3531_v25 = vpop.xlane.xlu0 %3530 }
0x116b   : > { %v3541_v2 = vmul.f32 0.03125, %v3531_v25 }
0x116c   : > { %v3546_v47 = vadd.f32 1e-05, %v3542_v24 }
0x116d   : > { %v3545_v54 = vadd.f32 1e-05, %v3541_v2  ;;  %v3540_v27 = vpop.xlane.xlu1 %3539 }
0x116e   : > { %4738 = vrsqrt.f32 %v3546_v47  ;;  %v3544_v29 = vmul.f32 0.03125, %v3540_v27  ;;  %v3537_v30 = vpop.xlane.xlu0 %3536 }
0x116f   : > { %4740 = vrsqrt.f32 %v3545_v54  ;;  %v3543_v8 = vmul.f32 0.03125, %v3537_v30 }
0x1170   : > { %v3548_v4 = vadd.f32 1e-05, %v3544_v29 }
0x1171   : > { %v3547_v50 = vadd.f32 1e-05, %v3543_v8 }
0x1172   : > { %4742 = vrsqrt.f32 %v3548_v4 }
0x1173   : > { %4744 = vrsqrt.f32 %v3547_v50 }
0x1178   : > { %v4739_v51 = vpop.eup %4738 }
0x1179   : > { %v4741_v63 = vpop.eup %4740  ;;  %v3554_v58 = vmul.f32 %v4739_v51, %v5565_v34 }
0x117a   : > { %v3553_v33 = vmul.f32 %v4741_v63, %v5567_v60 }
0x117b   : > { %v3564_v11 = vmul.f32 %v3892_v36, %v3554_v58 }
0x117c   : > { %v4743_v14 = vpop.eup %4742  ;;  %v3563_v35 = vmul.f32 %v3892_v36, %v3553_v33 }
0x117d   : > { %v4745_v16 = vpop.eup %4744  ;;  %v3574_v17 = vadd.f32 %v3893_v31, %v3564_v11  ;;  %v3556_v19 = vmul.f32 %v4743_v14, %v5573_v5 }
0x117e   : > { %v3573_v44 = vadd.f32 %v3893_v31, %v3563_v35  ;;  %v3555_v18 = vmul.f32 %v4745_v16, %v5576_v6 }
0x117f   : > { %3586 = vst.msk [vmem:[%s586_s27 + $0x8] sm:$0xff] %vm709_vm2, %v3574_v17  ;;  %v3566_v13 = vmul.f32 %v3892_v36, %v3556_v19 }
0x1180   : > { %3585 = vst.msk [vmem:[%s586_s27] sm:$0xff] %vm709_vm2, %v3573_v44  ;;  %v3565_v22 = vmul.f32 %v3892_v36, %v3555_v18 }
0x1181   : > { %v3576_v37 = vadd.f32 %v3893_v31, %v3566_v13 }
0x1182   : > { %v3575_v38 = vadd.f32 %v3893_v31, %v3565_v22 }
0x1183   : > { %3588 = vst.msk [vmem:[%s586_s27 + $0x18] sm:$0xff] %vm709_vm2, %v3576_v37 }
0x1184   : > { %3587 = vst.msk [vmem:[%s586_s27 + $0x10] sm:$0xff] %vm709_vm2, %v3575_v38 }
0x1185 PF: > { %s5700_s25 = sld [smem:[#allocation7_spill]]  ;;  %s5701_s0 = sld [smem:[#allocation5_spill]] }
0x118b   : > { %p4631_p5 = scmp.ge.s32.totalorder %s5700_s25, 2  ;;  %s3634_s29 = sand.u32 1, %s5701_s0  }
0x118c   : > { %s3635_s23 = scalar_lea.sflag [#allocation3], %s3634_s29 }
0x118d   : > { %p4628_p1 = pnand %p4631_p5, %p4950_p6 }
0x118f   : > { %4791 = dma.done.wait (!%p4628_p1), %s3635_s23, 512  }
0x1190   : > { %4793 = vsyncadd (!%p4628_p1), %s3635_s23, 4294966784  ;;  %s5703_s30 = sld [smem:[#allocation8_spill]]  ;;  %s5704_s2 = sld [smem:[#allocation6_spill]] }
0x1191   : > { %s5705_s29 = sld [smem:[#allocation9_spill]]  ;;  %s5706_s27 = smov %s4800_s28 }
0x1196   : > { %p29_p2 = scmp.ge.s32.totalorder %s5703_s30, 4   ;;  %s5707_s28 = smov %s5704_s2 }
0x1198   :  { %31 = sbr.rel (!%p29_p2) target bundleno = 7 (0x7), region = 156 }
0x119f   :  { %3640 = vsyncpa [#allocation3], 1 }
0x11a0   :  { %3642 = vsyncpa [#allocation3 + $0x1], 1 }

</bundles_post_ra>
